<compile_context>
chip_gen: v7x
topology: tpu7x:2x2x1
jax: 0.10.0
libtpu: 0.0.40
codegen_flags: <defaults>
</compile_context>

<pallas_src>
import functools

import jax
import jax.numpy as jnp
from jax.experimental import pallas as pl
from jax.experimental.pallas import tpu as pltpu


def _round_up(x, m):
    return (x + m - 1) // m * m


# ----------------------------------------------------------------------------
# Pallas kernel: (pool-tap matmuls -> max) + bias + activation, all in one block
# ----------------------------------------------------------------------------
def _conv_block_kernel(p_ref, w_ref, b_ref, o_ref, *, activation):
    """o = act(max_t(P[t] @ W) + b).

    p_ref: (T, TM, K) bf16  stacked pool-window taps of the im2col patch matrix
                            (T == 1 for layers without a following max-pool)
    w_ref: (K, C)     bf16  conv weight in matmul layout
    b_ref: (1, C)     f32   bias row
    o_ref: (TM, C)    f32
    """
    w = w_ref[...]
    y = jnp.dot(p_ref[0], w, preferred_element_type=jnp.float32)
    for t in range(1, p_ref.shape[0]):            # static unroll (T <= 4)
        y = jnp.maximum(y, jnp.dot(p_ref[t], w, preferred_element_type=jnp.float32))
    y = y + b_ref[...]
    if activation == "relu":
        y = jnp.maximum(y, 0.0)
    elif activation == "tanh":
        y = jnp.tanh(y)
    o_ref[...] = y


def _matmul_max_bias_act(P, Wm, b_row, activation, *, tm=512):
    """act(max over leading tap axis of (P[t] @ Wm) + b).  P:(T,M,K) bf16 -> (M,C) f32."""
    T, M, K = P.shape
    C = Wm.shape[1]
    TM = min(tm, _round_up(M, 8))                 # sublane-aligned row tile
    grid = (pl.cdiv(M, TM),)
    kernel = functools.partial(_conv_block_kernel, activation=activation)
    return pl.pallas_call(
        kernel,
        out_shape=jax.ShapeDtypeStruct((M, C), jnp.float32),
        grid=grid,
        in_specs=[
            pl.BlockSpec((T, TM, K), lambda i: (0, i, 0)),   # M-tiled patches (bf16)
            pl.BlockSpec((K, C), lambda i: (0, 0)),          # whole weight every step
            pl.BlockSpec((1, C), lambda i: (0, 0)),          # bias row
        ],
        out_specs=pl.BlockSpec((TM, C), lambda i: (i, 0)),
        compiler_params=pltpu.CompilerParams(
            dimension_semantics=("parallel",)),              # shard M across TCs (v7x)
    )(P, Wm, b_row)


# ----------------------------------------------------------------------------
# Host-side glue: im2col tap slicing, zero dilation (pure data movement, no FLOPs)
# ----------------------------------------------------------------------------
def _extract_patches(x, k, stride, padding):
    """x: (N,H,W,Cin) -> im2col patches (N, Ho, Wo, k*k*Cin), column order (kh,kw,cin)."""
    N, H, W, Cin = x.shape
    Ho = (H + 2 * padding - k) // stride + 1
    Wo = (W + 2 * padding - k) // stride + 1
    if padding:
        x = jnp.pad(x, ((0, 0), (padding, padding), (padding, padding), (0, 0)))
    taps = []
    for kh in range(k):
        for kw in range(k):
            taps.append(x[:, kh:kh + stride * (Ho - 1) + 1:stride,
                             kw:kw + stride * (Wo - 1) + 1:stride, :])
    p = jnp.stack(taps, axis=3)                   # (N, Ho, Wo, k*k, Cin)
    return p.reshape(N, Ho, Wo, k * k * Cin), Ho, Wo


def conv2d_fused(x, Wm, b_row, *, ksize, stride, padding, activation, pool=None, tm=512):
    """Conv2d + bias + act with an optional fused trailing MaxPool2d, one pallas_call.

    x: (N,H,W,Cin) f32.  Wm: (k*k*Cin, Cout) bf16.  b_row: (1,Cout) f32.
    pool: None or (pool_k, pool_stride).
    """
    N = x.shape[0]
    Cout = Wm.shape[1]
    P4, Ho, Wo = _extract_patches(x, ksize, stride, padding)
    K = P4.shape[-1]
    if pool is None:
        Po, Qo = Ho, Wo
        P = P4.reshape(1, N * Ho * Wo, K)
    else:
        pk, ps = pool
        Po = (Ho - pk) // ps + 1
        Qo = (Wo - pk) // ps + 1
        taps = [P4[:, i:i + ps * (Po - 1) + 1:ps,
                      j:j + ps * (Qo - 1) + 1:ps, :].reshape(N * Po * Qo, K)
                for i in range(pk) for j in range(pk)]
        P = jnp.stack(taps, axis=0)               # (pk*pk, N*Po*Qo, K)
    y = _matmul_max_bias_act(P.astype(jnp.bfloat16), Wm, b_row, activation, tm=tm)
    return y.reshape(N, Po, Qo, Cout)


def conv_transpose2d_fused(x, Wm, b_row, *, ksize, stride, padding, activation, tm=512):
    """ConvTranspose2d + bias + act: zero-dilate input, then stride-1 conv with the
    pre-packed (spatially flipped, channel-transposed) weight."""
    N, H, W, Cin = x.shape
    if stride > 1:
        Hd, Wd = (H - 1) * stride + 1, (W - 1) * stride + 1
        x = jnp.zeros((N, Hd, Wd, Cin), x.dtype).at[:, ::stride, ::stride, :].set(x)
    return conv2d_fused(x, Wm, b_row, ksize=ksize, stride=1,
                        padding=ksize - 1 - padding, activation=activation, tm=tm)


# ----------------------------------------------------------------------------
# Model: parameters (PyTorch layout) + one-time packing + forward
# ----------------------------------------------------------------------------
def init_params(key):
    keys = jax.random.split(key, 10)

    def u(k, shape, fan_in):
        bound = 1.0 / (fan_in ** 0.5)
        return jax.random.uniform(k, shape, jnp.float32, -bound, bound)

    return {
        # encoder: Conv2d weights are (Cout, Cin, KH, KW)
        "enc1_w": u(keys[0], (16, 1, 3, 3), 1 * 3 * 3),
        "enc1_b": u(keys[1], (16,), 1 * 3 * 3),
        "enc2_w": u(keys[2], (8, 16, 3, 3), 16 * 3 * 3),
        "enc2_b": u(keys[3], (8,), 16 * 3 * 3),
        # decoder: ConvTranspose2d weights are (Cin, Cout, KH, KW)
        "dec1_w": u(keys[4], (8, 16, 3, 3), 16 * 3 * 3),
        "dec1_b": u(keys[5], (16,), 16 * 3 * 3),
        "dec2_w": u(keys[6], (16, 8, 5, 5), 8 * 5 * 5),
        "dec2_b": u(keys[7], (8,), 8 * 5 * 5),
        "dec3_w": u(keys[8], (8, 1, 2, 2), 1 * 2 * 2),
        "dec3_b": u(keys[9], (1,), 1 * 2 * 2),
    }


def pack_params(params):
    """One-time repack (at init, NOT per forward): conv weights -> (k*k*Cin, Cout) bf16
    matmul layout (conv-transpose weights flipped/transposed to their equivalent conv),
    biases -> (1, Cout) f32 rows."""
    def pack_conv(w):                              # (Cout, Cin, KH, KW)
        return jnp.transpose(w, (2, 3, 1, 0)).reshape(-1, w.shape[0]).astype(jnp.bfloat16)

    def pack_convT(w):                             # (Cin, Cout, KH, KW)
        return pack_conv(jnp.transpose(jnp.flip(w, axis=(2, 3)), (1, 0, 2, 3)))

    def row(b):
        return b.reshape(1, -1).astype(jnp.float32)

    return {
        "enc1_w": pack_conv(params["enc1_w"]), "enc1_b": row(params["enc1_b"]),
        "enc2_w": pack_conv(params["enc2_w"]), "enc2_b": row(params["enc2_b"]),
        "dec1_w": pack_convT(params["dec1_w"]), "dec1_b": row(params["dec1_b"]),
        "dec2_w": pack_convT(params["dec2_w"]), "dec2_b": row(params["dec2_b"]),
        "dec3_w": pack_convT(params["dec3_w"]), "dec3_b": row(params["dec3_b"]),
    }


def autoencoder_forward(packed, x_nchw):
    """x_nchw: (N, 1, 28, 28) f32 -> (N, 1, 28, 28) f32.  Same math as the PyTorch model."""
    x = jnp.transpose(x_nchw, (0, 2, 3, 1))                       # NCHW -> NHWC
    # encoder (conv + relu + maxpool fused per pallas_call)
    x = conv2d_fused(x, packed["enc1_w"], packed["enc1_b"], ksize=3, stride=3,
                     padding=1, activation="relu", pool=(2, 2))    # (N, 5, 5, 16)
    x = conv2d_fused(x, packed["enc2_w"], packed["enc2_b"], ksize=3, stride=2,
                     padding=1, activation="relu", pool=(2, 1))    # (N, 2, 2, 8)
    # decoder
    x = conv_transpose2d_fused(x, packed["dec1_w"], packed["dec1_b"], ksize=3,
                               stride=2, padding=0, activation="relu")  # (N, 5, 5,16)
    x = conv_transpose2d_fused(x, packed["dec2_w"], packed["dec2_b"], ksize=5,
                               stride=3, padding=1, activation="relu")  # (N,15,15, 8)
    x = conv_transpose2d_fused(x, packed["dec3_w"], packed["dec3_b"], ksize=2,
                               stride=2, padding=1, activation="tanh")  # (N,28,28, 1)
    return jnp.transpose(x, (0, 3, 1, 2))                          # NHWC -> NCHW


if __name__ == "__main__":
    key = jax.random.PRNGKey(0)
    pkey, xkey = jax.random.split(key)
    params = init_params(pkey)
    packed = pack_params(params)          # weight repack hoisted out of the forward path
    x = jax.random.normal(xkey, (2, 1, 28, 28), jnp.float32)

    fwd = jax.jit(autoencoder_forward)
    y = fwd(packed, x)
    jax.block_until_ready(y)

    assert y.shape == (2, 1, 28, 28), y.shape
    assert bool(jnp.all(jnp.isfinite(y)))
    assert bool(jnp.all(jnp.abs(y) <= 1.0 + 1e-6))  # tanh output range
    print("KERNEL_OK")
</pallas_src>

<mosaic_0001>
module attributes {stable_mosaic.version = 11 : i64} {
  func.func @_conv_block_kernel(%arg0: i32, %arg1: memref<4x56x9xbf16, #tpu.memory_space<vmem>>, %arg2: memref<9x16xbf16, #tpu.memory_space<vmem>>, %arg3: memref<1x16xf32, #tpu.memory_space<vmem>>, %arg4: memref<56x16xf32, #tpu.memory_space<vmem>>) attributes {dimension_semantics = [#tpu.dimension_semantics<parallel>], iteration_bounds = array<i64: 1>, scalar_prefetch = 0 : i64, scratch_operands = 0 : i64, tpu.core_type = #tpu.core_type<tc>, window_params = [{transform_indices = @transform_0, window_bounds = array<i64: 4, 56, 9>}, {pipeline_mode = #tpu.pipeline_mode<synchronous>, transform_indices = @transform_1, window_bounds = array<i64: 9, 16>}, {pipeline_mode = #tpu.pipeline_mode<synchronous>, transform_indices = @transform_2, window_bounds = array<i64: 1, 16>}, {transform_indices = @transform_3, window_bounds = array<i64: 56, 16>}]} {
    %c0 = arith.constant 0 : index
    %c0_0 = arith.constant 0 : index
    %0 = vector.load %arg2[%c0, %c0_0] : memref<9x16xbf16, #tpu.memory_space<vmem>>, vector<9x16xbf16>
    %c0_1 = arith.constant 0 : index
    %c0_2 = arith.constant 0 : index
    %c0_3 = arith.constant 0 : index
    %1 = vector.load %arg1[%c0_1, %c0_2, %c0_3] : memref<4x56x9xbf16, #tpu.memory_space<vmem>>, vector<1x56x9xbf16>
    %2 = vector.shape_cast %1 : vector<1x56x9xbf16> to vector<56x9xbf16>
    %cst = arith.constant dense<0.000000e+00> : vector<56x16xf32>
    %3 = tpu.matmul %2, %0, %cst {dimension_numbers = #tpu.dot_dimension_numbers<[1], [0], [0], [1], [0, 0, 1, 1], [], []>} : vector<56x9xbf16>, vector<9x16xbf16>, vector<56x16xf32> -> vector<56x16xf32>
    %c1 = arith.constant 1 : index
    %c0_4 = arith.constant 0 : index
    %c0_5 = arith.constant 0 : index
    %4 = vector.load %arg1[%c1, %c0_4, %c0_5] : memref<4x56x9xbf16, #tpu.memory_space<vmem>>, vector<1x56x9xbf16>
    %5 = vector.shape_cast %4 : vector<1x56x9xbf16> to vector<56x9xbf16>
    %cst_6 = arith.constant dense<0.000000e+00> : vector<56x16xf32>
    %6 = tpu.matmul %5, %0, %cst_6 {dimension_numbers = #tpu.dot_dimension_numbers<[1], [0], [0], [1], [0, 0, 1, 1], [], []>} : vector<56x9xbf16>, vector<9x16xbf16>, vector<56x16xf32> -> vector<56x16xf32>
    %7 = arith.maximumf %3, %6 : vector<56x16xf32>
    %c2 = arith.constant 2 : index
    %c0_7 = arith.constant 0 : index
    %c0_8 = arith.constant 0 : index
    %8 = vector.load %arg1[%c2, %c0_7, %c0_8] : memref<4x56x9xbf16, #tpu.memory_space<vmem>>, vector<1x56x9xbf16>
    %9 = vector.shape_cast %8 : vector<1x56x9xbf16> to vector<56x9xbf16>
    %cst_9 = arith.constant dense<0.000000e+00> : vector<56x16xf32>
    %10 = tpu.matmul %9, %0, %cst_9 {dimension_numbers = #tpu.dot_dimension_numbers<[1], [0], [0], [1], [0, 0, 1, 1], [], []>} : vector<56x9xbf16>, vector<9x16xbf16>, vector<56x16xf32> -> vector<56x16xf32>
    %11 = arith.maximumf %7, %10 : vector<56x16xf32>
    %c3 = arith.constant 3 : index
    %c0_10 = arith.constant 0 : index
    %c0_11 = arith.constant 0 : index
    %12 = vector.load %arg1[%c3, %c0_10, %c0_11] : memref<4x56x9xbf16, #tpu.memory_space<vmem>>, vector<1x56x9xbf16>
    %13 = vector.shape_cast %12 : vector<1x56x9xbf16> to vector<56x9xbf16>
    %cst_12 = arith.constant dense<0.000000e+00> : vector<56x16xf32>
    %14 = tpu.matmul %13, %0, %cst_12 {dimension_numbers = #tpu.dot_dimension_numbers<[1], [0], [0], [1], [0, 0, 1, 1], [], []>} : vector<56x9xbf16>, vector<9x16xbf16>, vector<56x16xf32> -> vector<56x16xf32>
    %15 = arith.maximumf %11, %14 : vector<56x16xf32>
    %c0_13 = arith.constant 0 : index
    %c0_14 = arith.constant 0 : index
    %16 = vector.load %arg3[%c0_13, %c0_14] : memref<1x16xf32, #tpu.memory_space<vmem>>, vector<1x16xf32>
    %17 = vector.broadcast %16 : vector<1x16xf32> to vector<56x16xf32>
    %18 = arith.addf %15, %17 : vector<56x16xf32>
    %cst_15 = arith.constant 0.000000e+00 : f32
    %19 = vector.broadcast %cst_15 : f32 to vector<56x16xf32>
    %20 = arith.maximumf %18, %19 : vector<56x16xf32>
    %c0_16 = arith.constant 0 : index
    %c0_17 = arith.constant 0 : index
    %21 = vector.load %arg4[%c0_16, %c0_17] : memref<56x16xf32, #tpu.memory_space<vmem>>, vector<56x16xf32>
    tpu.vector_store %arg4[%c0_16, %c0_17], %20 {strides = array<i32>} : memref<56x16xf32, #tpu.memory_space<vmem>>, vector<56x16xf32>,
    return
  }
  func.func @transform_0(%arg0: i32) -> (i32, i32, i32) {
    %c0_i32 = arith.constant 0 : i32
    %c0_i32_0 = arith.constant 0 : i32
    %c0_i32_1 = arith.constant 0 : i32
    return %c0_i32, %arg0, %c0_i32_0 : i32, i32, i32
  }
  func.func @transform_1(%arg0: i32) -> (i32, i32) {
    %c0_i32 = arith.constant 0 : i32
    %c0_i32_0 = arith.constant 0 : i32
    %c0_i32_1 = arith.constant 0 : i32
    return %c0_i32, %c0_i32_0 : i32, i32
  }
  func.func @transform_2(%arg0: i32) -> (i32, i32) {
    %c0_i32 = arith.constant 0 : i32
    %c0_i32_0 = arith.constant 0 : i32
    %c0_i32_1 = arith.constant 0 : i32
    return %c0_i32, %c0_i32_0 : i32, i32
  }
  func.func @transform_3(%arg0: i32) -> (i32, i32) {
    %c0_i32 = arith.constant 0 : i32
    %c0_i32_0 = arith.constant 0 : i32
    return %arg0, %c0_i32 : i32, i32
  }
}

module attributes {stable_mosaic.version = 11 : i64} {
  func.func @_conv_block_kernel(%arg0: i32, %arg1: memref<4x8x144xbf16, #tpu.memory_space<vmem>>, %arg2: memref<144x8xbf16, #tpu.memory_space<vmem>>, %arg3: memref<1x8xf32, #tpu.memory_space<vmem>>, %arg4: memref<8x8xf32, #tpu.memory_space<vmem>>) attributes {dimension_semantics = [#tpu.dimension_semantics<parallel>], iteration_bounds = array<i64: 1>, scalar_prefetch = 0 : i64, scratch_operands = 0 : i64, tpu.core_type = #tpu.core_type<tc>, window_params = [{transform_indices = @transform_0, window_bounds = array<i64: 4, 8, 144>}, {pipeline_mode = #tpu.pipeline_mode<synchronous>, transform_indices = @transform_1, window_bounds = array<i64: 144, 8>}, {pipeline_mode = #tpu.pipeline_mode<synchronous>, transform_indices = @transform_2, window_bounds = array<i64: 1, 8>}, {transform_indices = @transform_3, window_bounds = array<i64: 8, 8>}]} {
    %c0 = arith.constant 0 : index
    %c0_0 = arith.constant 0 : index
    %0 = vector.load %arg2[%c0, %c0_0] : memref<144x8xbf16, #tpu.memory_space<vmem>>, vector<144x8xbf16>
    %c0_1 = arith.constant 0 : index
    %c0_2 = arith.constant 0 : index
    %c0_3 = arith.constant 0 : index
    %1 = vector.load %arg1[%c0_1, %c0_2, %c0_3] : memref<4x8x144xbf16, #tpu.memory_space<vmem>>, vector<1x8x144xbf16>
    %2 = vector.shape_cast %1 : vector<1x8x144xbf16> to vector<8x144xbf16>
    %cst = arith.constant dense<0.000000e+00> : vector<8x8xf32>
    %3 = tpu.matmul %2, %0, %cst {dimension_numbers = #tpu.dot_dimension_numbers<[1], [0], [0], [1], [0, 0, 1, 1], [], []>} : vector<8x144xbf16>, vector<144x8xbf16>, vector<8x8xf32> -> vector<8x8xf32>
    %c1 = arith.constant 1 : index
    %c0_4 = arith.constant 0 : index
    %c0_5 = arith.constant 0 : index
    %4 = vector.load %arg1[%c1, %c0_4, %c0_5] : memref<4x8x144xbf16, #tpu.memory_space<vmem>>, vector<1x8x144xbf16>
    %5 = vector.shape_cast %4 : vector<1x8x144xbf16> to vector<8x144xbf16>
    %cst_6 = arith.constant dense<0.000000e+00> : vector<8x8xf32>
    %6 = tpu.matmul %5, %0, %cst_6 {dimension_numbers = #tpu.dot_dimension_numbers<[1], [0], [0], [1], [0, 0, 1, 1], [], []>} : vector<8x144xbf16>, vector<144x8xbf16>, vector<8x8xf32> -> vector<8x8xf32>
    %7 = arith.maximumf %3, %6 : vector<8x8xf32>
    %c2 = arith.constant 2 : index
    %c0_7 = arith.constant 0 : index
    %c0_8 = arith.constant 0 : index
    %8 = vector.load %arg1[%c2, %c0_7, %c0_8] : memref<4x8x144xbf16, #tpu.memory_space<vmem>>, vector<1x8x144xbf16>
    %9 = vector.shape_cast %8 : vector<1x8x144xbf16> to vector<8x144xbf16>
    %cst_9 = arith.constant dense<0.000000e+00> : vector<8x8xf32>
    %10 = tpu.matmul %9, %0, %cst_9 {dimension_numbers = #tpu.dot_dimension_numbers<[1], [0], [0], [1], [0, 0, 1, 1], [], []>} : vector<8x144xbf16>, vector<144x8xbf16>, vector<8x8xf32> -> vector<8x8xf32>
    %11 = arith.maximumf %7, %10 : vector<8x8xf32>
    %c3 = arith.constant 3 : index
    %c0_10 = arith.constant 0 : index
    %c0_11 = arith.constant 0 : index
    %12 = vector.load %arg1[%c3, %c0_10, %c0_11] : memref<4x8x144xbf16, #tpu.memory_space<vmem>>, vector<1x8x144xbf16>
    %13 = vector.shape_cast %12 : vector<1x8x144xbf16> to vector<8x144xbf16>
    %cst_12 = arith.constant dense<0.000000e+00> : vector<8x8xf32>
    %14 = tpu.matmul %13, %0, %cst_12 {dimension_numbers = #tpu.dot_dimension_numbers<[1], [0], [0], [1], [0, 0, 1, 1], [], []>} : vector<8x144xbf16>, vector<144x8xbf16>, vector<8x8xf32> -> vector<8x8xf32>
    %15 = arith.maximumf %11, %14 : vector<8x8xf32>
    %c0_13 = arith.constant 0 : index
    %c0_14 = arith.constant 0 : index
    %16 = vector.load %arg3[%c0_13, %c0_14] : memref<1x8xf32, #tpu.memory_space<vmem>>, vector<1x8xf32>
    %17 = vector.broadcast %16 : vector<1x8xf32> to vector<8x8xf32>
    %18 = arith.addf %15, %17 : vector<8x8xf32>
    %cst_15 = arith.constant 0.000000e+00 : f32
    %19 = vector.broadcast %cst_15 : f32 to vector<8x8xf32>
    %20 = arith.maximumf %18, %19 : vector<8x8xf32>
    %c0_16 = arith.constant 0 : index
    %c0_17 = arith.constant 0 : index
    %21 = vector.load %arg4[%c0_16, %c0_17] : memref<8x8xf32, #tpu.memory_space<vmem>>, vector<8x8xf32>
    tpu.vector_store %arg4[%c0_16, %c0_17], %20 {strides = array<i32>} : memref<8x8xf32, #tpu.memory_space<vmem>>, vector<8x8xf32>,
    return
  }
  func.func @transform_0(%arg0: i32) -> (i32, i32, i32) {
    %c0_i32 = arith.constant 0 : i32
    %c0_i32_0 = arith.constant 0 : i32
    %c0_i32_1 = arith.constant 0 : i32
    return %c0_i32, %arg0, %c0_i32_0 : i32, i32, i32
  }
  func.func @transform_1(%arg0: i32) -> (i32, i32) {
    %c0_i32 = arith.constant 0 : i32
    %c0_i32_0 = arith.constant 0 : i32
    %c0_i32_1 = arith.constant 0 : i32
    return %c0_i32, %c0_i32_0 : i32, i32
  }
  func.func @transform_2(%arg0: i32) -> (i32, i32) {
    %c0_i32 = arith.constant 0 : i32
    %c0_i32_0 = arith.constant 0 : i32
    %c0_i32_1 = arith.constant 0 : i32
    return %c0_i32, %c0_i32_0 : i32, i32
  }
  func.func @transform_3(%arg0: i32) -> (i32, i32) {
    %c0_i32 = arith.constant 0 : i32
    %c0_i32_0 = arith.constant 0 : i32
    return %arg0, %c0_i32 : i32, i32
  }
}

module attributes {stable_mosaic.version = 11 : i64} {
  func.func @_conv_block_kernel(%arg0: i32, %arg1: memref<1x56x72xbf16, #tpu.memory_space<vmem>>, %arg2: memref<72x16xbf16, #tpu.memory_space<vmem>>, %arg3: memref<1x16xf32, #tpu.memory_space<vmem>>, %arg4: memref<56x16xf32, #tpu.memory_space<vmem>>) attributes {dimension_semantics = [#tpu.dimension_semantics<parallel>], iteration_bounds = array<i64: 1>, scalar_prefetch = 0 : i64, scratch_operands = 0 : i64, tpu.core_type = #tpu.core_type<tc>, window_params = [{transform_indices = @transform_0, window_bounds = array<i64: 1, 56, 72>}, {pipeline_mode = #tpu.pipeline_mode<synchronous>, transform_indices = @transform_1, window_bounds = array<i64: 72, 16>}, {pipeline_mode = #tpu.pipeline_mode<synchronous>, transform_indices = @transform_2, window_bounds = array<i64: 1, 16>}, {transform_indices = @transform_3, window_bounds = array<i64: 56, 16>}]} {
    %c0 = arith.constant 0 : index
    %c0_0 = arith.constant 0 : index
    %0 = vector.load %arg2[%c0, %c0_0] : memref<72x16xbf16, #tpu.memory_space<vmem>>, vector<72x16xbf16>
    %c0_1 = arith.constant 0 : index
    %c0_2 = arith.constant 0 : index
    %c0_3 = arith.constant 0 : index
    %1 = vector.load %arg1[%c0_1, %c0_2, %c0_3] : memref<1x56x72xbf16, #tpu.memory_space<vmem>>, vector<1x56x72xbf16>
    %2 = vector.shape_cast %1 : vector<1x56x72xbf16> to vector<56x72xbf16>
    %cst = arith.constant dense<0.000000e+00> : vector<56x16xf32>
    %3 = tpu.matmul %2, %0, %cst {dimension_numbers = #tpu.dot_dimension_numbers<[1], [0], [0], [1], [0, 0, 1, 1], [], []>} : vector<56x72xbf16>, vector<72x16xbf16>, vector<56x16xf32> -> vector<56x16xf32>
    %c0_4 = arith.constant 0 : index
    %c0_5 = arith.constant 0 : index
    %4 = vector.load %arg3[%c0_4, %c0_5] : memref<1x16xf32, #tpu.memory_space<vmem>>, vector<1x16xf32>
    %5 = vector.broadcast %4 : vector<1x16xf32> to vector<56x16xf32>
    %6 = arith.addf %3, %5 : vector<56x16xf32>
    %cst_6 = arith.constant 0.000000e+00 : f32
    %7 = vector.broadcast %cst_6 : f32 to vector<56x16xf32>
    %8 = arith.maximumf %6, %7 : vector<56x16xf32>
    %c0_7 = arith.constant 0 : index
    %c0_8 = arith.constant 0 : index
    %9 = vector.load %arg4[%c0_7, %c0_8] : memref<56x16xf32, #tpu.memory_space<vmem>>, vector<56x16xf32>
    tpu.vector_store %arg4[%c0_7, %c0_8], %8 {strides = array<i32>} : memref<56x16xf32, #tpu.memory_space<vmem>>, vector<56x16xf32>,
    return
  }
  func.func @transform_0(%arg0: i32) -> (i32, i32, i32) {
    %c0_i32 = arith.constant 0 : i32
    %c0_i32_0 = arith.constant 0 : i32
    %c0_i32_1 = arith.constant 0 : i32
    return %c0_i32, %arg0, %c0_i32_0 : i32, i32, i32
  }
  func.func @transform_1(%arg0: i32) -> (i32, i32) {
    %c0_i32 = arith.constant 0 : i32
    %c0_i32_0 = arith.constant 0 : i32
    %c0_i32_1 = arith.constant 0 : i32
    return %c0_i32, %c0_i32_0 : i32, i32
  }
  func.func @transform_2(%arg0: i32) -> (i32, i32) {
    %c0_i32 = arith.constant 0 : i32
    %c0_i32_0 = arith.constant 0 : i32
    %c0_i32_1 = arith.constant 0 : i32
    return %c0_i32, %c0_i32_0 : i32, i32
  }
  func.func @transform_3(%arg0: i32) -> (i32, i32) {
    %c0_i32 = arith.constant 0 : i32
    %c0_i32_0 = arith.constant 0 : i32
    return %arg0, %c0_i32 : i32, i32
  }
}

module attributes {stable_mosaic.version = 11 : i64} {
  func.func @_conv_block_kernel(%arg0: i32, %arg1: memref<1x456x400xbf16, #tpu.memory_space<vmem>>, %arg2: memref<400x8xbf16, #tpu.memory_space<vmem>>, %arg3: memref<1x8xf32, #tpu.memory_space<vmem>>, %arg4: memref<456x8xf32, #tpu.memory_space<vmem>>) attributes {dimension_semantics = [#tpu.dimension_semantics<parallel>], iteration_bounds = array<i64: 1>, scalar_prefetch = 0 : i64, scratch_operands = 0 : i64, tpu.core_type = #tpu.core_type<tc>, window_params = [{transform_indices = @transform_0, window_bounds = array<i64: 1, 456, 400>}, {pipeline_mode = #tpu.pipeline_mode<synchronous>, transform_indices = @transform_1, window_bounds = array<i64: 400, 8>}, {pipeline_mode = #tpu.pipeline_mode<synchronous>, transform_indices = @transform_2, window_bounds = array<i64: 1, 8>}, {transform_indices = @transform_3, window_bounds = array<i64: 456, 8>}]} {
    %c0 = arith.constant 0 : index
    %c0_0 = arith.constant 0 : index
    %0 = vector.load %arg2[%c0, %c0_0] : memref<400x8xbf16, #tpu.memory_space<vmem>>, vector<400x8xbf16>
    %c0_1 = arith.constant 0 : index
    %c0_2 = arith.constant 0 : index
    %c0_3 = arith.constant 0 : index
    %1 = vector.load %arg1[%c0_1, %c0_2, %c0_3] : memref<1x456x400xbf16, #tpu.memory_space<vmem>>, vector<1x456x400xbf16>
    %2 = vector.shape_cast %1 : vector<1x456x400xbf16> to vector<456x400xbf16>
    %cst = arith.constant dense<0.000000e+00> : vector<456x8xf32>
    %3 = tpu.matmul %2, %0, %cst {dimension_numbers = #tpu.dot_dimension_numbers<[1], [0], [0], [1], [0, 0, 1, 1], [], []>} : vector<456x400xbf16>, vector<400x8xbf16>, vector<456x8xf32> -> vector<456x8xf32>
    %c0_4 = arith.constant 0 : index
    %c0_5 = arith.constant 0 : index
    %4 = vector.load %arg3[%c0_4, %c0_5] : memref<1x8xf32, #tpu.memory_space<vmem>>, vector<1x8xf32>
    %5 = vector.broadcast %4 : vector<1x8xf32> to vector<456x8xf32>
    %6 = arith.addf %3, %5 : vector<456x8xf32>
    %cst_6 = arith.constant 0.000000e+00 : f32
    %7 = vector.broadcast %cst_6 : f32 to vector<456x8xf32>
    %8 = arith.maximumf %6, %7 : vector<456x8xf32>
    %c0_7 = arith.constant 0 : index
    %c0_8 = arith.constant 0 : index
    %9 = vector.load %arg4[%c0_7, %c0_8] : memref<456x8xf32, #tpu.memory_space<vmem>>, vector<456x8xf32>
    tpu.vector_store %arg4[%c0_7, %c0_8], %8 {strides = array<i32>} : memref<456x8xf32, #tpu.memory_space<vmem>>, vector<456x8xf32>,
    return
  }
  func.func @transform_0(%arg0: i32) -> (i32, i32, i32) {
    %c0_i32 = arith.constant 0 : i32
    %c0_i32_0 = arith.constant 0 : i32
    %c0_i32_1 = arith.constant 0 : i32
    return %c0_i32, %arg0, %c0_i32_0 : i32, i32, i32
  }
  func.func @transform_1(%arg0: i32) -> (i32, i32) {
    %c0_i32 = arith.constant 0 : i32
    %c0_i32_0 = arith.constant 0 : i32
    %c0_i32_1 = arith.constant 0 : i32
    return %c0_i32, %c0_i32_0 : i32, i32
  }
  func.func @transform_2(%arg0: i32) -> (i32, i32) {
    %c0_i32 = arith.constant 0 : i32
    %c0_i32_0 = arith.constant 0 : i32
    %c0_i32_1 = arith.constant 0 : i32
    return %c0_i32, %c0_i32_0 : i32, i32
  }
  func.func @transform_3(%arg0: i32) -> (i32, i32) {
    %c0_i32 = arith.constant 0 : i32
    %c0_i32_0 = arith.constant 0 : i32
    return %arg0, %c0_i32 : i32, i32
  }
}

module attributes {stable_mosaic.version = 11 : i64} {
  func.func @_conv_block_kernel(%arg0: i32, %arg1: memref<1x512x32xbf16, #tpu.memory_space<vmem>>, %arg2: memref<32x1xbf16, #tpu.memory_space<vmem>>, %arg3: memref<1x1xf32, #tpu.memory_space<vmem>>, %arg4: memref<512x1xf32, #tpu.memory_space<vmem>>) attributes {dimension_semantics = [#tpu.dimension_semantics<parallel>], iteration_bounds = array<i64: 4>, scalar_prefetch = 0 : i64, scratch_operands = 0 : i64, tpu.core_type = #tpu.core_type<tc>, window_params = [{transform_indices = @transform_0, window_bounds = array<i64: 1, 512, 32>}, {pipeline_mode = #tpu.pipeline_mode<synchronous>, transform_indices = @transform_1, window_bounds = array<i64: 32, 1>}, {pipeline_mode = #tpu.pipeline_mode<synchronous>, transform_indices = @transform_2, window_bounds = array<i64: 1, 1>}, {transform_indices = @transform_3, window_bounds = array<i64: 512, 1>}]} {
    %c0 = arith.constant 0 : index
    %c0_0 = arith.constant 0 : index
    %0 = vector.load %arg2[%c0, %c0_0] : memref<32x1xbf16, #tpu.memory_space<vmem>>, vector<32x1xbf16>
    %c0_1 = arith.constant 0 : index
    %c0_2 = arith.constant 0 : index
    %c0_3 = arith.constant 0 : index
    %1 = vector.load %arg1[%c0_1, %c0_2, %c0_3] : memref<1x512x32xbf16, #tpu.memory_space<vmem>>, vector<1x512x32xbf16>
    %2 = vector.shape_cast %1 : vector<1x512x32xbf16> to vector<512x32xbf16>
    %cst = arith.constant dense<0.000000e+00> : vector<512x1xf32>
    %3 = tpu.matmul %2, %0, %cst {dimension_numbers = #tpu.dot_dimension_numbers<[1], [0], [0], [1], [0, 0, 1, 1], [], []>} : vector<512x32xbf16>, vector<32x1xbf16>, vector<512x1xf32> -> vector<512x1xf32>
    %c0_4 = arith.constant 0 : index
    %c0_5 = arith.constant 0 : index
    %4 = vector.load %arg3[%c0_4, %c0_5] : memref<1x1xf32, #tpu.memory_space<vmem>>, vector<1x1xf32>
    %5 = vector.broadcast %4 : vector<1x1xf32> to vector<512x1xf32>
    %6 = arith.addf %3, %5 : vector<512x1xf32>
    %7 = math.tanh %6 : vector<512x1xf32>
    %c0_6 = arith.constant 0 : index
    %c0_7 = arith.constant 0 : index
    %8 = vector.load %arg4[%c0_6, %c0_7] : memref<512x1xf32, #tpu.memory_space<vmem>>, vector<512x1xf32>
    tpu.vector_store %arg4[%c0_6, %c0_7], %7 {strides = array<i32>} : memref<512x1xf32, #tpu.memory_space<vmem>>, vector<512x1xf32>,
    return
  }
  func.func @transform_0(%arg0: i32) -> (i32, i32, i32) {
    %c0_i32 = arith.constant 0 : i32
    %c0_i32_0 = arith.constant 0 : i32
    %c0_i32_1 = arith.constant 0 : i32
    return %c0_i32, %arg0, %c0_i32_0 : i32, i32, i32
  }
  func.func @transform_1(%arg0: i32) -> (i32, i32) {
    %c0_i32 = arith.constant 0 : i32
    %c0_i32_0 = arith.constant 0 : i32
    %c0_i32_1 = arith.constant 0 : i32
    return %c0_i32, %c0_i32_0 : i32, i32
  }
  func.func @transform_2(%arg0: i32) -> (i32, i32) {
    %c0_i32 = arith.constant 0 : i32
    %c0_i32_0 = arith.constant 0 : i32
    %c0_i32_1 = arith.constant 0 : i32
    return %c0_i32, %c0_i32_0 : i32, i32
  }
  func.func @transform_3(%arg0: i32) -> (i32, i32) {
    %c0_i32 = arith.constant 0 : i32
    %c0_i32_0 = arith.constant 0 : i32
    return %arg0, %c0_i32 : i32, i32
  }
}

</mosaic_0001>

<bundles_post_ra>
// kernel: autoencoder_forward.5
= control target key start
LH: loop header
LB: loop body
LE: loop exit
PB: predicated region body
PF: predicated region fallthrough
CT: control target
= control target key end

     0   :  { %8 = vsyncpa [#allocation3], 0  ;;  %s845_s0 = inlined_call_operand.vmem [shape: bf16[4,50,9], index: 0, kind: input, shape index: {}]   ;;  %s846_s1 = inlined_call_operand.hbm [shape: bf16[9,16], index: 1, kind: input, shape index: {}]   ;;  %s847_s2 = inlined_call_operand.hbm [shape: f32[1,16], index: 2, kind: input, shape index: {}]   ;;  %s848_s3 = inlined_call_operand.vmem [shape: f32[50,16], index: 3, kind: output, shape index: {}]  }
   0x1   :  { %9 = vsyncpa [#allocation5], 0  ;;  %s704_s12 = smov [#allocation2]   ;;  %s656_s16 = scalar_lea.hbm %s846_s1, 128 }
   0x2   :  { %s17_s13 = sshll.u32 %s704_s12, 4  ;;  %p657_p0 = scmp.ne.s32.totalorder %s846_s1, %s656_s16  ;;  %s18_s13 = int_to_ptr.vmem [resolvable:$true] %s17_s13 }
   0x3   :  { %p660_p1 = scmp.lt.u32.totalorder %s656_s16, %s846_s1 }
   0x5   :  { %p662_p2 = pnand %p660_p1, %p657_p0 }
   0x7   :  { %665 = shalt.err (!%p662_p2)
}
   0x8   :  { %s666_s21 = scalar_lea.vmem %s18_s13, 128  ;;  %p671_p4 = scmp.lt.s32.totalorder %s18_s13, %s18_s13 }
   0x9   :  { %p667_p3 = scmp.ne.s32.totalorder %s18_s13, %s666_s21  ;;  %p672_p5 = scmp.lt.s32.totalorder %s666_s21, %s666_s21 }
   0xb   :  { %p673_p6 = por %p672_p5, %p671_p4 }
   0xd   :  { %p674_p7 = pnand %p673_p6, %p667_p3 }
   0xf   :  { %677 = shalt.err (!%p674_p7)
}
  0x10   :  { %s705_s22 = smov 64   ;;  %s706_s23 = smov 4  }
  0x11   :  { %23 = dma.hbm_to_vmem [thread:$0]  %s846_s1, 128, %s18_s13, [#allocation3], %s705_s22, %s705_s22, %s706_s23  }
  0x12   :  { %s707_s26 = smov [#allocation4]   ;;  %s678_s30 = scalar_lea.hbm %s847_s2, 16 }
  0x13   :  { %s30_s27 = sshll.u32 %s707_s26, 4  ;;  %p679_p8 = scmp.ne.s32.totalorder %s847_s2, %s678_s30  ;;  %s31_s27 = int_to_ptr.vmem [resolvable:$true] %s30_s27 }
  0x14   :  { %p682_p9 = scmp.lt.u32.totalorder %s678_s30, %s847_s2 }
  0x16   :  { %p684_p10 = pnand %p682_p9, %p679_p8 }
  0x18   :  { %687 = shalt.err (!%p684_p10)
}
  0x19   :  { %s688_s8 = scalar_lea.vmem %s31_s27, 16  ;;  %s692_s1 = scalar_lea.vmem %s31_s27, 32 }
  0x1a   :  { %p689_p11 = scmp.ne.s32.totalorder %s31_s27, %s688_s8  ;;  %p693_p12 = scmp.lt.s32.totalorder %s31_s27, %s31_s27 }
  0x1b   :  { %p694_p13 = scmp.lt.s32.totalorder %s692_s1, %s688_s8 }
  0x1d   :  { %p695_p0 = por %p694_p13, %p693_p12 }
  0x1f   :  { %p696_p1 = pnand %p695_p0, %p689_p11 }
  0x21   :  { %699 = shalt.err (!%p696_p1)
}
  0x22   :  { %33 = dma.hbm_to_vmem [thread:$0]  %s847_s2, 16, %s31_s27, [#allocation5]  }
  0x23   :  { %700 = dma.done.wait [#allocation3], 128  }
  0x24   :  { %701 = vsyncadd [#allocation3], 4294967168 }
  0x25   :  { %702 = dma.done.wait [#allocation5], 16  }
  0x26   :  { %703 = vsyncadd [#allocation5], 4294967280  ;;  %vm86_vm0 = vcmask 1043456   ;;  %vm87_vm1 = vcmask 1044480   ;;  %v708_v0 = vmov 65535   ;;  %vm73_vm2 = vcmask 72704  }
  0x27   :  { %v88_v1 = vsel %vm86_vm0, 4294967295, %v708_v0  ;;  %v639_v3 = vld [vmem:[#allocation2] sm:$0x1f]   ;;  %v642_v7 = vld [vmem:[%s845_s0 + $0x8] sm:$0xff]   ;;  %v644_v9 = vld [vmem:[%s845_s0 + $0x10] sm:$0xff]   ;;  %vm505_vm3 = vcmask 130048  }
  0x28   :  { %v89_v2 = vsel %vm87_vm1, %v88_v1, 0  ;;  %v640_v4 = vld [vmem:[%s845_s0] sm:$0xff]   ;;  %v645_v10 = vld [vmem:[%s845_s0 + $0x2c] sm:$0xff]   ;;  %v646_v11 = vld [vmem:[%s845_s0 + $0x18] ss:$0 sps:$4 sm:$0xff]  }
  0x29   :  { %v91_v5 = vand.u32 %v639_v3, %v89_v2  ;;  %v641_v6 = vld [vmem:[%s845_s0 + $0x1c] sm:$0xff]   ;;  %596 = vmatprep.mubr.msk.bf16.mxu0 %vm73_vm2, %v640_v4  ;;  %v643_v8 = vld [vmem:[%s845_s0 + $0x24] sm:$0xff]   ;;  %v647_v12 = vld [vmem:[%s845_s0 + $0x34] ss:$0 sps:$4 sm:$0xff]  }
  0x2a   :  { %606 = vmatprep.mubr.msk.bf16.mxu1 %vm73_vm2, %v641_v6  ;;  %v648_v13 = vld [vmem:[%s845_s0 + $0x38] sm:$0xff]   ;;  %v650_v15 = vld [vmem:[%s845_s0 + $0x40] sm:$0xff]   ;;  %v652_v17 = vld [vmem:[%s845_s0 + $0x48] sm:$0xff]  }
  0x2b   :  { %594 = vmatprep.subr.bf16.mxu0 %v91_v5  ;;  %604 = vmatprep.subr.bf16.mxu1 %v91_v5  ;;  %v649_v14 = vld [vmem:[%s845_s0 + $0x54] sm:$0xff]   ;;  %v651_v16 = vld [vmem:[%s845_s0 + $0x5c] sm:$0xff]   ;;  %v653_v18 = vld [vmem:[%s845_s0 + $0x64] sm:$0xff]  }
  0x2c   :  { %595 = vmatpush3.bf16.msra.mxu0 %v91_v5  ;;  %605 = vmatpush3.bf16.msra.mxu1 %v91_v5  ;;  %v654_v19 = vld [vmem:[%s845_s0 + $0x50] ss:$0 sps:$4 sm:$0xff]   ;;  %v655_v20 = vld [vmem:[%s845_s0 + $0x6c] ss:$0 sps:$4 sm:$0xff]   ;;  %v573_v49 = vld [vmem:[#allocation4] ss:$0 sm:$0xff] }
  0x2d   :  { %614 = vmatprep.subr.bf16.mxu0 %v91_v5  ;;  %624 = vmatprep.subr.bf16.mxu1 %v91_v5 }
  0x2f   :  { %597 = vmatmul.mubr.msk.bf16.vlgmr.msra.gmra.mrb[0].mxu0 %vm73_vm2, %v642_v7  ;;  %607 = vmatmul.mubr.msk.bf16.vlgmr.msra.gmra.mrb[0].mxu1 %vm73_vm2, %v643_v8 }
  0x30   :  { %615 = vmatpush3.bf16.msra.mxu0 %v91_v5  ;;  %625 = vmatpush3.bf16.msra.mxu1 %v91_v5 }
  0x31   :  { %600 = vmatprep.mubr.msk.bf16.mxu0 %vm73_vm2, %v644_v9  ;;  %610 = vmatprep.mubr.msk.bf16.mxu1 %vm73_vm2, %v645_v10 }
  0x37   :  { %601 = vmatmul.mubr.msk.bf16.gmra.mrb[4].mxu0 %vm73_vm2, %v646_v11  ;;  %611 = vmatmul.mubr.msk.bf16.gmra.mrb[4].mxu1 %vm73_vm2, %v647_v12 }
  0x38   :  { %616 = vmatprep.mubr.msk.bf16.mxu0 %vm73_vm2, %v648_v13  ;;  %626 = vmatprep.mubr.msk.bf16.mxu1 %vm73_vm2, %v649_v14 }
  0x3f   :  { %617 = vmatmul.mubr.msk.bf16.vlgmr.msra.gmra.mrb[8].mxu0 %vm73_vm2, %v650_v15  ;;  %627 = vmatmul.mubr.msk.bf16.vlgmr.msra.gmra.mrb[8].mxu1 %vm73_vm2, %v651_v16 }
  0x40   :  { %620 = vmatprep.mubr.msk.bf16.mxu0 %vm73_vm2, %v652_v17  ;;  %630 = vmatprep.mubr.msk.bf16.mxu1 %vm73_vm2, %v653_v18 }
  0x47   :  { %621 = vmatmul.mubr.msk.bf16.gmra.mrb[12].mxu0 %vm73_vm2, %v654_v19  ;;  %631 = vmatmul.mubr.msk.bf16.gmra.mrb[12].mxu1 %vm73_vm2, %v655_v20 }
 0x102   :  { %v598_v21 = vpop.f32.mrb[0].mxu0  ;;  %v608_v22 = vpop.f32.mrb[0].mxu1 }
 0x103   :  { %v261_v23 = vmax.f32 %v598_v21, %v608_v22  ;;  %v127_v24 = vpop.f32.mrb[1].mxu0  ;;  %v229_v25 = vpop.f32.mrb[1].mxu1 }
 0x104   :  { %v259_v26 = vmax.f32 %v127_v24, %v229_v25  ;;  %v599_v27 = vpop.f32.mrb[2].mxu0  ;;  %v609_v28 = vpop.f32.mrb[2].mxu1 }
 0x105   :  { %v262_v29 = vmax.f32 %v599_v27, %v609_v28  ;;  %v130_v30 = vpop.f32.mrb[3].mxu0  ;;  %v232_v31 = vpop.f32.mrb[3].mxu1 }
 0x106   :  { %v260_v32 = vmax.f32 %v130_v30, %v232_v31 }
 0x10a   :  { %v602_v33 = vpop.f32.mrb[4].mxu0  ;;  %v612_v34 = vpop.f32.mrb[4].mxu1 }
 0x10b   :  { %v265_v35 = vmax.f32 %v602_v33, %v612_v34  ;;  %v143_v36 = vpop.f32.mrb[5].mxu0  ;;  %v245_v37 = vpop.f32.mrb[5].mxu1 }
 0x10c   :  { %v263_v38 = vmax.f32 %v143_v36, %v245_v37  ;;  %v603_v39 = vpop.f32.mrb[6].mxu0  ;;  %v613_v40 = vpop.f32.mrb[6].mxu1 }
 0x10d   :  { %v146_v41 = vpop.f32.mrb[7].mxu0  ;;  %v248_v42 = vpop.f32.mrb[7].mxu1 }
 0x10e   :  { %v264_v43 = vmax.f32 %v146_v41, %v248_v42 }
 0x112   :  { %v618_v44 = vpop.f32.mrb[8].mxu0  ;;  %v628_v45 = vpop.f32.mrb[8].mxu1 }
 0x113   :  { %v370_v46 = vmax.f32 %v261_v23, %v618_v44  ;;  %v338_v47 = vpop.f32.mrb[9].mxu0  ;;  %v447_v48 = vpop.f32.mrb[9].mxu1 }
 0x114   :  { %v368_v50 = vmax.f32 %v259_v26, %v338_v47  ;;  %v619_v51 = vpop.f32.mrb[10].mxu0  ;;  %v629_v52 = vpop.f32.mrb[10].mxu1 }
 0x115   :  { %v479_v53 = vmax.f32 %v370_v46, %v628_v45  ;;  %v371_v54 = vmax.f32 %v262_v29, %v619_v51  ;;  %v341_v55 = vpop.f32.mrb[11].mxu0  ;;  %v450_v56 = vpop.f32.mrb[11].mxu1 }
 0x116   :  { %v477_v57 = vmax.f32 %v368_v50, %v447_v48  ;;  %v369_v58 = vmax.f32 %v260_v32, %v341_v55 }
 0x117   :  { %v493_v59 = vadd.f32 %v573_v49, %v479_v53  ;;  %v480_v60 = vmax.f32 %v371_v54, %v629_v52 }
 0x118   :  { %v491_v61 = vadd.f32 %v573_v49, %v477_v57  ;;  %v478_v62 = vmax.f32 %v369_v58, %v450_v56 }
 0x119   :  { %v500_v63 = vmax.f32 %v493_v59, 0.0  ;;  %v494_v0 = vadd.f32 %v573_v49, %v480_v60 }
 0x11a   :  { %v498_v1 = vmax.f32 %v491_v61, 0.0  ;;  %v492_v2 = vadd.f32 %v573_v49, %v478_v62  ;;  %v622_v3 = vpop.f32.mrb[12].mxu0  ;;  %v632_v4 = vpop.f32.mrb[12].mxu1 }
 0x11b   :  { %508 = vst.msk [vmem:[%s848_s3 + $0x10] sm:$0xff] %vm505_vm3, %v500_v63  ;;  %v501_v5 = vmax.f32 %v494_v0, 0.0  ;;  %v374_v6 = vmax.f32 %v265_v35, %v622_v3  ;;  %v354_v7 = vpop.f32.mrb[13].mxu0  ;;  %v463_v8 = vpop.f32.mrb[13].mxu1 }
 0x11c   :  { %506 = vst.msk [vmem:[%s848_s3] sm:$0xff] %vm505_vm3, %v498_v1  ;;  %v499_v9 = vmax.f32 %v492_v2, 0.0  ;;  %v372_v10 = vmax.f32 %v263_v38, %v354_v7  ;;  %v623_v11 = vpop.f32.mrb[14].mxu0  ;;  %v633_v12 = vpop.f32.mrb[14].mxu1 }
 0x11d   :  { %509 = vst.msk [vmem:[%s848_s3 + $0x18] sm:$0xff] %vm505_vm3, %v501_v5  ;;  %v483_v13 = vmax.f32 %v374_v6, %v632_v4  ;;  %v357_v14 = vpop.f32.mrb[15].mxu0  ;;  %v466_v15 = vpop.f32.mrb[15].mxu1 }
 0x11e   :  { %507 = vst.msk [vmem:[%s848_s3 + $0x8] sm:$0xff] %vm505_vm3, %v499_v9  ;;  %v481_v16 = vmax.f32 %v372_v10, %v463_v8  ;;  %v373_v17 = vmax.f32 %v264_v43, %v357_v14 }
 0x11f   :  { %v497_v18 = vadd.f32 %v573_v49, %v483_v13 }
 0x120   :  { %v495_v19 = vadd.f32 %v573_v49, %v481_v16  ;;  %v482_v20 = vmax.f32 %v373_v17, %v466_v15 }
 0x121   :  { %v504_v21 = vmax.f32 %v497_v18, 0.0 }
 0x122   :  { %v502_v22 = vmax.f32 %v495_v19, 0.0  ;;  %v496_v23 = vadd.f32 %v573_v49, %v482_v20 }
 0x123   :  { %512 = vst.msk [vmem:[%s848_s3 + $0x30] sm:$0xff] %vm505_vm3, %v504_v21 }
 0x124   :  { %510 = vst.msk [vmem:[%s848_s3 + $0x20] sm:$0xff] %vm505_vm3, %v502_v22  ;;  %v503_v24 = vmax.f32 %v496_v23, 0.0 }
 0x126   :  { %511 = vst.msk [vmem:[%s848_s3 + $0x28] sm:$0xff] %vm505_vm3, %v503_v24 }
 0x127   :  { %517 = vsyncpa [#allocation3], 1 }
 0x128   :  { %518 = vsyncpa [#allocation5], 1 }

// kernel: autoencoder_forward.6
= control target key start
LH: loop header
LB: loop body
LE: loop exit
PB: predicated region body
PF: predicated region fallthrough
CT: control target
= control target key end

     0   :  { %8 = vsyncpa [#allocation3], 0  ;;  %s390_s12 = smov [#allocation2]   ;;  %s512_s0 = inlined_call_operand.vmem [shape: bf16[4,8,144], index: 0, kind: input, shape index: {}]   ;;  %s513_s1 = inlined_call_operand.vmem [shape: bf16[144,8], index: 1, kind: input, shape index: {}]   ;;  %s514_s2 = inlined_call_operand.hbm [shape: f32[1,8], index: 2, kind: input, shape index: {}]   ;;  %s515_s3 = inlined_call_operand.vmem [shape: f32[8,8], index: 3, kind: output, shape index: {}]  }
   0x1   :  { %s19_s13 = sshll.u32 %s390_s12, 4  ;;  %s366_s16 = scalar_lea.hbm %s514_s2, 16  ;;  %s20_s13 = int_to_ptr.vmem [resolvable:$true] %s19_s13 }
   0x2   :  { %p367_p0 = scmp.ne.s32.totalorder %s514_s2, %s366_s16  ;;  %p370_p1 = scmp.lt.u32.totalorder %s366_s16, %s514_s2 }
   0x4   :  { %p372_p2 = pnand %p370_p1, %p367_p0 }
   0x6   :  { %375 = shalt.err (!%p372_p2)
}
   0x7   :  { %s376_s21 = scalar_lea.vmem %s20_s13, 16  ;;  %s380_s22 = scalar_lea.vmem %s20_s13, 32 }
   0x8   :  { %p377_p3 = scmp.ne.s32.totalorder %s20_s13, %s376_s21  ;;  %p381_p4 = scmp.lt.s32.totalorder %s20_s13, %s20_s13 }
   0x9   :  { %p382_p5 = scmp.lt.s32.totalorder %s380_s22, %s376_s21 }
   0xb   :  { %p383_p6 = por %p382_p5, %p381_p4 }
   0xd   :  { %p384_p7 = pnand %p383_p6, %p377_p3 }
   0xf   :  { %387 = shalt.err (!%p384_p7)
}
  0x10   :  { %22 = dma.hbm_to_vmem [thread:$0]  %s514_s2, 16, %s20_s13, [#allocation3]  }
  0x11   :  { %388 = dma.done.wait [#allocation3], 16  }
  0x12   :  { %389 = vsyncadd [#allocation3], 4294967280  ;;  %v391_v0 = vmov 0   ;;  %v349_v1 = vld [vmem:[%s513_s1] sm:$0xff]   ;;  %v432_v2 = vld [vmem:[%s513_s1 + $0x8] sm:$0xff]   ;;  %vm106_vm0 = vcmask 130048  }
  0x13   :  { %110 = vmatprep.subr.bf16.mxu0 %v391_v0  ;;  %161 = vmatprep.subr.bf16.mxu1 %v391_v0  ;;  %v351_v3 = vld [vmem:[%s513_s1 + $0x10] sm:$0xff]   ;;  %v45_v4 = vld [vmem:[%s512_s0] sm:$0xff]  ;;  %v334_v5 = vld [vmem:[%s512_s0 + $0x8] sm:$0xff]  ;;  %vm315_vm1 = vcmask 64512  }
  0x14   :  { %111 = vmatpush1.bf16.msra.mxu0 %v349_v1  ;;  %162 = vmatpush1.bf16.msra.mxu1 %v349_v1  ;;  %v352_v6 = vld [vmem:[%s513_s1 + $0x18] sm:$0xff]   ;;  %v323_v7 = vcombine.high %v45_v4, %v45_v4  ;;  %v336_v8 = vcombine.high %v334_v5, %v334_v5  ;;  %v353_v9 = vld [vmem:[%s513_s1 + $0x20] sm:$0xff]   ;;  %v354_v10 = vld [vmem:[%s513_s1 + $0x28] sm:$0xff]   ;;  %v322_v14 = vcombine.low %v45_v4, %v45_v4 }
  0x15   :  { %112 = vmatprep.subr.bf16.mxu0 %v391_v0  ;;  %163 = vmatprep.subr.bf16.mxu1 %v391_v0  ;;  %v355_v11 = vld [vmem:[%s513_s1 + $0x30] sm:$0xff]   ;;  %v356_v12 = vld [vmem:[%s513_s1 + $0x38] sm:$0xff]   ;;  %v357_v13 = vld [vmem:[%s513_s1 + $0x40] sm:$0xff]   ;;  %v335_v15 = vcombine.low %v334_v5, %v334_v5 }
  0x16   :  { %333 = vmatprep.mubr.msk.bf16.mxu0 %vm106_vm0, %v323_v7  ;;  %337 = vmatprep.mubr.msk.bf16.mxu1 %vm106_vm0, %v336_v8  ;;  %v338_v16 = vld [vmem:[%s512_s0 + $0x10] sm:$0xff]  ;;  %v342_v17 = vld [vmem:[%s512_s0 + $0x18] sm:$0xff]  ;;  %v346_v36 = vld [vmem:[#allocation2] ss:$0 sm:$0xff] }
  0x17   :  { %v340_v18 = vcombine.high %v338_v16, %v338_v16  ;;  %v344_v19 = vcombine.high %v342_v17, %v342_v17  ;;  %v339_v20 = vcombine.low %v338_v16, %v338_v16  ;;  %v343_v21 = vcombine.low %v342_v17, %v342_v17 }
  0x18   :  { %113 = vmatpush1.bf16.msra.mxu0 %v432_v2  ;;  %164 = vmatpush1.bf16.msra.mxu1 %v432_v2 }
  0x19   :  { %114 = vmatprep.subr.bf16.mxu0 %v391_v0  ;;  %165 = vmatprep.subr.bf16.mxu1 %v391_v0 }
  0x1c   :  { %115 = vmatpush1.bf16.msra.mxu0 %v351_v3  ;;  %166 = vmatpush1.bf16.msra.mxu1 %v351_v3 }
  0x1d   :  { %116 = vmatprep.subr.bf16.mxu0 %v391_v0  ;;  %167 = vmatprep.subr.bf16.mxu1 %v391_v0 }
  0x20   :  { %117 = vmatpush1.bf16.msra.mxu0 %v352_v6  ;;  %168 = vmatpush1.bf16.msra.mxu1 %v352_v6 }
  0x21   :  { %118 = vmatprep.subr.bf16.mxu0 %v391_v0  ;;  %169 = vmatprep.subr.bf16.mxu1 %v391_v0 }
  0x24   :  { %119 = vmatpush1.bf16.msra.mxu0 %v353_v9  ;;  %170 = vmatpush1.bf16.msra.mxu1 %v353_v9 }
  0x25   :  { %120 = vmatprep.subr.bf16.mxu0 %v391_v0  ;;  %171 = vmatprep.subr.bf16.mxu1 %v391_v0 }
  0x28   :  { %121 = vmatpush1.bf16.msra.mxu0 %v354_v10  ;;  %172 = vmatpush1.bf16.msra.mxu1 %v354_v10 }
  0x29   :  { %122 = vmatprep.subr.bf16.mxu0 %v391_v0  ;;  %173 = vmatprep.subr.bf16.mxu1 %v391_v0 }
  0x2c   :  { %123 = vmatpush1.bf16.msra.mxu0 %v355_v11  ;;  %174 = vmatpush1.bf16.msra.mxu1 %v355_v11 }
  0x2d   :  { %124 = vmatprep.subr.bf16.mxu0 %v391_v0  ;;  %175 = vmatprep.subr.bf16.mxu1 %v391_v0 }
  0x30   :  { %125 = vmatpush1.bf16.msra.mxu0 %v356_v12  ;;  %176 = vmatpush1.bf16.msra.mxu1 %v356_v12 }
  0x31   :  { %126 = vmatprep.subr.bf16.mxu0 %v391_v0  ;;  %177 = vmatprep.subr.bf16.mxu1 %v391_v0 }
  0x34   :  { %127 = vmatpush1.bf16.msra.mxu0 %v357_v13  ;;  %178 = vmatpush1.bf16.msra.mxu1 %v357_v13 }
  0x35   :  { %213 = vmatprep.subr.bf16.mxu0 %v391_v0  ;;  %265 = vmatprep.subr.bf16.mxu1 %v391_v0 }
  0x37   :  { %143 = vmatmul.mubr.bf16.vlgmr.msra.gmra.mrb[0].mxu0 %v322_v14  ;;  %194 = vmatmul.mubr.bf16.vlgmr.msra.gmra.mrb[0].mxu1 %v335_v15 }
  0x38   :  { %214 = vmatpush1.bf16.msra.mxu0 %v349_v1  ;;  %266 = vmatpush1.bf16.msra.mxu1 %v349_v1 }
  0x39   :  { %215 = vmatprep.subr.bf16.mxu0 %v391_v0  ;;  %267 = vmatprep.subr.bf16.mxu1 %v391_v0 }
  0x3a   :  { %341 = vmatprep.mubr.msk.bf16.mxu0 %vm106_vm0, %v340_v18  ;;  %345 = vmatprep.mubr.msk.bf16.mxu1 %vm106_vm0, %v344_v19 }
  0x3c   :  { %216 = vmatpush1.bf16.msra.mxu0 %v432_v2  ;;  %268 = vmatpush1.bf16.msra.mxu1 %v432_v2 }
  0x3d   :  { %217 = vmatprep.subr.bf16.mxu0 %v391_v0  ;;  %269 = vmatprep.subr.bf16.mxu1 %v391_v0 }
  0x40   :  { %218 = vmatpush1.bf16.msra.mxu0 %v351_v3  ;;  %270 = vmatpush1.bf16.msra.mxu1 %v351_v3 }
  0x41   :  { %219 = vmatprep.subr.bf16.mxu0 %v391_v0  ;;  %271 = vmatprep.subr.bf16.mxu1 %v391_v0 }
  0x44   :  { %220 = vmatpush1.bf16.msra.mxu0 %v352_v6  ;;  %272 = vmatpush1.bf16.msra.mxu1 %v352_v6 }
  0x45   :  { %221 = vmatprep.subr.bf16.mxu0 %v391_v0  ;;  %273 = vmatprep.subr.bf16.mxu1 %v391_v0 }
  0x48   :  { %222 = vmatpush1.bf16.msra.mxu0 %v353_v9  ;;  %274 = vmatpush1.bf16.msra.mxu1 %v353_v9 }
  0x49   :  { %223 = vmatprep.subr.bf16.mxu0 %v391_v0  ;;  %275 = vmatprep.subr.bf16.mxu1 %v391_v0 }
  0x4c   :  { %224 = vmatpush1.bf16.msra.mxu0 %v354_v10  ;;  %276 = vmatpush1.bf16.msra.mxu1 %v354_v10 }
  0x4d   :  { %225 = vmatprep.subr.bf16.mxu0 %v391_v0  ;;  %277 = vmatprep.subr.bf16.mxu1 %v391_v0 }
  0x50   :  { %226 = vmatpush1.bf16.msra.mxu0 %v355_v11  ;;  %278 = vmatpush1.bf16.msra.mxu1 %v355_v11 }
  0x51   :  { %227 = vmatprep.subr.bf16.mxu0 %v391_v0  ;;  %279 = vmatprep.subr.bf16.mxu1 %v391_v0 }
  0x54   :  { %228 = vmatpush1.bf16.msra.mxu0 %v356_v12  ;;  %280 = vmatpush1.bf16.msra.mxu1 %v356_v12 }
  0x55   :  { %229 = vmatprep.subr.bf16.mxu0 %v391_v0  ;;  %281 = vmatprep.subr.bf16.mxu1 %v391_v0 }
  0x58   :  { %230 = vmatpush1.bf16.msra.mxu0 %v357_v13  ;;  %282 = vmatpush1.bf16.msra.mxu1 %v357_v13 }
  0x5b   :  { %246 = vmatmul.mubr.bf16.vlgmr.msra.gmra.mrb[4].mxu0 %v339_v20  ;;  %298 = vmatmul.mubr.bf16.vlgmr.msra.gmra.mrb[4].mxu1 %v343_v21 }
 0x10a   :  { %v144_v22 = vpop.f32.mrb[0].mxu0  ;;  %v195_v23 = vpop.f32.mrb[0].mxu1 }
 0x10b   :  { %v201_v24 = vmax.f32 %v144_v22, %v195_v23  ;;  %v146_v25 = vpop.f32.mrb[1].mxu0  ;;  %v197_v26 = vpop.f32.mrb[1].mxu1 }
 0x10c   :  { %v147_v27 = vpop.f32.mrb[2].mxu0  ;;  %v198_v28 = vpop.f32.mrb[2].mxu1 }
 0x10d   :  { %v148_v29 = vpop.f32.mrb[3].mxu0  ;;  %v199_v30 = vpop.f32.mrb[3].mxu1 }
 0x12e   :  { %v247_v31 = vpop.f32.mrb[4].mxu0  ;;  %v299_v32 = vpop.f32.mrb[4].mxu1 }
 0x12f   :  { %v253_v33 = vmax.f32 %v201_v24, %v247_v31  ;;  %v249_v34 = vpop.f32.mrb[5].mxu0  ;;  %v301_v35 = vpop.f32.mrb[5].mxu1 }
 0x130   :  { %v250_v37 = vpop.f32.mrb[6].mxu0  ;;  %v302_v38 = vpop.f32.mrb[6].mxu1 }
 0x131   :  { %v305_v39 = vmax.f32 %v253_v33, %v299_v32  ;;  %v251_v40 = vpop.f32.mrb[7].mxu0  ;;  %v303_v41 = vpop.f32.mrb[7].mxu1 }
 0x133   :  { %v313_v42 = vadd.f32 %v346_v36, %v305_v39 }
 0x135   :  { %v314_v43 = vmax.f32 %v313_v42, 0.0 }
 0x137   :  { %316 = vst.msk [vmem:[%s515_s3] sm:$0xff] %vm315_vm1, %v314_v43 }
 0x138   :  { %321 = vsyncpa [#allocation3], 1 }

// kernel: autoencoder_forward.7
= control target key start
LH: loop header
LB: loop body
LE: loop exit
PB: predicated region body
PF: predicated region fallthrough
CT: control target
= control target key end

     0   :  { %vm83_vm0 = vcmask 588800   ;;  %vm96_vm1 = vcmask 1043456   ;;  %vm171_vm2 = vcmask 130048   ;;  %s327_s1 = inlined_call_operand.vmem [shape: bf16[72,16], index: 1, kind: input, shape index: {}]   ;;  %s328_s0 = inlined_call_operand.vmem [shape: bf16[1,50,72], index: 0, kind: input, shape index: {}]   ;;  %s329_s2 = inlined_call_operand.vmem [shape: f32[1,16], index: 2, kind: input, shape index: {}]   ;;  %s330_s3 = inlined_call_operand.vmem [shape: f32[50,16], index: 3, kind: output, shape index: {}]  }
   0x1   :  { %v236_v0 = vld [vmem:[%s327_s1] sm:$0xff]   ;;  %v237_v1 = vld [vmem:[%s327_s1 + $0x8] sm:$0xff]   ;;  %v238_v2 = vld [vmem:[%s327_s1 + $0x10] sm:$0xff]  }
   0x2   :  { %206 = vmatprep.subr.bf16.mxu0 %v236_v0  ;;  %224 = vmatprep.subr.bf16.mxu1 %v236_v0  ;;  %v241_v3 = vld [vmem:[%s328_s0] sm:$0xff]   ;;  %v242_v4 = vld [vmem:[%s328_s0 + $0x10] sm:$0xff]   ;;  %v239_v5 = vld [vmem:[%s327_s1 + $0x18] sm:$0xff]  }
   0x3   :  { %207 = vmatpush3.bf16.msra.mxu0 %v236_v0  ;;  %229 = vmatpush3.bf16.msra.mxu1 %v236_v0  ;;  %v240_v6 = vld [vmem:[%s327_s1 + $0x20] ss:$0 sps:$4 sm:$0xff]   ;;  %v243_v8 = vld [vmem:[%s328_s0 + $0x8] sm:$0xff]   ;;  %v244_v9 = vld [vmem:[%s328_s0 + $0x18] ss:$0 sps:$4 sm:$0xff]  }
   0x4   :  { %208 = vmatprep.subr.bf16.mxu0 %v237_v1  ;;  %225 = vmatprep.subr.bf16.mxu1 %v237_v1  ;;  %v98_v7 = vsel %vm96_vm1, %v240_v6, 0  ;;  %v183_v10 = vld [vmem:[%s329_s2] ss:$0 sm:$0xff] }
   0x5   :  { %216 = vmatprep.mubr.msk.bf16.mxu0 %vm83_vm0, %v241_v3  ;;  %220 = vmatprep.mubr.msk.bf16.mxu1 %vm83_vm0, %v242_v4 }
   0x7   :  { %209 = vmatpush3.bf16.msra.mxu0 %v237_v1  ;;  %230 = vmatpush3.bf16.msra.mxu1 %v237_v1 }
   0x8   :  { %210 = vmatprep.subr.bf16.mxu0 %v238_v2  ;;  %226 = vmatprep.subr.bf16.mxu1 %v238_v2 }
   0xb   :  { %211 = vmatpush3.bf16.msra.mxu0 %v238_v2  ;;  %231 = vmatpush3.bf16.msra.mxu1 %v238_v2 }
   0xc   :  { %212 = vmatprep.subr.bf16.mxu0 %v239_v5  ;;  %227 = vmatprep.subr.bf16.mxu1 %v239_v5 }
   0xf   :  { %213 = vmatpush3.bf16.msra.mxu0 %v239_v5  ;;  %232 = vmatpush3.bf16.msra.mxu1 %v239_v5 }
  0x10   :  { %234 = vmatprep.subr.msk.bf16.mxu0 %vm96_vm1, %v240_v6  ;;  %235 = vmatprep.subr.msk.bf16.mxu1 %vm96_vm1, %v240_v6 }
  0x13   :  { %215 = vmatpush3.bf16.msra.mxu0 %v98_v7  ;;  %233 = vmatpush3.bf16.msra.mxu1 %v98_v7 }
  0x16   :  { %217 = vmatmul.mubr.msk.bf16.vlgmr.msra.gmra.mrb[0].mxu0 %vm83_vm0, %v243_v8  ;;  %221 = vmatmul.mubr.msk.bf16.vlgmr.msra.gmra.mrb[0].mxu1 %vm83_vm0, %v244_v9 }
  0xe9   :  { %v218_v11 = vpop.f32.mrb[0].mxu0  ;;  %v222_v12 = vpop.f32.mrb[0].mxu1 }
  0xea   :  { %v143_v13 = vadd.f32 %v218_v11, %v183_v10  ;;  %v159_v14 = vadd.f32 %v222_v12, %v183_v10  ;;  %v134_v15 = vpop.f32.mrb[1].mxu0  ;;  %v150_v16 = vpop.f32.mrb[1].mxu1 }
  0xeb   :  { %v135_v17 = vadd.f32 %v183_v10, %v134_v15  ;;  %v151_v18 = vadd.f32 %v183_v10, %v150_v16  ;;  %v219_v19 = vpop.f32.mrb[2].mxu0  ;;  %v223_v20 = vpop.f32.mrb[2].mxu1 }
  0xec   :  { %v166_v21 = vmax.f32 %v143_v13, 0.0  ;;  %v170_v22 = vmax.f32 %v159_v14, 0.0  ;;  %v146_v23 = vadd.f32 %v219_v19, %v183_v10  ;;  %v137_v24 = vpop.f32.mrb[3].mxu0  ;;  %v153_v25 = vpop.f32.mrb[3].mxu1 }
  0xed   :  { %v164_v26 = vmax.f32 %v135_v17, 0.0  ;;  %v168_v27 = vmax.f32 %v151_v18, 0.0  ;;  %v138_v28 = vadd.f32 %v183_v10, %v137_v24  ;;  %v154_v29 = vadd.f32 %v183_v10, %v153_v25 }
  0xee   :  { %174 = vst.msk [vmem:[%s330_s3 + $0x10] sm:$0xff] %vm171_vm2, %v166_v21  ;;  %178 = vst.msk [vmem:[%s330_s3 + $0x30] sm:$0xff] %vm171_vm2, %v170_v22  ;;  %v167_v30 = vmax.f32 %v146_v23, 0.0 }
  0xef   :  { %172 = vst.msk [vmem:[%s330_s3] sm:$0xff] %vm171_vm2, %v164_v26  ;;  %176 = vst.msk [vmem:[%s330_s3 + $0x20] sm:$0xff] %vm171_vm2, %v168_v27  ;;  %v165_v31 = vmax.f32 %v138_v28, 0.0  ;;  %v169_v32 = vmax.f32 %v154_v29, 0.0 }
  0xf0   :  { %175 = vst.msk [vmem:[%s330_s3 + $0x18] sm:$0xff] %vm171_vm2, %v167_v30 }
  0xf1   :  { %173 = vst.msk [vmem:[%s330_s3 + $0x8] sm:$0xff] %vm171_vm2, %v165_v31  ;;  %177 = vst.msk [vmem:[%s330_s3 + $0x28] sm:$0xff] %vm171_vm2, %v169_v32 }

// kernel: autoencoder_forward.8
= control target key start
LH: loop header
LB: loop body
LE: loop exit
PB: predicated region body
PF: predicated region fallthrough
CT: control target
= control target key end

     0   :  { %v2099_v0 = vmov 0   ;;  %vm881_vm0 = vcmask 130048   ;;  %vm1554_vm1 = vcmask 64512   ;;  %s2881_s1 = inlined_call_operand.vmem [shape: bf16[400,8], index: 1, kind: input, shape index: {}]   ;;  %s2882_s0 = inlined_call_operand.vmem [shape: bf16[1,450,400], index: 0, kind: input, shape index: {}]   ;;  %s2883_s2 = inlined_call_operand.vmem [shape: f32[1,8], index: 2, kind: input, shape index: {}]   ;;  %s2884_s3 = inlined_call_operand.vmem [shape: f32[450,8], index: 3, kind: output, shape index: {}]  }
   0x1   :  { %969 = vmatprep.subr.bf16.mxu1 %v2099_v0  ;;  %v1902_v1 = vld [vmem:[%s2881_s1] sm:$0xff]   ;;  %1233 = vmatprep.subr.bf16.mxu0 %v2099_v0  ;;  %v1903_v2 = vld [vmem:[%s2881_s1 + $0x8] sm:$0xff]   ;;  %v1904_v3 = vld [vmem:[%s2881_s1 + $0x10] sm:$0xff]  }
   0x2   :  { %970 = vmatpush1.bf16.msra.mxu1 %v1902_v1  ;;  %v1909_v4 = vld [vmem:[%s2881_s1 + $0x80] sm:$0xff]   ;;  %v1911_v5 = vld [vmem:[%s2881_s1 + $0x88] sm:$0xff]   ;;  %v1905_v6 = vld [vmem:[%s2881_s1 + $0x18] sm:$0xff]  }
   0x3   :  { %971 = vmatprep.subr.bf16.mxu1 %v2099_v0  ;;  %1234 = vmatpush1.bf16.msra.mxu0 %v1909_v4  ;;  %v1913_v7 = vld [vmem:[%s2881_s1 + $0x90] sm:$0xff]   ;;  %v1906_v8 = vld [vmem:[%s2881_s1 + $0x20] sm:$0xff]   ;;  %v1915_v9 = vld [vmem:[%s2881_s1 + $0x98] sm:$0xff]  }
   0x4   :  { %1235 = vmatprep.subr.bf16.mxu0 %v2099_v0  ;;  %v1907_v10 = vld [vmem:[%s2881_s1 + $0x28] sm:$0xff]   ;;  %v1917_v11 = vld [vmem:[%s2881_s1 + $0xa0] sm:$0xff]   ;;  %v1908_v12 = vld [vmem:[%s2881_s1 + $0x30] sm:$0xff]  }
   0x5   :  { %v1910_v13 = vld [vmem:[%s2881_s1 + $0x38] sm:$0xff]   ;;  %v1919_v14 = vld [vmem:[%s2881_s1 + $0xa8] sm:$0xff]   ;;  %v1932_v16 = vld [vmem:[%s2882_s0 + $0x4] ss:$16 sps:$4 sm:$0xff]  }
   0x6   :  { %972 = vmatpush1.bf16.msra.mxu1 %v1903_v2  ;;  %v1929_v15 = vld [vmem:[%s2882_s0 + $0xc] ss:$16 sps:$4 sm:$0xff]   ;;  %v1921_v17 = vld [vmem:[%s2881_s1 + $0xb0] sm:$0xff]   ;;  %1001 = vmatprep.mubr.bf16.mxu1 %v1932_v16  ;;  %v1912_v18 = vld [vmem:[%s2881_s1 + $0x40] sm:$0xff]  }
   0x7   :  { %973 = vmatprep.subr.bf16.mxu1 %v2099_v0  ;;  %1236 = vmatpush1.bf16.msra.mxu0 %v1911_v5  ;;  %v1923_v19 = vld [vmem:[%s2881_s1 + $0xb8] sm:$0xff]   ;;  %v1914_v20 = vld [vmem:[%s2881_s1 + $0x48] sm:$0xff]   ;;  %v1925_v21 = vld [vmem:[%s2881_s1 + $0xc0] sm:$0xff]  }
   0x8   :  { %1237 = vmatprep.subr.bf16.mxu0 %v2099_v0  ;;  %1758 = vmatprep.mubr.msk.bf16.mxu0 %vm881_vm0, %v1929_v15  ;;  %v1916_v22 = vld [vmem:[%s2881_s1 + $0x50] sm:$0xff]   ;;  %v1927_v23 = vld [vmem:[%s2882_s0 + $0x8] ss:$16 sps:$4 sm:$0xff]   ;;  %v1933_v24 = vld [vmem:[%s2882_s0 + $0x2c] ss:$16 sps:$4 sm:$0xff]  }
   0x9   :  { %v1918_v25 = vld [vmem:[%s2881_s1 + $0x58] sm:$0xff]   ;;  %v1920_v26 = vld [vmem:[%s2881_s1 + $0x60] sm:$0xff]   ;;  %v1922_v29 = vld [vmem:[%s2881_s1 + $0x68] sm:$0xff]  }
   0xa   :  { %974 = vmatpush1.bf16.msra.mxu1 %v1904_v3  ;;  %v1937_v27 = vld [vmem:[%s2882_s0 + $0x28] ss:$16 sps:$4 sm:$0xff]   ;;  %v1939_v28 = vld [vmem:[%s2882_s0 + $0x4c] ss:$16 sps:$4 sm:$0xff]   ;;  %v1924_v30 = vld [vmem:[%s2881_s1 + $0x70] sm:$0xff]  }
   0xb   :  { %975 = vmatprep.subr.bf16.mxu1 %v2099_v0  ;;  %1238 = vmatpush1.bf16.msra.mxu0 %v1913_v7  ;;  %v1943_v31 = vld [vmem:[%s2882_s0 + $0x48] ss:$16 sps:$4 sm:$0xff]   ;;  %v1945_v32 = vld [vmem:[%s2882_s0 + $0x6c] ss:$16 sps:$4 sm:$0xff]   ;;  %v1930_v34 = vld [vmem:[%s2882_s0] ss:$16 sps:$4 sm:$0xff]  }
   0xc   :  { %1239 = vmatprep.subr.bf16.mxu0 %v2099_v0  ;;  %v1926_v33 = vld [vmem:[%s2881_s1 + $0x78] sm:$0xff]   ;;  %v1935_v35 = vld [vmem:[%s2882_s0 + $0x24] ss:$16 sps:$4 sm:$0xff]   ;;  %v1938_v38 = vld [vmem:[%s2882_s0 + $0x20] ss:$16 sps:$4 sm:$0xff]  }
   0xd   :  { %v1949_v36 = vld [vmem:[%s2882_s0 + $0x68] ss:$16 sps:$4 sm:$0xff]   ;;  %v1951_v37 = vld [vmem:[%s2882_s0 + $0x8c] ss:$16 sps:$4 sm:$0xff]   ;;  %v1941_v39 = vld [vmem:[%s2882_s0 + $0x44] ss:$16 sps:$4 sm:$0xff]  }
   0xe   :  { %976 = vmatpush1.bf16.msra.mxu1 %v1905_v6  ;;  %v1955_v40 = vld [vmem:[%s2882_s0 + $0x88] ss:$16 sps:$4 sm:$0xff]   ;;  %v1957_v41 = vld [vmem:[%s2882_s0 + $0xac] ss:$16 sps:$4 sm:$0xff]   ;;  %v1944_v42 = vld [vmem:[%s2882_s0 + $0x40] ss:$16 sps:$4 sm:$0xff]  }
   0xf   :  { %977 = vmatprep.subr.bf16.mxu1 %v2099_v0  ;;  %1240 = vmatpush1.bf16.msra.mxu0 %v1915_v9  ;;  %v1947_v43 = vld [vmem:[%s2882_s0 + $0x64] ss:$16 sps:$4 sm:$0xff]   ;;  %v1961_v44 = vld [vmem:[%s2882_s0 + $0xa8] ss:$16 sps:$4 sm:$0xff]   ;;  %v1963_v45 = vld [vmem:[%s2882_s0 + $0xcc] ss:$16 sps:$4 sm:$0xff]  }
  0x10   :  { %1241 = vmatprep.subr.bf16.mxu0 %v2099_v0  ;;  %v1950_v46 = vld [vmem:[%s2882_s0 + $0x60] ss:$16 sps:$4 sm:$0xff]   ;;  %v1953_v47 = vld [vmem:[%s2882_s0 + $0x84] ss:$16 sps:$4 sm:$0xff]   ;;  %v1967_v48 = vld [vmem:[%s2882_s0 + $0xc8] ss:$16 sps:$4 sm:$0xff]  }
  0x11   :  { %v1969_v49 = vld [vmem:[%s2882_s0 + $0xec] ss:$16 sps:$4 sm:$0xff]   ;;  %v1956_v50 = vld [vmem:[%s2882_s0 + $0x80] ss:$16 sps:$4 sm:$0xff]   ;;  %v1959_v51 = vld [vmem:[%s2882_s0 + $0xa4] ss:$16 sps:$4 sm:$0xff]  }
  0x12   :  { %978 = vmatpush1.bf16.msra.mxu1 %v1906_v8  ;;  %v1973_v52 = vld [vmem:[%s2882_s0 + $0xe8] ss:$16 sps:$4 sm:$0xff]   ;;  %v1975_v53 = vld [vmem:[%s2882_s0 + $0x10c] ss:$16 sps:$4 sm:$0xff]   ;;  %v1962_v54 = vld [vmem:[%s2882_s0 + $0xa0] ss:$16 sps:$4 sm:$0xff]  }
  0x13   :  { %979 = vmatprep.subr.bf16.mxu1 %v2099_v0  ;;  %1242 = vmatpush1.bf16.msra.mxu0 %v1917_v11  ;;  %v1965_v55 = vld [vmem:[%s2882_s0 + $0xc4] ss:$16 sps:$4 sm:$0xff]   ;;  %v1979_v56 = vld [vmem:[%s2882_s0 + $0x108] ss:$16 sps:$4 sm:$0xff]   ;;  %v1981_v57 = vld [vmem:[%s2882_s0 + $0x12c] ss:$16 sps:$4 sm:$0xff]  }
  0x14   :  { %1243 = vmatprep.subr.bf16.mxu0 %v2099_v0  ;;  %v1968_v58 = vld [vmem:[%s2882_s0 + $0xc0] ss:$16 sps:$4 sm:$0xff]   ;;  %v1971_v59 = vld [vmem:[%s2882_s0 + $0xe4] ss:$16 sps:$4 sm:$0xff]   ;;  %v1985_v60 = vld [vmem:[%s2882_s0 + $0x128] ss:$16 sps:$4 sm:$0xff]  }
  0x15   :  { %v1987_v61 = vld [vmem:[%s2882_s0 + $0x14c] ss:$16 sps:$4 sm:$0xff]   ;;  %v1974_v62 = vld [vmem:[%s2882_s0 + $0xe0] ss:$16 sps:$4 sm:$0xff]   ;;  %v1977_v63 = vld [vmem:[%s2882_s0 + $0x104] ss:$16 sps:$4 sm:$0xff]  }
  0x16   :  { %980 = vmatpush1.bf16.msra.mxu1 %v1907_v10  ;;  %v1993_v1 = vld [vmem:[%s2882_s0 + $0x16c] ss:$16 sps:$4 sm:$0xff]   ;;  %v1980_v2 = vld [vmem:[%s2882_s0 + $0x100] ss:$16 sps:$4 sm:$0xff]   ;;  %v1983_v3 = vld [vmem:[%s2882_s0 + $0x124] ss:$16 sps:$4 sm:$0xff]  }
  0x17   :  { %981 = vmatprep.subr.bf16.mxu1 %v2099_v0  ;;  %1244 = vmatpush1.bf16.msra.mxu0 %v1919_v14  ;;  %v1997_v4 = vld [vmem:[%s2882_s0 + $0x168] ss:$16 sps:$4 sm:$0xff]   ;;  %v1999_v5 = vld [vmem:[%s2882_s0 + $0x18c] ss:$16 sps:$4 sm:$0xff]   ;;  %v1986_v6 = vld [vmem:[%s2882_s0 + $0x120] ss:$16 sps:$4 sm:$0xff]  }
  0x18   :  { %1245 = vmatprep.subr.bf16.mxu0 %v2099_v0  ;;  %v1989_v7 = vld [vmem:[%s2882_s0 + $0x144] ss:$16 sps:$4 sm:$0xff]   ;;  %v2003_v8 = vld [vmem:[%s2882_s0 + $0x188] ss:$16 sps:$4 sm:$0xff]   ;;  %v2005_v9 = vld [vmem:[%s2882_s0 + $0x1ac] ss:$16 sps:$4 sm:$0xff]  }
  0x19   :  { %v1992_v10 = vld [vmem:[%s2882_s0 + $0x140] ss:$16 sps:$4 sm:$0xff]   ;;  %v1995_v11 = vld [vmem:[%s2882_s0 + $0x164] ss:$16 sps:$4 sm:$0xff]   ;;  %v2015_v16 = vld [vmem:[%s2882_s0 + $0x1c8] ss:$16 sps:$4 sm:$0xff]  }
  0x1a   :  { %982 = vmatpush1.bf16.msra.mxu1 %v1908_v12  ;;  %v2009_v12 = vld [vmem:[%s2882_s0 + $0x1a8] ss:$16 sps:$4 sm:$0xff]   ;;  %v1998_v14 = vld [vmem:[%s2882_s0 + $0x160] ss:$16 sps:$4 sm:$0xff]   ;;  %v2001_v15 = vld [vmem:[%s2882_s0 + $0x184] ss:$16 sps:$4 sm:$0xff]  }
  0x1b   :  { %983 = vmatprep.subr.bf16.mxu1 %v2099_v0  ;;  %1246 = vmatpush1.bf16.msra.mxu0 %v1921_v17  ;;  %v2017_v17 = vld [vmem:[%s2882_s0 + $0x1ec] ss:$16 sps:$4 sm:$0xff]  }
  0x1c   :  { %1247 = vmatprep.subr.bf16.mxu0 %v2099_v0 }
  0x1e   :  { %984 = vmatpush1.bf16.msra.mxu1 %v1910_v13  ;;  %v2011_v13 = vld [vmem:[%s2882_s0 + $0x1cc] ss:$16 sps:$4 sm:$0xff]  }
  0x1f   :  { %985 = vmatprep.subr.bf16.mxu1 %v2099_v0  ;;  %1248 = vmatpush1.bf16.msra.mxu0 %v1923_v19  ;;  %v2007_v19 = vld [vmem:[%s2882_s0 + $0x1a4] ss:$16 sps:$4 sm:$0xff]  }
  0x20   :  { %1249 = vmatprep.subr.bf16.mxu0 %v2099_v0 }
  0x22   :  { %986 = vmatpush1.bf16.msra.mxu1 %v1912_v18  ;;  %v2004_v18 = vld [vmem:[%s2882_s0 + $0x180] ss:$16 sps:$4 sm:$0xff]  }
  0x23   :  { %987 = vmatprep.subr.bf16.mxu1 %v2099_v0  ;;  %1250 = vmatpush1.bf16.msra.mxu0 %v1925_v21  ;;  %v2023_v21 = vld [vmem:[%s2882_s0 + $0x20c] ss:$16 sps:$4 sm:$0xff]  }
  0x26   :  { %988 = vmatpush1.bf16.msra.mxu1 %v1914_v20  ;;  %1266 = vmatmul.mubr.bf16.vlgmr.msra.gmra.mrb[0].mxu0 %v1927_v23  ;;  %v2021_v20 = vld [vmem:[%s2882_s0 + $0x1e8] ss:$16 sps:$4 sm:$0xff]   ;;  %v2013_v23 = vld [vmem:[%s2882_s0 + $0x1c4] ss:$16 sps:$4 sm:$0xff]  }
  0x27   :  { %989 = vmatprep.subr.bf16.mxu1 %v2099_v0  ;;  %1759 = vmatprep.mubr.msk.bf16.mxu0 %vm881_vm0, %v1933_v24  ;;  %v2027_v24 = vld [vmem:[%s2882_s0 + $0x208] ss:$16 sps:$4 sm:$0xff]  }
  0x2a   :  { %990 = vmatpush1.bf16.msra.mxu1 %v1916_v22  ;;  %v2010_v22 = vld [vmem:[%s2882_s0 + $0x1a0] ss:$16 sps:$4 sm:$0xff]  }
  0x2b   :  { %991 = vmatprep.subr.bf16.mxu1 %v2099_v0 }
  0x2e   :  { %992 = vmatpush1.bf16.msra.mxu1 %v1918_v25  ;;  %1274 = vmatmul.mubr.bf16.gmra.mrb[4].mxu0 %v1937_v27  ;;  %v2029_v25 = vld [vmem:[%s2882_s0 + $0x22c] ss:$16 sps:$4 sm:$0xff]   ;;  %v2019_v27 = vld [vmem:[%s2882_s0 + $0x1e4] ss:$16 sps:$4 sm:$0xff]  }
  0x2f   :  { %993 = vmatprep.subr.bf16.mxu1 %v2099_v0  ;;  %1760 = vmatprep.mubr.msk.bf16.mxu0 %vm881_vm0, %v1939_v28  ;;  %v2033_v28 = vld [vmem:[%s2882_s0 + $0x228] ss:$16 sps:$4 sm:$0xff]  }
  0x32   :  { %994 = vmatpush1.bf16.msra.mxu1 %v1920_v26  ;;  %v2016_v26 = vld [vmem:[%s2882_s0 + $0x1c0] ss:$16 sps:$4 sm:$0xff]  }
  0x33   :  { %995 = vmatprep.subr.bf16.mxu1 %v2099_v0 }
  0x36   :  { %996 = vmatpush1.bf16.msra.mxu1 %v1922_v29  ;;  %1282 = vmatmul.mubr.bf16.gmra.mrb[8].mxu0 %v1943_v31  ;;  %v2035_v29 = vld [vmem:[%s2882_s0 + $0x24c] ss:$16 sps:$4 sm:$0xff]   ;;  %v2025_v31 = vld [vmem:[%s2882_s0 + $0x204] ss:$16 sps:$4 sm:$0xff]  }
  0x37   :  { %997 = vmatprep.subr.bf16.mxu1 %v2099_v0  ;;  %1761 = vmatprep.mubr.msk.bf16.mxu0 %vm881_vm0, %v1945_v32  ;;  %v2039_v32 = vld [vmem:[%s2882_s0 + $0x248] ss:$16 sps:$4 sm:$0xff]  }
  0x3a   :  { %998 = vmatpush1.bf16.msra.mxu1 %v1924_v30  ;;  %v2022_v30 = vld [vmem:[%s2882_s0 + $0x1e0] ss:$16 sps:$4 sm:$0xff]  }
  0x3b   :  { %999 = vmatprep.subr.bf16.mxu1 %v2099_v0  ;;  %v1991_v0 = vld [vmem:[%s2882_s0 + $0x148] ss:$16 sps:$4 sm:$0xff]  }
  0x3e   :  { %1000 = vmatpush1.bf16.msra.mxu1 %v1926_v33  ;;  %1290 = vmatmul.mubr.bf16.gmra.mrb[12].mxu0 %v1949_v36  ;;  %v2041_v33 = vld [vmem:[%s2882_s0 + $0x26c] ss:$16 sps:$4 sm:$0xff]   ;;  %v2045_v36 = vld [vmem:[%s2882_s0 + $0x268] ss:$16 sps:$4 sm:$0xff]  }
  0x3f   :  { %1762 = vmatprep.mubr.msk.bf16.mxu0 %vm881_vm0, %v1951_v37  ;;  %v2047_v37 = vld [vmem:[%s2882_s0 + $0x28c] ss:$16 sps:$4 sm:$0xff]  }
  0x41   :  { %1002 = vmatmul.mubr.bf16.vlgmr.msra.gmra.mrb[0].mxu1 %v1930_v34  ;;  %v2028_v34 = vld [vmem:[%s2882_s0 + $0x200] ss:$16 sps:$4 sm:$0xff]  }
  0x42   :  { %1009 = vmatprep.mubr.bf16.mxu1 %v1935_v35  ;;  %v2031_v35 = vld [vmem:[%s2882_s0 + $0x224] ss:$16 sps:$4 sm:$0xff]  }
  0x46   :  { %1298 = vmatmul.mubr.bf16.gmra.mrb[16].mxu0 %v1955_v40  ;;  %v2051_v40 = vld [vmem:[%s2882_s0 + $0x288] ss:$16 sps:$4 sm:$0xff]  }
  0x47   :  { %1763 = vmatprep.mubr.msk.bf16.mxu0 %vm881_vm0, %v1957_v41  ;;  %v2053_v41 = vld [vmem:[%s2882_s0 + $0x2ac] ss:$16 sps:$4 sm:$0xff]  }
  0x49   :  { %1010 = vmatmul.mubr.bf16.gmra.mrb[4].mxu1 %v1938_v38  ;;  %v2034_v38 = vld [vmem:[%s2882_s0 + $0x220] ss:$16 sps:$4 sm:$0xff]  }
  0x4a   :  { %1017 = vmatprep.mubr.bf16.mxu1 %v1941_v39  ;;  %v2037_v39 = vld [vmem:[%s2882_s0 + $0x244] ss:$16 sps:$4 sm:$0xff]  }
  0x4e   :  { %1306 = vmatmul.mubr.bf16.gmra.mrb[20].mxu0 %v1961_v44  ;;  %v2057_v44 = vld [vmem:[%s2882_s0 + $0x2a8] ss:$16 sps:$4 sm:$0xff]  }
  0x4f   :  { %1764 = vmatprep.mubr.msk.bf16.mxu0 %vm881_vm0, %v1963_v45  ;;  %v2059_v45 = vld [vmem:[%s2882_s0 + $0x2cc] ss:$16 sps:$4 sm:$0xff]  }
  0x51   :  { %1018 = vmatmul.mubr.bf16.gmra.mrb[8].mxu1 %v1944_v42  ;;  %v2040_v42 = vld [vmem:[%s2882_s0 + $0x240] ss:$16 sps:$4 sm:$0xff]  }
  0x52   :  { %1025 = vmatprep.mubr.bf16.mxu1 %v1947_v43  ;;  %v2043_v43 = vld [vmem:[%s2882_s0 + $0x264] ss:$16 sps:$4 sm:$0xff]  }
  0x56   :  { %1314 = vmatmul.mubr.bf16.gmra.mrb[24].mxu0 %v1967_v48  ;;  %v2063_v48 = vld [vmem:[%s2882_s0 + $0x2c8] ss:$16 sps:$4 sm:$0xff]  }
  0x57   :  { %1765 = vmatprep.mubr.msk.bf16.mxu0 %vm881_vm0, %v1969_v49  ;;  %v2065_v49 = vld [vmem:[%s2882_s0 + $0x2ec] ss:$16 sps:$4 sm:$0xff]  }
  0x59   :  { %1026 = vmatmul.mubr.bf16.gmra.mrb[12].mxu1 %v1950_v46  ;;  %v2046_v46 = vld [vmem:[%s2882_s0 + $0x260] ss:$16 sps:$4 sm:$0xff]  }
  0x5a   :  { %1033 = vmatprep.mubr.bf16.mxu1 %v1953_v47  ;;  %v2049_v47 = vld [vmem:[%s2882_s0 + $0x284] ss:$16 sps:$4 sm:$0xff]  }
  0x5e   :  { %1322 = vmatmul.mubr.bf16.gmra.mrb[28].mxu0 %v1973_v52  ;;  %v2069_v52 = vld [vmem:[%s2882_s0 + $0x2e8] ss:$16 sps:$4 sm:$0xff]  }
  0x5f   :  { %1766 = vmatprep.mubr.msk.bf16.mxu0 %vm881_vm0, %v1975_v53  ;;  %v2071_v53 = vld [vmem:[%s2882_s0 + $0x30c] ss:$16 sps:$4 sm:$0xff]  }
  0x61   :  { %1034 = vmatmul.mubr.bf16.gmra.mrb[16].mxu1 %v1956_v50  ;;  %v2052_v50 = vld [vmem:[%s2882_s0 + $0x280] ss:$16 sps:$4 sm:$0xff]  }
  0x62   :  { %1041 = vmatprep.mubr.bf16.mxu1 %v1959_v51  ;;  %v2055_v51 = vld [vmem:[%s2882_s0 + $0x2a4] ss:$16 sps:$4 sm:$0xff]  }
  0x66   :  { %1330 = vmatmul.mubr.bf16.gmra.mrb[32].mxu0 %v1979_v56  ;;  %v2075_v56 = vld [vmem:[%s2882_s0 + $0x308] ss:$16 sps:$4 sm:$0xff]  }
  0x67   :  { %1767 = vmatprep.mubr.msk.bf16.mxu0 %vm881_vm0, %v1981_v57  ;;  %v2077_v57 = vld [vmem:[%s2882_s0 + $0x32c] ss:$16 sps:$4 sm:$0xff]  }
  0x69   :  { %1042 = vmatmul.mubr.bf16.gmra.mrb[20].mxu1 %v1962_v54  ;;  %v2058_v54 = vld [vmem:[%s2882_s0 + $0x2a0] ss:$16 sps:$4 sm:$0xff]  }
  0x6a   :  { %1049 = vmatprep.mubr.bf16.mxu1 %v1965_v55  ;;  %v2061_v55 = vld [vmem:[%s2882_s0 + $0x2c4] ss:$16 sps:$4 sm:$0xff]  }
  0x6e   :  { %1338 = vmatmul.mubr.bf16.gmra.mrb[36].mxu0 %v1985_v60  ;;  %v2081_v60 = vld [vmem:[%s2882_s0 + $0x328] ss:$16 sps:$4 sm:$0xff]  }
  0x6f   :  { %1768 = vmatprep.mubr.msk.bf16.mxu0 %vm881_vm0, %v1987_v61  ;;  %v2083_v61 = vld [vmem:[%s2882_s0 + $0x34c] ss:$16 sps:$4 sm:$0xff]  }
  0x71   :  { %1050 = vmatmul.mubr.bf16.gmra.mrb[24].mxu1 %v1968_v58  ;;  %v2064_v58 = vld [vmem:[%s2882_s0 + $0x2c0] ss:$16 sps:$4 sm:$0xff]  }
  0x72   :  { %1057 = vmatprep.mubr.bf16.mxu1 %v1971_v59  ;;  %v2067_v59 = vld [vmem:[%s2882_s0 + $0x2e4] ss:$16 sps:$4 sm:$0xff]  }
  0x76   :  { %1346 = vmatmul.mubr.bf16.gmra.mrb[40].mxu0 %v1991_v0  ;;  %v2087_v0 = vld [vmem:[%s2882_s0 + $0x348] ss:$16 sps:$4 sm:$0xff]  }
  0x77   :  { %1769 = vmatprep.mubr.msk.bf16.mxu0 %vm881_vm0, %v1993_v1  ;;  %v2089_v1 = vld [vmem:[%s2882_s0 + $0x36c] ss:$16 sps:$4 sm:$0xff]  }
  0x79   :  { %1058 = vmatmul.mubr.bf16.gmra.mrb[28].mxu1 %v1974_v62  ;;  %v2070_v62 = vld [vmem:[%s2882_s0 + $0x2e0] ss:$16 sps:$4 sm:$0xff]  }
  0x7a   :  { %1065 = vmatprep.mubr.bf16.mxu1 %v1977_v63  ;;  %v2073_v63 = vld [vmem:[%s2882_s0 + $0x304] ss:$16 sps:$4 sm:$0xff]  }
  0x7e   :  { %1354 = vmatmul.mubr.bf16.gmra.mrb[44].mxu0 %v1997_v4  ;;  %v178_v4 = vld [vmem:[%s2882_s0 + $0x388] sm:$0xff] }
  0x7f   :  { %1770 = vmatprep.mubr.msk.bf16.mxu0 %vm881_vm0, %v1999_v5 }
  0x81   :  { %1066 = vmatmul.mubr.bf16.gmra.mrb[32].mxu1 %v1980_v2  ;;  %v2076_v2 = vld [vmem:[%s2882_s0 + $0x300] ss:$16 sps:$4 sm:$0xff]  }
  0x82   :  { %1073 = vmatprep.mubr.bf16.mxu1 %v1983_v3  ;;  %v2079_v3 = vld [vmem:[%s2882_s0 + $0x324] ss:$16 sps:$4 sm:$0xff]  }
  0x86   :  { %1362 = vmatmul.mubr.bf16.gmra.mrb[48].mxu0 %v2003_v8 }
  0x87   :  { %1771 = vmatprep.mubr.msk.bf16.mxu0 %vm881_vm0, %v2005_v9  ;;  %v1732_v9 = vcombine.high %v178_v4, %v178_v4 }
  0x89   :  { %1074 = vmatmul.mubr.bf16.gmra.mrb[36].mxu1 %v1986_v6 }
  0x8a   :  { %1081 = vmatprep.mubr.bf16.mxu1 %v1989_v7  ;;  %v2093_v7 = vld [vmem:[%s2882_s0 + $0x368] ss:$16 sps:$4 sm:$0xff]  }
  0x8e   :  { %1370 = vmatmul.mubr.bf16.gmra.mrb[52].mxu0 %v2009_v12  ;;  %v2085_v12 = vld [vmem:[%s2882_s0 + $0x344] ss:$16 sps:$4 sm:$0xff]  }
  0x8f   :  { %1772 = vmatprep.mubr.msk.bf16.mxu0 %vm881_vm0, %v2011_v13 }
  0x91   :  { %1082 = vmatmul.mubr.bf16.gmra.mrb[40].mxu1 %v1992_v10 }
  0x92   :  { %1089 = vmatprep.mubr.bf16.mxu1 %v1995_v11  ;;  %v2082_v11 = vld [vmem:[%s2882_s0 + $0x320] ss:$16 sps:$4 sm:$0xff]  }
  0x96   :  { %1378 = vmatmul.mubr.bf16.gmra.mrb[56].mxu0 %v2015_v16 }
  0x97   :  { %1773 = vmatprep.mubr.msk.bf16.mxu0 %vm881_vm0, %v2017_v17 }
  0x99   :  { %1090 = vmatmul.mubr.bf16.gmra.mrb[44].mxu1 %v1998_v14 }
  0x9a   :  { %1097 = vmatprep.mubr.bf16.mxu1 %v2001_v15  ;;  %v1731_v15 = vcombine.low %v178_v4, %v178_v4 }
  0x9e   :  { %1386 = vmatmul.mubr.bf16.gmra.mrb[60].mxu0 %v2021_v20 }
  0x9f   :  { %1774 = vmatprep.mubr.msk.bf16.mxu0 %vm881_vm0, %v2023_v21 }
  0xa1   :  { %1098 = vmatmul.mubr.bf16.gmra.mrb[48].mxu1 %v2004_v18  ;;  %v2088_v18 = vld [vmem:[%s2882_s0 + $0x340] ss:$16 sps:$4 sm:$0xff]  }
  0xa2   :  { %1105 = vmatprep.mubr.bf16.mxu1 %v2007_v19  ;;  %v2091_v19 = vld [vmem:[%s2882_s0 + $0x364] ss:$16 sps:$4 sm:$0xff]  }
  0xa6   :  { %1394 = vmatmul.mubr.bf16.gmra.mrb[64].mxu0 %v2027_v24 }
  0xa7   :  { %1775 = vmatprep.mubr.msk.bf16.mxu0 %vm881_vm0, %v2029_v25  ;;  %v177_v25 = vld [vmem:[%s2882_s0 + $0x380] sm:$0xff] }
  0xa9   :  { %1106 = vmatmul.mubr.bf16.gmra.mrb[52].mxu1 %v2010_v22 }
  0xaa   :  { %1113 = vmatprep.mubr.bf16.mxu1 %v2013_v23  ;;  %v2588_v23 = vld [vmem:[%s2883_s2] ss:$0 sm:$0xff] }
  0xae   :  { %1402 = vmatmul.mubr.bf16.gmra.mrb[68].mxu0 %v2033_v28 }
  0xaf   :  { %1776 = vmatprep.mubr.msk.bf16.mxu0 %vm881_vm0, %v2035_v29  ;;  %v2094_v29 = vld [vmem:[%s2882_s0 + $0x360] ss:$16 sps:$4 sm:$0xff]  }
  0xb1   :  { %1114 = vmatmul.mubr.bf16.gmra.mrb[56].mxu1 %v2016_v26 }
  0xb2   :  { %1121 = vmatprep.mubr.bf16.mxu1 %v2019_v27 }
  0xb6   :  { %1410 = vmatmul.mubr.bf16.gmra.mrb[72].mxu0 %v2039_v32 }
  0xb7   :  { %1777 = vmatprep.mubr.msk.bf16.mxu0 %vm881_vm0, %v2041_v33 }
  0xb9   :  { %1122 = vmatmul.mubr.bf16.gmra.mrb[60].mxu1 %v2022_v30 }
  0xba   :  { %1129 = vmatprep.mubr.bf16.mxu1 %v2025_v31  ;;  %v1730_v31 = vcombine.high %v177_v25, %v177_v25 }
  0xbe   :  { %1418 = vmatmul.mubr.bf16.gmra.mrb[76].mxu0 %v2045_v36 }
  0xbf   :  { %1778 = vmatprep.mubr.msk.bf16.mxu0 %vm881_vm0, %v2047_v37 }
  0xc1   :  { %1130 = vmatmul.mubr.bf16.gmra.mrb[64].mxu1 %v2028_v34 }
  0xc2   :  { %1137 = vmatprep.mubr.bf16.mxu1 %v2031_v35 }
  0xc6   :  { %1426 = vmatmul.mubr.bf16.gmra.mrb[80].mxu0 %v2051_v40 }
  0xc7   :  { %1779 = vmatprep.mubr.msk.bf16.mxu0 %vm881_vm0, %v2053_v41 }
  0xc9   :  { %1138 = vmatmul.mubr.bf16.gmra.mrb[68].mxu1 %v2034_v38 }
  0xca   :  { %1145 = vmatprep.mubr.bf16.mxu1 %v2037_v39 }
  0xce   :  { %1434 = vmatmul.mubr.bf16.gmra.mrb[84].mxu0 %v2057_v44 }
  0xcf   :  { %1780 = vmatprep.mubr.msk.bf16.mxu0 %vm881_vm0, %v2059_v45  ;;  %v1729_v45 = vcombine.low %v177_v25, %v177_v25 }
  0xd1   :  { %1146 = vmatmul.mubr.bf16.gmra.mrb[72].mxu1 %v2040_v42 }
  0xd2   :  { %1153 = vmatprep.mubr.bf16.mxu1 %v2043_v43 }
  0xd6   :  { %1442 = vmatmul.mubr.bf16.gmra.mrb[88].mxu0 %v2063_v48 }
  0xd7   :  { %1781 = vmatprep.mubr.msk.bf16.mxu0 %vm881_vm0, %v2065_v49 }
  0xd9   :  { %1154 = vmatmul.mubr.bf16.gmra.mrb[76].mxu1 %v2046_v46 }
  0xda   :  { %1161 = vmatprep.mubr.bf16.mxu1 %v2049_v47 }
  0xde   :  { %1450 = vmatmul.mubr.bf16.gmra.mrb[92].mxu0 %v2069_v52 }
  0xdf   :  { %1782 = vmatprep.mubr.msk.bf16.mxu0 %vm881_vm0, %v2071_v53 }
  0xe1   :  { %1162 = vmatmul.mubr.bf16.gmra.mrb[80].mxu1 %v2052_v50 }
  0xe2   :  { %1169 = vmatprep.mubr.bf16.mxu1 %v2055_v51 }
  0xe6   :  { %1458 = vmatmul.mubr.bf16.gmra.mrb[96].mxu0 %v2075_v56 }
  0xe7   :  { %1783 = vmatprep.mubr.msk.bf16.mxu0 %vm881_vm0, %v2077_v57 }
  0xe9   :  { %1170 = vmatmul.mubr.bf16.gmra.mrb[84].mxu1 %v2058_v54 }
  0xea   :  { %1177 = vmatprep.mubr.bf16.mxu1 %v2061_v55 }
  0xee   :  { %1466 = vmatmul.mubr.bf16.gmra.mrb[100].mxu0 %v2081_v60 }
  0xef   :  { %1784 = vmatprep.mubr.msk.bf16.mxu0 %vm881_vm0, %v2083_v61 }
  0xf1   :  { %1178 = vmatmul.mubr.bf16.gmra.mrb[88].mxu1 %v2064_v58 }
  0xf2   :  { %1185 = vmatprep.mubr.bf16.mxu1 %v2067_v59 }
  0xf6   :  { %1474 = vmatmul.mubr.bf16.gmra.mrb[104].mxu0 %v2087_v0 }
  0xf7   :  { %1785 = vmatprep.mubr.msk.bf16.mxu0 %vm881_vm0, %v2089_v1 }
  0xf9   :  { %1186 = vmatmul.mubr.bf16.gmra.mrb[92].mxu1 %v2070_v62  ;;  %v1267_v5 = vpop.f32.mrb[0].mxu0 }
  0xfa   :  { %1193 = vmatprep.mubr.bf16.mxu1 %v2073_v63  ;;  %v1269_v6 = vpop.f32.mrb[1].mxu0 }
  0xfb   :  { %v1270_v8 = vpop.f32.mrb[2].mxu0 }
  0xfc   :  { %v1272_v10 = vpop.f32.mrb[3].mxu0 }
  0xfe   :  { %1482 = vmatmul.mubr.bf16.gmra.mrb[108].mxu0 %v2093_v7 }
  0xff   :  { %1786 = vmatprep.mubr.msk.bf16.mxu0 %vm881_vm0, %v1732_v9 }
 0x101   :  { %1194 = vmatmul.mubr.bf16.gmra.mrb[96].mxu1 %v2076_v2  ;;  %v1275_v13 = vpop.f32.mrb[4].mxu0 }
 0x102   :  { %1201 = vmatprep.mubr.bf16.mxu1 %v2079_v3  ;;  %v1277_v14 = vpop.f32.mrb[5].mxu0 }
 0x103   :  { %v1278_v16 = vpop.f32.mrb[6].mxu0 }
 0x104   :  { %v1280_v17 = vpop.f32.mrb[7].mxu0 }
 0x106   :  { %1490 = vmatmul.mubr.bf16.gmra.mrb[112].mxu0 %v1731_v15 }
 0x109   :  { %1202 = vmatmul.mubr.bf16.gmra.mrb[100].mxu1 %v2082_v11  ;;  %v1283_v20 = vpop.f32.mrb[8].mxu0 }
 0x10a   :  { %1209 = vmatprep.mubr.bf16.mxu1 %v2085_v12  ;;  %v1285_v21 = vpop.f32.mrb[9].mxu0 }
 0x10b   :  { %v1286_v22 = vpop.f32.mrb[10].mxu0 }
 0x10c   :  { %v1288_v24 = vpop.f32.mrb[11].mxu0 }
 0x111   :  { %1210 = vmatmul.mubr.bf16.gmra.mrb[104].mxu1 %v2088_v18  ;;  %v1291_v35 = vpop.f32.mrb[12].mxu0 }
 0x112   :  { %1217 = vmatprep.mubr.bf16.mxu1 %v2091_v19  ;;  %v1293_v36 = vpop.f32.mrb[13].mxu0 }
 0x113   :  { %v1294_v39 = vpop.f32.mrb[14].mxu0 }
 0x114   :  { %v1003_v26 = vpop.f32.mrb[0].mxu1  ;;  %v1296_v40 = vpop.f32.mrb[15].mxu0 }
 0x115   :  { %v1004_v27 = vadd.f32 %v2588_v23, %v1003_v26  ;;  %v1005_v28 = vpop.f32.mrb[1].mxu1 }
 0x116   :  { %v1006_v30 = vpop.f32.mrb[2].mxu1 }
 0x117   :  { %v1268_v32 = vadd.f32 %v1267_v5, %v1004_v27  ;;  %v1007_v33 = vadd.f32 %v2588_v23, %v1006_v30  ;;  %v1008_v34 = vpop.f32.mrb[3].mxu1 }
 0x119   :  { %v1497_v37 = vmax.f32 %v1268_v32, 0.0  ;;  %v1271_v38 = vadd.f32 %v1270_v8, %v1007_v33  ;;  %1218 = vmatmul.mubr.bf16.gmra.mrb[108].mxu1 %v2094_v29  ;;  %v1299_v50 = vpop.f32.mrb[16].mxu0 }
 0x11a   :  { %1225 = vmatprep.mubr.bf16.mxu1 %v1730_v31  ;;  %v1301_v51 = vpop.f32.mrb[17].mxu0 }
 0x11b   :  { %1555 = vst.msk [vmem:[%s2884_s3] sm:$0xff] %vm1554_vm1, %v1497_v37  ;;  %v1498_v41 = vmax.f32 %v1271_v38, 0.0  ;;  %v1302_v54 = vpop.f32.mrb[18].mxu0 }
 0x11c   :  { %v1011_v42 = vpop.f32.mrb[4].mxu1  ;;  %v1304_v55 = vpop.f32.mrb[19].mxu0 }
 0x11d   :  { %1556 = vst.msk [vmem:[%s2884_s3 + $0x8] sm:$0xff] %vm1554_vm1, %v1498_v41  ;;  %v1012_v43 = vadd.f32 %v2588_v23, %v1011_v42  ;;  %v1013_v44 = vpop.f32.mrb[5].mxu1 }
 0x11e   :  { %v1014_v46 = vpop.f32.mrb[6].mxu1 }
 0x11f   :  { %v1276_v47 = vadd.f32 %v1275_v13, %v1012_v43  ;;  %v1015_v48 = vadd.f32 %v2588_v23, %v1014_v46  ;;  %v1016_v49 = vpop.f32.mrb[7].mxu1 }
 0x121   :  { %v1499_v52 = vmax.f32 %v1276_v47, 0.0  ;;  %v1279_v53 = vadd.f32 %v1278_v16, %v1015_v48  ;;  %1226 = vmatmul.mubr.bf16.gmra.mrb[112].mxu1 %v1729_v45  ;;  %v1307_v0 = vpop.f32.mrb[20].mxu0 }
 0x122   :  { %v1309_v1 = vpop.f32.mrb[21].mxu0 }
 0x123   :  { %1557 = vst.msk [vmem:[%s2884_s3 + $0x10] sm:$0xff] %vm1554_vm1, %v1499_v52  ;;  %v1500_v56 = vmax.f32 %v1279_v53, 0.0  ;;  %v1310_v4 = vpop.f32.mrb[22].mxu0 }
 0x124   :  { %v1019_v57 = vpop.f32.mrb[8].mxu1  ;;  %v1312_v5 = vpop.f32.mrb[23].mxu0 }
 0x125   :  { %1558 = vst.msk [vmem:[%s2884_s3 + $0x18] sm:$0xff] %vm1554_vm1, %v1500_v56  ;;  %v1020_v58 = vadd.f32 %v2588_v23, %v1019_v57  ;;  %v1021_v59 = vpop.f32.mrb[9].mxu1 }
 0x126   :  { %v1022_v60 = vpop.f32.mrb[10].mxu1 }
 0x127   :  { %v1284_v61 = vadd.f32 %v1283_v20, %v1020_v58  ;;  %v1023_v62 = vadd.f32 %v2588_v23, %v1022_v60  ;;  %v1024_v63 = vpop.f32.mrb[11].mxu1 }
 0x129   :  { %v1501_v2 = vmax.f32 %v1284_v61, 0.0  ;;  %v1287_v3 = vadd.f32 %v1286_v22, %v1023_v62  ;;  %v1315_v14 = vpop.f32.mrb[24].mxu0 }
 0x12a   :  { %v1317_v15 = vpop.f32.mrb[25].mxu0 }
 0x12b   :  { %1559 = vst.msk [vmem:[%s2884_s3 + $0x20] sm:$0xff] %vm1554_vm1, %v1501_v2  ;;  %v1502_v6 = vmax.f32 %v1287_v3, 0.0  ;;  %v1318_v18 = vpop.f32.mrb[26].mxu0 }
 0x12c   :  { %v1027_v7 = vpop.f32.mrb[12].mxu1  ;;  %v1320_v19 = vpop.f32.mrb[27].mxu0 }
 0x12d   :  { %1560 = vst.msk [vmem:[%s2884_s3 + $0x28] sm:$0xff] %vm1554_vm1, %v1502_v6  ;;  %v1028_v8 = vadd.f32 %v2588_v23, %v1027_v7  ;;  %v1029_v9 = vpop.f32.mrb[13].mxu1 }
 0x12e   :  { %v1030_v10 = vpop.f32.mrb[14].mxu1 }
 0x12f   :  { %v1292_v11 = vadd.f32 %v1291_v35, %v1028_v8  ;;  %v1031_v12 = vadd.f32 %v2588_v23, %v1030_v10  ;;  %v1032_v13 = vpop.f32.mrb[15].mxu1 }
 0x131   :  { %v1503_v16 = vmax.f32 %v1292_v11, 0.0  ;;  %v1295_v17 = vadd.f32 %v1294_v39, %v1031_v12  ;;  %v1323_v29 = vpop.f32.mrb[28].mxu0 }
 0x132   :  { %v1325_v30 = vpop.f32.mrb[29].mxu0 }
 0x133   :  { %1561 = vst.msk [vmem:[%s2884_s3 + $0x30] sm:$0xff] %vm1554_vm1, %v1503_v16  ;;  %v1504_v20 = vmax.f32 %v1295_v17, 0.0  ;;  %v1326_v33 = vpop.f32.mrb[30].mxu0 }
 0x134   :  { %v1035_v21 = vpop.f32.mrb[16].mxu1  ;;  %v1328_v34 = vpop.f32.mrb[31].mxu0 }
 0x135   :  { %1562 = vst.msk [vmem:[%s2884_s3 + $0x38] sm:$0xff] %vm1554_vm1, %v1504_v20  ;;  %v1036_v22 = vadd.f32 %v2588_v23, %v1035_v21  ;;  %v1037_v24 = vpop.f32.mrb[17].mxu1 }
 0x136   :  { %v1038_v25 = vpop.f32.mrb[18].mxu1 }
 0x137   :  { %v1300_v26 = vadd.f32 %v1299_v50, %v1036_v22  ;;  %v1039_v27 = vadd.f32 %v2588_v23, %v1038_v25  ;;  %v1040_v28 = vpop.f32.mrb[19].mxu1 }
 0x139   :  { %v1505_v31 = vmax.f32 %v1300_v26, 0.0  ;;  %v1303_v32 = vadd.f32 %v1302_v54, %v1039_v27  ;;  %v1331_v43 = vpop.f32.mrb[32].mxu0 }
 0x13a   :  { %v1333_v44 = vpop.f32.mrb[33].mxu0 }
 0x13b   :  { %1563 = vst.msk [vmem:[%s2884_s3 + $0x40] sm:$0xff] %vm1554_vm1, %v1505_v31  ;;  %v1506_v35 = vmax.f32 %v1303_v32, 0.0  ;;  %v1334_v47 = vpop.f32.mrb[34].mxu0 }
 0x13c   :  { %v1043_v36 = vpop.f32.mrb[20].mxu1  ;;  %v1336_v48 = vpop.f32.mrb[35].mxu0 }
 0x13d   :  { %1564 = vst.msk [vmem:[%s2884_s3 + $0x48] sm:$0xff] %vm1554_vm1, %v1506_v35  ;;  %v1044_v37 = vadd.f32 %v2588_v23, %v1043_v36  ;;  %v1045_v38 = vpop.f32.mrb[21].mxu1 }
 0x13e   :  { %v1046_v39 = vpop.f32.mrb[22].mxu1 }
 0x13f   :  { %v1308_v40 = vadd.f32 %v1307_v0, %v1044_v37  ;;  %v1047_v41 = vadd.f32 %v2588_v23, %v1046_v39  ;;  %v1048_v42 = vpop.f32.mrb[23].mxu1 }
 0x141   :  { %v1507_v45 = vmax.f32 %v1308_v40, 0.0  ;;  %v1311_v46 = vadd.f32 %v1310_v4, %v1047_v41  ;;  %v1339_v57 = vpop.f32.mrb[36].mxu0 }
 0x142   :  { %v1341_v58 = vpop.f32.mrb[37].mxu0 }
 0x143   :  { %1565 = vst.msk [vmem:[%s2884_s3 + $0x50] sm:$0xff] %vm1554_vm1, %v1507_v45  ;;  %v1508_v49 = vmax.f32 %v1311_v46, 0.0  ;;  %v1342_v61 = vpop.f32.mrb[38].mxu0 }
 0x144   :  { %v1051_v50 = vpop.f32.mrb[24].mxu1  ;;  %v1344_v62 = vpop.f32.mrb[39].mxu0 }
 0x145   :  { %1566 = vst.msk [vmem:[%s2884_s3 + $0x58] sm:$0xff] %vm1554_vm1, %v1508_v49  ;;  %v1052_v51 = vadd.f32 %v2588_v23, %v1051_v50  ;;  %v1053_v52 = vpop.f32.mrb[25].mxu1 }
 0x146   :  { %v1054_v53 = vpop.f32.mrb[26].mxu1 }
 0x147   :  { %v1316_v54 = vadd.f32 %v1315_v14, %v1052_v51  ;;  %v1055_v55 = vadd.f32 %v2588_v23, %v1054_v53  ;;  %v1056_v56 = vpop.f32.mrb[27].mxu1 }
 0x149   :  { %v1509_v59 = vmax.f32 %v1316_v54, 0.0  ;;  %v1319_v60 = vadd.f32 %v1318_v18, %v1055_v55  ;;  %v1347_v7 = vpop.f32.mrb[40].mxu0 }
 0x14a   :  { %v1349_v8 = vpop.f32.mrb[41].mxu0 }
 0x14b   :  { %1567 = vst.msk [vmem:[%s2884_s3 + $0x60] sm:$0xff] %vm1554_vm1, %v1509_v59  ;;  %v1510_v63 = vmax.f32 %v1319_v60, 0.0  ;;  %v1350_v11 = vpop.f32.mrb[42].mxu0 }
 0x14c   :  { %v1059_v0 = vpop.f32.mrb[28].mxu1  ;;  %v1352_v12 = vpop.f32.mrb[43].mxu0 }
 0x14d   :  { %1568 = vst.msk [vmem:[%s2884_s3 + $0x68] sm:$0xff] %vm1554_vm1, %v1510_v63  ;;  %v1060_v1 = vadd.f32 %v2588_v23, %v1059_v0  ;;  %v1061_v2 = vpop.f32.mrb[29].mxu1 }
 0x14e   :  { %v1062_v3 = vpop.f32.mrb[30].mxu1 }
 0x14f   :  { %v1324_v4 = vadd.f32 %v1323_v29, %v1060_v1  ;;  %v1063_v5 = vadd.f32 %v2588_v23, %v1062_v3  ;;  %v1064_v6 = vpop.f32.mrb[31].mxu1 }
 0x151   :  { %v1511_v9 = vmax.f32 %v1324_v4, 0.0  ;;  %v1327_v10 = vadd.f32 %v1326_v33, %v1063_v5  ;;  %v1355_v21 = vpop.f32.mrb[44].mxu0 }
 0x152   :  { %v1357_v22 = vpop.f32.mrb[45].mxu0 }
 0x153   :  { %1569 = vst.msk [vmem:[%s2884_s3 + $0x70] sm:$0xff] %vm1554_vm1, %v1511_v9  ;;  %v1512_v13 = vmax.f32 %v1327_v10, 0.0  ;;  %v1358_v26 = vpop.f32.mrb[46].mxu0 }
 0x154   :  { %v1067_v14 = vpop.f32.mrb[32].mxu1  ;;  %v1360_v27 = vpop.f32.mrb[47].mxu0 }
 0x155   :  { %1570 = vst.msk [vmem:[%s2884_s3 + $0x78] sm:$0xff] %vm1554_vm1, %v1512_v13  ;;  %v1068_v15 = vadd.f32 %v2588_v23, %v1067_v14  ;;  %v1069_v16 = vpop.f32.mrb[33].mxu1 }
 0x156   :  { %v1070_v17 = vpop.f32.mrb[34].mxu1 }
 0x157   :  { %v1332_v18 = vadd.f32 %v1331_v43, %v1068_v15  ;;  %v1071_v19 = vadd.f32 %v2588_v23, %v1070_v17  ;;  %v1072_v20 = vpop.f32.mrb[35].mxu1 }
 0x159   :  { %v1513_v24 = vmax.f32 %v1332_v18, 0.0  ;;  %v1335_v25 = vadd.f32 %v1334_v47, %v1071_v19  ;;  %v1363_v36 = vpop.f32.mrb[48].mxu0 }
 0x15a   :  { %v1365_v37 = vpop.f32.mrb[49].mxu0 }
 0x15b   :  { %1571 = vst.msk [vmem:[%s2884_s3 + $0x80] sm:$0xff] %vm1554_vm1, %v1513_v24  ;;  %v1514_v28 = vmax.f32 %v1335_v25, 0.0  ;;  %v1366_v40 = vpop.f32.mrb[50].mxu0 }
 0x15c   :  { %v1075_v29 = vpop.f32.mrb[36].mxu1  ;;  %v1368_v41 = vpop.f32.mrb[51].mxu0 }
 0x15d   :  { %1572 = vst.msk [vmem:[%s2884_s3 + $0x88] sm:$0xff] %vm1554_vm1, %v1514_v28  ;;  %v1076_v30 = vadd.f32 %v2588_v23, %v1075_v29  ;;  %v1077_v31 = vpop.f32.mrb[37].mxu1 }
 0x15e   :  { %v1078_v32 = vpop.f32.mrb[38].mxu1 }
 0x15f   :  { %v1340_v33 = vadd.f32 %v1339_v57, %v1076_v30  ;;  %v1079_v34 = vadd.f32 %v2588_v23, %v1078_v32  ;;  %v1080_v35 = vpop.f32.mrb[39].mxu1 }
 0x161   :  { %v1515_v38 = vmax.f32 %v1340_v33, 0.0  ;;  %v1343_v39 = vadd.f32 %v1342_v61, %v1079_v34  ;;  %v1371_v50 = vpop.f32.mrb[52].mxu0 }
 0x162   :  { %v1373_v51 = vpop.f32.mrb[53].mxu0 }
 0x163   :  { %1573 = vst.msk [vmem:[%s2884_s3 + $0x90] sm:$0xff] %vm1554_vm1, %v1515_v38  ;;  %v1516_v42 = vmax.f32 %v1343_v39, 0.0  ;;  %v1374_v54 = vpop.f32.mrb[54].mxu0 }
 0x164   :  { %v1083_v43 = vpop.f32.mrb[40].mxu1  ;;  %v1376_v55 = vpop.f32.mrb[55].mxu0 }
 0x165   :  { %1574 = vst.msk [vmem:[%s2884_s3 + $0x98] sm:$0xff] %vm1554_vm1, %v1516_v42  ;;  %v1084_v44 = vadd.f32 %v2588_v23, %v1083_v43  ;;  %v1085_v45 = vpop.f32.mrb[41].mxu1 }
 0x166   :  { %v1086_v46 = vpop.f32.mrb[42].mxu1 }
 0x167   :  { %v1348_v47 = vadd.f32 %v1347_v7, %v1084_v44  ;;  %v1087_v48 = vadd.f32 %v2588_v23, %v1086_v46  ;;  %v1088_v49 = vpop.f32.mrb[43].mxu1 }
 0x169   :  { %v1517_v52 = vmax.f32 %v1348_v47, 0.0  ;;  %v1351_v53 = vadd.f32 %v1350_v11, %v1087_v48  ;;  %v1379_v0 = vpop.f32.mrb[56].mxu0 }
 0x16a   :  { %v1381_v1 = vpop.f32.mrb[57].mxu0 }
 0x16b   :  { %1575 = vst.msk [vmem:[%s2884_s3 + $0xa0] sm:$0xff] %vm1554_vm1, %v1517_v52  ;;  %v1518_v56 = vmax.f32 %v1351_v53, 0.0  ;;  %v1382_v4 = vpop.f32.mrb[58].mxu0 }
 0x16c   :  { %v1091_v57 = vpop.f32.mrb[44].mxu1  ;;  %v1384_v5 = vpop.f32.mrb[59].mxu0 }
 0x16d   :  { %1576 = vst.msk [vmem:[%s2884_s3 + $0xa8] sm:$0xff] %vm1554_vm1, %v1518_v56  ;;  %v1092_v58 = vadd.f32 %v2588_v23, %v1091_v57  ;;  %v1093_v59 = vpop.f32.mrb[45].mxu1 }
 0x16e   :  { %v1094_v60 = vpop.f32.mrb[46].mxu1 }
 0x16f   :  { %v1356_v61 = vadd.f32 %v1355_v21, %v1092_v58  ;;  %v1095_v62 = vadd.f32 %v2588_v23, %v1094_v60  ;;  %v1096_v63 = vpop.f32.mrb[47].mxu1 }
 0x171   :  { %v1519_v2 = vmax.f32 %v1356_v61, 0.0  ;;  %v1359_v3 = vadd.f32 %v1358_v26, %v1095_v62  ;;  %v1387_v14 = vpop.f32.mrb[60].mxu0 }
 0x172   :  { %v1389_v15 = vpop.f32.mrb[61].mxu0 }
 0x173   :  { %1577 = vst.msk [vmem:[%s2884_s3 + $0xb0] sm:$0xff] %vm1554_vm1, %v1519_v2  ;;  %v1520_v6 = vmax.f32 %v1359_v3, 0.0  ;;  %v1390_v18 = vpop.f32.mrb[62].mxu0 }
 0x174   :  { %v1099_v7 = vpop.f32.mrb[48].mxu1  ;;  %v1392_v19 = vpop.f32.mrb[63].mxu0 }
 0x175   :  { %1578 = vst.msk [vmem:[%s2884_s3 + $0xb8] sm:$0xff] %vm1554_vm1, %v1520_v6  ;;  %v1100_v8 = vadd.f32 %v2588_v23, %v1099_v7  ;;  %v1101_v9 = vpop.f32.mrb[49].mxu1 }
 0x176   :  { %v1102_v10 = vpop.f32.mrb[50].mxu1 }
 0x177   :  { %v1364_v11 = vadd.f32 %v1363_v36, %v1100_v8  ;;  %v1103_v12 = vadd.f32 %v2588_v23, %v1102_v10  ;;  %v1104_v13 = vpop.f32.mrb[51].mxu1 }
 0x179   :  { %v1521_v16 = vmax.f32 %v1364_v11, 0.0  ;;  %v1367_v17 = vadd.f32 %v1366_v40, %v1103_v12  ;;  %v1395_v29 = vpop.f32.mrb[64].mxu0 }
 0x17a   :  { %v1397_v30 = vpop.f32.mrb[65].mxu0 }
 0x17b   :  { %1579 = vst.msk [vmem:[%s2884_s3 + $0xc0] sm:$0xff] %vm1554_vm1, %v1521_v16  ;;  %v1522_v20 = vmax.f32 %v1367_v17, 0.0  ;;  %v1398_v33 = vpop.f32.mrb[66].mxu0 }
 0x17c   :  { %v1107_v21 = vpop.f32.mrb[52].mxu1  ;;  %v1400_v34 = vpop.f32.mrb[67].mxu0 }
 0x17d   :  { %1580 = vst.msk [vmem:[%s2884_s3 + $0xc8] sm:$0xff] %vm1554_vm1, %v1522_v20  ;;  %v1108_v22 = vadd.f32 %v2588_v23, %v1107_v21  ;;  %v1109_v24 = vpop.f32.mrb[53].mxu1 }
 0x17e   :  { %v1110_v25 = vpop.f32.mrb[54].mxu1 }
 0x17f   :  { %v1372_v26 = vadd.f32 %v1371_v50, %v1108_v22  ;;  %v1111_v27 = vadd.f32 %v2588_v23, %v1110_v25  ;;  %v1112_v28 = vpop.f32.mrb[55].mxu1 }
 0x181   :  { %v1523_v31 = vmax.f32 %v1372_v26, 0.0  ;;  %v1375_v32 = vadd.f32 %v1374_v54, %v1111_v27  ;;  %v1403_v43 = vpop.f32.mrb[68].mxu0 }
 0x182   :  { %v1405_v44 = vpop.f32.mrb[69].mxu0 }
 0x183   :  { %1581 = vst.msk [vmem:[%s2884_s3 + $0xd0] sm:$0xff] %vm1554_vm1, %v1523_v31  ;;  %v1524_v35 = vmax.f32 %v1375_v32, 0.0  ;;  %v1406_v47 = vpop.f32.mrb[70].mxu0 }
 0x184   :  { %v1115_v36 = vpop.f32.mrb[56].mxu1  ;;  %v1408_v48 = vpop.f32.mrb[71].mxu0 }
 0x185   :  { %1582 = vst.msk [vmem:[%s2884_s3 + $0xd8] sm:$0xff] %vm1554_vm1, %v1524_v35  ;;  %v1116_v37 = vadd.f32 %v2588_v23, %v1115_v36  ;;  %v1117_v38 = vpop.f32.mrb[57].mxu1 }
 0x186   :  { %v1118_v39 = vpop.f32.mrb[58].mxu1 }
 0x187   :  { %v1380_v40 = vadd.f32 %v1379_v0, %v1116_v37  ;;  %v1119_v41 = vadd.f32 %v2588_v23, %v1118_v39  ;;  %v1120_v42 = vpop.f32.mrb[59].mxu1 }
 0x189   :  { %v1525_v45 = vmax.f32 %v1380_v40, 0.0  ;;  %v1383_v46 = vadd.f32 %v1382_v4, %v1119_v41  ;;  %v1411_v57 = vpop.f32.mrb[72].mxu0 }
 0x18a   :  { %v1413_v58 = vpop.f32.mrb[73].mxu0 }
 0x18b   :  { %1583 = vst.msk [vmem:[%s2884_s3 + $0xe0] sm:$0xff] %vm1554_vm1, %v1525_v45  ;;  %v1526_v49 = vmax.f32 %v1383_v46, 0.0  ;;  %v1414_v61 = vpop.f32.mrb[74].mxu0 }
 0x18c   :  { %v1123_v50 = vpop.f32.mrb[60].mxu1  ;;  %v1416_v62 = vpop.f32.mrb[75].mxu0 }
 0x18d   :  { %1584 = vst.msk [vmem:[%s2884_s3 + $0xe8] sm:$0xff] %vm1554_vm1, %v1526_v49  ;;  %v1124_v51 = vadd.f32 %v2588_v23, %v1123_v50  ;;  %v1125_v52 = vpop.f32.mrb[61].mxu1 }
 0x18e   :  { %v1126_v53 = vpop.f32.mrb[62].mxu1 }
 0x18f   :  { %v1388_v54 = vadd.f32 %v1387_v14, %v1124_v51  ;;  %v1127_v55 = vadd.f32 %v2588_v23, %v1126_v53  ;;  %v1128_v56 = vpop.f32.mrb[63].mxu1 }
 0x191   :  { %v1527_v59 = vmax.f32 %v1388_v54, 0.0  ;;  %v1391_v60 = vadd.f32 %v1390_v18, %v1127_v55  ;;  %v1419_v7 = vpop.f32.mrb[76].mxu0 }
 0x192   :  { %v1421_v8 = vpop.f32.mrb[77].mxu0 }
 0x193   :  { %1585 = vst.msk [vmem:[%s2884_s3 + $0xf0] sm:$0xff] %vm1554_vm1, %v1527_v59  ;;  %v1528_v63 = vmax.f32 %v1391_v60, 0.0  ;;  %v1422_v11 = vpop.f32.mrb[78].mxu0 }
 0x194   :  { %v1131_v0 = vpop.f32.mrb[64].mxu1  ;;  %v1424_v12 = vpop.f32.mrb[79].mxu0 }
 0x195   :  { %1586 = vst.msk [vmem:[%s2884_s3 + $0xf8] sm:$0xff] %vm1554_vm1, %v1528_v63  ;;  %v1132_v1 = vadd.f32 %v2588_v23, %v1131_v0  ;;  %v1133_v2 = vpop.f32.mrb[65].mxu1 }
 0x196   :  { %v1134_v3 = vpop.f32.mrb[66].mxu1 }
 0x197   :  { %v1396_v4 = vadd.f32 %v1395_v29, %v1132_v1  ;;  %v1135_v5 = vadd.f32 %v2588_v23, %v1134_v3  ;;  %v1136_v6 = vpop.f32.mrb[67].mxu1 }
 0x199   :  { %v1529_v9 = vmax.f32 %v1396_v4, 0.0  ;;  %v1399_v10 = vadd.f32 %v1398_v33, %v1135_v5  ;;  %v1427_v21 = vpop.f32.mrb[80].mxu0 }
 0x19a   :  { %v1429_v22 = vpop.f32.mrb[81].mxu0 }
 0x19b   :  { %1587 = vst.msk [vmem:[%s2884_s3 + $0x100] sm:$0xff] %vm1554_vm1, %v1529_v9  ;;  %v1530_v13 = vmax.f32 %v1399_v10, 0.0  ;;  %v1430_v26 = vpop.f32.mrb[82].mxu0 }
 0x19c   :  { %v1139_v14 = vpop.f32.mrb[68].mxu1  ;;  %v1432_v27 = vpop.f32.mrb[83].mxu0 }
 0x19d   :  { %1588 = vst.msk [vmem:[%s2884_s3 + $0x108] sm:$0xff] %vm1554_vm1, %v1530_v13  ;;  %v1140_v15 = vadd.f32 %v2588_v23, %v1139_v14  ;;  %v1141_v16 = vpop.f32.mrb[69].mxu1 }
 0x19e   :  { %v1142_v17 = vpop.f32.mrb[70].mxu1 }
 0x19f   :  { %v1404_v18 = vadd.f32 %v1403_v43, %v1140_v15  ;;  %v1143_v19 = vadd.f32 %v2588_v23, %v1142_v17  ;;  %v1144_v20 = vpop.f32.mrb[71].mxu1 }
 0x1a1   :  { %v1531_v24 = vmax.f32 %v1404_v18, 0.0  ;;  %v1407_v25 = vadd.f32 %v1406_v47, %v1143_v19  ;;  %v1435_v36 = vpop.f32.mrb[84].mxu0 }
 0x1a2   :  { %v1437_v37 = vpop.f32.mrb[85].mxu0 }
 0x1a3   :  { %1589 = vst.msk [vmem:[%s2884_s3 + $0x110] sm:$0xff] %vm1554_vm1, %v1531_v24  ;;  %v1532_v28 = vmax.f32 %v1407_v25, 0.0  ;;  %v1438_v40 = vpop.f32.mrb[86].mxu0 }
 0x1a4   :  { %v1147_v29 = vpop.f32.mrb[72].mxu1  ;;  %v1440_v41 = vpop.f32.mrb[87].mxu0 }
 0x1a5   :  { %1590 = vst.msk [vmem:[%s2884_s3 + $0x118] sm:$0xff] %vm1554_vm1, %v1532_v28  ;;  %v1148_v30 = vadd.f32 %v2588_v23, %v1147_v29  ;;  %v1149_v31 = vpop.f32.mrb[73].mxu1 }
 0x1a6   :  { %v1150_v32 = vpop.f32.mrb[74].mxu1 }
 0x1a7   :  { %v1412_v33 = vadd.f32 %v1411_v57, %v1148_v30  ;;  %v1151_v34 = vadd.f32 %v2588_v23, %v1150_v32  ;;  %v1152_v35 = vpop.f32.mrb[75].mxu1 }
 0x1a9   :  { %v1533_v38 = vmax.f32 %v1412_v33, 0.0  ;;  %v1415_v39 = vadd.f32 %v1414_v61, %v1151_v34  ;;  %v1443_v50 = vpop.f32.mrb[88].mxu0 }
 0x1aa   :  { %v1445_v51 = vpop.f32.mrb[89].mxu0 }
 0x1ab   :  { %1591 = vst.msk [vmem:[%s2884_s3 + $0x120] sm:$0xff] %vm1554_vm1, %v1533_v38  ;;  %v1534_v42 = vmax.f32 %v1415_v39, 0.0  ;;  %v1446_v54 = vpop.f32.mrb[90].mxu0 }
 0x1ac   :  { %v1155_v43 = vpop.f32.mrb[76].mxu1  ;;  %v1448_v55 = vpop.f32.mrb[91].mxu0 }
 0x1ad   :  { %1592 = vst.msk [vmem:[%s2884_s3 + $0x128] sm:$0xff] %vm1554_vm1, %v1534_v42  ;;  %v1156_v44 = vadd.f32 %v2588_v23, %v1155_v43  ;;  %v1157_v45 = vpop.f32.mrb[77].mxu1 }
 0x1ae   :  { %v1158_v46 = vpop.f32.mrb[78].mxu1 }
 0x1af   :  { %v1420_v47 = vadd.f32 %v1419_v7, %v1156_v44  ;;  %v1159_v48 = vadd.f32 %v2588_v23, %v1158_v46  ;;  %v1160_v49 = vpop.f32.mrb[79].mxu1 }
 0x1b1   :  { %v1535_v52 = vmax.f32 %v1420_v47, 0.0  ;;  %v1423_v53 = vadd.f32 %v1422_v11, %v1159_v48  ;;  %v1451_v0 = vpop.f32.mrb[92].mxu0 }
 0x1b2   :  { %v1453_v1 = vpop.f32.mrb[93].mxu0 }
 0x1b3   :  { %1593 = vst.msk [vmem:[%s2884_s3 + $0x130] sm:$0xff] %vm1554_vm1, %v1535_v52  ;;  %v1536_v56 = vmax.f32 %v1423_v53, 0.0  ;;  %v1454_v4 = vpop.f32.mrb[94].mxu0 }
 0x1b4   :  { %v1163_v57 = vpop.f32.mrb[80].mxu1  ;;  %v1456_v5 = vpop.f32.mrb[95].mxu0 }
 0x1b5   :  { %1594 = vst.msk [vmem:[%s2884_s3 + $0x138] sm:$0xff] %vm1554_vm1, %v1536_v56  ;;  %v1164_v58 = vadd.f32 %v2588_v23, %v1163_v57  ;;  %v1165_v59 = vpop.f32.mrb[81].mxu1 }
 0x1b6   :  { %v1166_v60 = vpop.f32.mrb[82].mxu1 }
 0x1b7   :  { %v1428_v61 = vadd.f32 %v1427_v21, %v1164_v58  ;;  %v1167_v62 = vadd.f32 %v2588_v23, %v1166_v60  ;;  %v1168_v63 = vpop.f32.mrb[83].mxu1 }
 0x1b9   :  { %v1537_v2 = vmax.f32 %v1428_v61, 0.0  ;;  %v1431_v3 = vadd.f32 %v1430_v26, %v1167_v62  ;;  %v1459_v14 = vpop.f32.mrb[96].mxu0 }
 0x1ba   :  { %v1461_v15 = vpop.f32.mrb[97].mxu0 }
 0x1bb   :  { %1595 = vst.msk [vmem:[%s2884_s3 + $0x140] sm:$0xff] %vm1554_vm1, %v1537_v2  ;;  %v1538_v6 = vmax.f32 %v1431_v3, 0.0  ;;  %v1462_v18 = vpop.f32.mrb[98].mxu0 }
 0x1bc   :  { %v1171_v7 = vpop.f32.mrb[84].mxu1  ;;  %v1464_v19 = vpop.f32.mrb[99].mxu0 }
 0x1bd   :  { %1596 = vst.msk [vmem:[%s2884_s3 + $0x148] sm:$0xff] %vm1554_vm1, %v1538_v6  ;;  %v1172_v8 = vadd.f32 %v2588_v23, %v1171_v7  ;;  %v1173_v9 = vpop.f32.mrb[85].mxu1 }
 0x1be   :  { %v1174_v10 = vpop.f32.mrb[86].mxu1 }
 0x1bf   :  { %v1436_v11 = vadd.f32 %v1435_v36, %v1172_v8  ;;  %v1175_v12 = vadd.f32 %v2588_v23, %v1174_v10  ;;  %v1176_v13 = vpop.f32.mrb[87].mxu1 }
 0x1c1   :  { %v1539_v16 = vmax.f32 %v1436_v11, 0.0  ;;  %v1439_v17 = vadd.f32 %v1438_v40, %v1175_v12  ;;  %v1467_v29 = vpop.f32.mrb[100].mxu0 }
 0x1c2   :  { %v1469_v30 = vpop.f32.mrb[101].mxu0 }
 0x1c3   :  { %1597 = vst.msk [vmem:[%s2884_s3 + $0x150] sm:$0xff] %vm1554_vm1, %v1539_v16  ;;  %v1540_v20 = vmax.f32 %v1439_v17, 0.0  ;;  %v1470_v33 = vpop.f32.mrb[102].mxu0 }
 0x1c4   :  { %v1179_v21 = vpop.f32.mrb[88].mxu1  ;;  %v1472_v34 = vpop.f32.mrb[103].mxu0 }
 0x1c5   :  { %1598 = vst.msk [vmem:[%s2884_s3 + $0x158] sm:$0xff] %vm1554_vm1, %v1540_v20  ;;  %v1180_v22 = vadd.f32 %v2588_v23, %v1179_v21  ;;  %v1181_v24 = vpop.f32.mrb[89].mxu1 }
 0x1c6   :  { %v1182_v25 = vpop.f32.mrb[90].mxu1 }
 0x1c7   :  { %v1444_v26 = vadd.f32 %v1443_v50, %v1180_v22  ;;  %v1183_v27 = vadd.f32 %v2588_v23, %v1182_v25  ;;  %v1184_v28 = vpop.f32.mrb[91].mxu1 }
 0x1c9   :  { %v1541_v31 = vmax.f32 %v1444_v26, 0.0  ;;  %v1447_v32 = vadd.f32 %v1446_v54, %v1183_v27  ;;  %v1475_v43 = vpop.f32.mrb[104].mxu0 }
 0x1ca   :  { %v1477_v44 = vpop.f32.mrb[105].mxu0 }
 0x1cb   :  { %1599 = vst.msk [vmem:[%s2884_s3 + $0x160] sm:$0xff] %vm1554_vm1, %v1541_v31  ;;  %v1542_v35 = vmax.f32 %v1447_v32, 0.0  ;;  %v1478_v47 = vpop.f32.mrb[106].mxu0 }
 0x1cc   :  { %v1187_v36 = vpop.f32.mrb[92].mxu1  ;;  %v1480_v48 = vpop.f32.mrb[107].mxu0 }
 0x1cd   :  { %1600 = vst.msk [vmem:[%s2884_s3 + $0x168] sm:$0xff] %vm1554_vm1, %v1542_v35  ;;  %v1188_v37 = vadd.f32 %v2588_v23, %v1187_v36  ;;  %v1189_v38 = vpop.f32.mrb[93].mxu1 }
 0x1ce   :  { %v1190_v39 = vpop.f32.mrb[94].mxu1 }
 0x1cf   :  { %v1452_v40 = vadd.f32 %v1451_v0, %v1188_v37  ;;  %v1191_v41 = vadd.f32 %v2588_v23, %v1190_v39  ;;  %v1192_v42 = vpop.f32.mrb[95].mxu1 }
 0x1d1   :  { %v1543_v45 = vmax.f32 %v1452_v40, 0.0  ;;  %v1455_v46 = vadd.f32 %v1454_v4, %v1191_v41  ;;  %v1483_v57 = vpop.f32.mrb[108].mxu0 }
 0x1d2   :  { %v1485_v58 = vpop.f32.mrb[109].mxu0 }
 0x1d3   :  { %1601 = vst.msk [vmem:[%s2884_s3 + $0x170] sm:$0xff] %vm1554_vm1, %v1543_v45  ;;  %v1544_v49 = vmax.f32 %v1455_v46, 0.0  ;;  %v1486_v61 = vpop.f32.mrb[110].mxu0 }
 0x1d4   :  { %v1195_v50 = vpop.f32.mrb[96].mxu1  ;;  %v1488_v62 = vpop.f32.mrb[111].mxu0 }
 0x1d5   :  { %1602 = vst.msk [vmem:[%s2884_s3 + $0x178] sm:$0xff] %vm1554_vm1, %v1544_v49  ;;  %v1196_v51 = vadd.f32 %v2588_v23, %v1195_v50  ;;  %v1197_v52 = vpop.f32.mrb[97].mxu1 }
 0x1d6   :  { %v1198_v53 = vpop.f32.mrb[98].mxu1 }
 0x1d7   :  { %v1460_v54 = vadd.f32 %v1459_v14, %v1196_v51  ;;  %v1199_v55 = vadd.f32 %v2588_v23, %v1198_v53  ;;  %v1200_v56 = vpop.f32.mrb[99].mxu1 }
 0x1d9   :  { %v1545_v59 = vmax.f32 %v1460_v54, 0.0  ;;  %v1463_v60 = vadd.f32 %v1462_v18, %v1199_v55  ;;  %v1491_v7 = vpop.f32.mrb[112].mxu0 }
 0x1da   :  { %v1493_v8 = vpop.f32.mrb[113].mxu0 }
 0x1db   :  { %1603 = vst.msk [vmem:[%s2884_s3 + $0x180] sm:$0xff] %vm1554_vm1, %v1545_v59  ;;  %v1546_v63 = vmax.f32 %v1463_v60, 0.0  ;;  %v1494_v11 = vpop.f32.mrb[114].mxu0 }
 0x1dc   :  { %v1203_v0 = vpop.f32.mrb[100].mxu1  ;;  %v1495_v12 = vpop.f32.mrb[115].mxu0 }
 0x1dd   :  { %1604 = vst.msk [vmem:[%s2884_s3 + $0x188] sm:$0xff] %vm1554_vm1, %v1546_v63  ;;  %v1204_v1 = vadd.f32 %v2588_v23, %v1203_v0  ;;  %v1205_v2 = vpop.f32.mrb[101].mxu1 }
 0x1de   :  { %v1206_v3 = vpop.f32.mrb[102].mxu1 }
 0x1df   :  { %v1468_v4 = vadd.f32 %v1467_v29, %v1204_v1  ;;  %v1207_v5 = vadd.f32 %v2588_v23, %v1206_v3  ;;  %v1208_v6 = vpop.f32.mrb[103].mxu1 }
 0x1e1   :  { %v1547_v9 = vmax.f32 %v1468_v4, 0.0  ;;  %v1471_v10 = vadd.f32 %v1470_v33, %v1207_v5 }
 0x1e3   :  { %1605 = vst.msk [vmem:[%s2884_s3 + $0x190] sm:$0xff] %vm1554_vm1, %v1547_v9  ;;  %v1548_v13 = vmax.f32 %v1471_v10, 0.0 }
 0x1e4   :  { %v1211_v14 = vpop.f32.mrb[104].mxu1 }
 0x1e5   :  { %1606 = vst.msk [vmem:[%s2884_s3 + $0x198] sm:$0xff] %vm1554_vm1, %v1548_v13  ;;  %v1212_v15 = vadd.f32 %v2588_v23, %v1211_v14  ;;  %v1213_v16 = vpop.f32.mrb[105].mxu1 }
 0x1e6   :  { %v1214_v17 = vpop.f32.mrb[106].mxu1 }
 0x1e7   :  { %v1476_v18 = vadd.f32 %v1475_v43, %v1212_v15  ;;  %v1215_v19 = vadd.f32 %v2588_v23, %v1214_v17  ;;  %v1216_v20 = vpop.f32.mrb[107].mxu1 }
 0x1e9   :  { %v1549_v21 = vmax.f32 %v1476_v18, 0.0  ;;  %v1479_v22 = vadd.f32 %v1478_v47, %v1215_v19 }
 0x1eb   :  { %1607 = vst.msk [vmem:[%s2884_s3 + $0x1a0] sm:$0xff] %vm1554_vm1, %v1549_v21  ;;  %v1550_v24 = vmax.f32 %v1479_v22, 0.0 }
 0x1ec   :  { %v1219_v25 = vpop.f32.mrb[108].mxu1 }
 0x1ed   :  { %1608 = vst.msk [vmem:[%s2884_s3 + $0x1a8] sm:$0xff] %vm1554_vm1, %v1550_v24  ;;  %v1220_v26 = vadd.f32 %v2588_v23, %v1219_v25  ;;  %v1221_v27 = vpop.f32.mrb[109].mxu1 }
 0x1ee   :  { %v1222_v28 = vpop.f32.mrb[110].mxu1 }
 0x1ef   :  { %v1484_v29 = vadd.f32 %v1483_v57, %v1220_v26  ;;  %v1223_v30 = vadd.f32 %v2588_v23, %v1222_v28  ;;  %v1224_v31 = vpop.f32.mrb[111].mxu1 }
 0x1f1   :  { %v1551_v32 = vmax.f32 %v1484_v29, 0.0  ;;  %v1487_v33 = vadd.f32 %v1486_v61, %v1223_v30 }
 0x1f3   :  { %1609 = vst.msk [vmem:[%s2884_s3 + $0x1b0] sm:$0xff] %vm1554_vm1, %v1551_v32  ;;  %v1552_v34 = vmax.f32 %v1487_v33, 0.0 }
 0x1f4   :  { %v1227_v35 = vpop.f32.mrb[112].mxu1 }
 0x1f5   :  { %1610 = vst.msk [vmem:[%s2884_s3 + $0x1b8] sm:$0xff] %vm1554_vm1, %v1552_v34  ;;  %v1228_v36 = vadd.f32 %v2588_v23, %v1227_v35  ;;  %v1229_v37 = vpop.f32.mrb[113].mxu1 }
 0x1f6   :  { %v1230_v38 = vpop.f32.mrb[114].mxu1 }
 0x1f7   :  { %v1492_v39 = vadd.f32 %v1491_v7, %v1228_v36  ;;  %v1231_v40 = vpop.f32.mrb[115].mxu1 }
 0x1f9   :  { %v1553_v41 = vmax.f32 %v1492_v39, 0.0 }
 0x1fb   :  { %1611 = vst.msk [vmem:[%s2884_s3 + $0x1c0] sm:$0xff] %vm1554_vm1, %v1553_v41 }

// kernel: autoencoder_forward.9
= control target key start
LH: loop header
LB: loop body
LE: loop exit
PB: predicated region body
PF: predicated region fallthrough
CT: control target
= control target key end

     0   :  { %s2497_s0 = inlined_call_operand.vmem [shape: bf16[1,1568,32], index: 0, kind: input, shape index: {}]   ;;  %s2498_s1 = inlined_call_operand.vmem [shape: bf16[32,1], index: 1, kind: input, shape index: {}]   ;;  %s2499_s2 = inlined_call_operand.<no memory space> [shape: f32[1,1], index: 2, kind: input, shape index: {}]   ;;  %s2500_s3 = inlined_call_operand.vmem [shape: f32[1568,1], index: 3, kind: output, shape index: {}]  }
   0x1   :  { %v8_v0 = vstv %s2499_s2 }
   0x2   :  { %9 = vst [vmem:[#allocation2] sm:$0x1] %v8_v0 }
   0x3   :  { %s1985_s14 = smov 0   ;;  %s1987_s15 = smov 0  }
   0x4   :  { %s1989_s16 = smov 0  }
   0x5 LB: > { %s1998_s2 = sadd.s32 4294967295, %s1928_s16   ;;  %s2000_s17 = sadd.s32 1, %s1928_s16   ;;  %s1928_s16 = sphi %s1989_s16, %s2509_s16   ;;  %s1924_s15 = sphi %s1987_s15, %s2508_s15   ;;  %s1920_s14 = sphi %s1985_s14, %s2507_s14  }
   0x6   : > { %s87_s18 = ssub.s32 %s1928_s16, %s2000_s17  ;;  %s90_s19 = sadd.s32 1, %s1924_s15 }
   0x7   : > { %p88_p0 = scmp.eq.s32.totalorder %s87_s18, 0  ;;  %p100_p1 = scmp.ne.s32.totalorder %s1924_s15, %s1920_s14 }
   0x8   : > { %p101_p2 = scmp.eq.s32.totalorder %s1998_s2, 3  ;;  %p1427_p3 = scmp.ge.s32.totalorder %s1928_s16, 1 }
   0x9   : > { %s2008_s20 = scalar_select %p88_p0, %s1924_s15, %s90_s19  }
   0xa   : > { %p2010_p4 = por %p101_p2, %p100_p1  ;;  %p148_p5 = scmp.lt.s32.totalorder %s1928_s16, 5 }
   0xc   : > { %p149_p6 = pnand %p1427_p3, %p148_p5 }
   0xd   : > { %v1712_v1 = vld [vmem:[%s2498_s1] sm:$0xff] (!%p149_p6)   ;;  %s2018_s24 = sshll.u32 (!%p149_p6), %s1998_s2, 6  ;;  %v1713_v2 = vld [vmem:[%s2498_s1 + $0x8] sm:$0xff] (!%p149_p6)   ;;  %vm442_vm0 = vcmask (!%p149_p6), 261120   ;;  %s172_s5 = sand.u32 (!%p149_p6), 1, %s1920_s14   ;;  %vm892_vm1 = vcmask (!%p149_p6), 7168  }
   0xe   : > { %152 = sbr.rel (%p149_p6) target bundleno = 390 (0x186), region = 32  ;;  %p180_p7 = scmp.lt.s32.totalorder (!%p149_p6), %s2018_s24, 195  ;;  %1552 = vmatprep.subr.bf16.mxu0 (!%p149_p6), %v1712_v1  ;;  %1620 = vmatprep.subr.bf16.mxu1 (!%p149_p6), %v1712_v1  ;;  %v2094_v35 = vld [vmem:[#allocation2] ss:$0 sm:$0xff] (!%p149_p6) }
   0xf   : > { %1553 = vmatpush3.bf16.msra.mxu0 (!%p149_p6), %v1712_v1  ;;  %1622 = vmatpush3.bf16.msra.mxu1 (!%p149_p6), %v1712_v1  ;;  %s1428_s6 = sshll.u32 (!%p149_p6), %s172_s5, 9 }
  0x10   : > { %1554 = vmatprep.subr.bf16.mxu0 (!%p149_p6), %v1713_v2  ;;  %1621 = vmatprep.subr.bf16.mxu1 (!%p149_p6), %v1713_v2  ;;  %s2112_s7 = scalar_lea.vmem (!%p149_p6), [#allocation3], %s1428_s6  }
  0x13   : > { %1555 = vmatpush3.bf16.msra.mxu0 (!%p149_p6), %v1713_v2  ;;  %1623 = vmatpush3.bf16.msra.mxu1 (!%p149_p6), %v1713_v2 }
  0x15   : > { %s181_s27 = scalar_select %p180_p7, %s2018_s24, 195 }
  0x16   : > { %s965_s8 = ssub.s32 (%p2010_p4), 196, %s2018_s24  ;;  %s1515_s9 = sshll.u32 (%p2010_p4), %s1998_s2, 9 }
  0x17   : > { %s1430_s28 = sshll.u32 %s181_s27, 2  ;;  %p966_p8 = scmp.lt.s32.totalorder (%p2010_p4), %s965_s8, 64 }
  0x18   : > { %s2028_s4 = scalar_lea.vmem %s2497_s0, %s1430_s28  ;;  %s2298_s12 = scalar_lea.vmem (%p2010_p4), %s2500_s3, %s1515_s9  }
  0x19   : > { %v1714_v3 = vld [vmem:[%s2028_s4] sm:$0xff]   ;;  %v1716_v5 = vld [vmem:[%s2028_s4 + $0x8] sm:$0xff]   ;;  %v1718_v7 = vld [vmem:[%s2028_s4 + $0x10] sm:$0xff]  }
  0x1a   : > { %v1715_v4 = vld [vmem:[%s2028_s4 + $0x80] sm:$0xff]   ;;  %1556 = vmatprep.mubr.msk.bf16.mxu0 %vm442_vm0, %v1714_v3  ;;  %v1717_v6 = vld [vmem:[%s2028_s4 + $0x88] sm:$0xff]   ;;  %v1719_v8 = vld [vmem:[%s2028_s4 + $0x90] sm:$0xff]  }
  0x1b   : > { %1588 = vmatprep.mubr.msk.bf16.mxu1 %vm442_vm0, %v1715_v4  ;;  %1557 = vmatmul.mubr.msk.bf16.vlgmr.msra.gmra.mrb[0].mxu0 %vm442_vm0, %v1716_v5  ;;  %v1720_v9 = vld [vmem:[%s2028_s4 + $0x18] sm:$0xff]   ;;  %v1722_v11 = vld [vmem:[%s2028_s4 + $0x20] sm:$0xff]   ;;  %v1724_v13 = vld [vmem:[%s2028_s4 + $0x28] sm:$0xff]  }
  0x1c   : > { %1589 = vmatmul.mubr.msk.bf16.vlgmr.msra.gmra.mrb[0].mxu1 %vm442_vm0, %v1717_v6  ;;  %1560 = vmatprep.mubr.msk.bf16.mxu0 %vm442_vm0, %v1718_v7  ;;  %v1721_v10 = vld [vmem:[%s2028_s4 + $0x98] sm:$0xff]   ;;  %v1723_v12 = vld [vmem:[%s2028_s4 + $0xa0] sm:$0xff]   ;;  %v1725_v14 = vld [vmem:[%s2028_s4 + $0xa8] sm:$0xff]  }
  0x1d   : > { %1592 = vmatprep.mubr.msk.bf16.mxu1 %vm442_vm0, %v1719_v8  ;;  %v1726_v15 = vld [vmem:[%s2028_s4 + $0x30] sm:$0xff]   ;;  %v1728_v17 = vld [vmem:[%s2028_s4 + $0x38] sm:$0xff]   ;;  %v1730_v19 = vld [vmem:[%s2028_s4 + $0x40] sm:$0xff]  }
  0x1e   : > { %v1727_v16 = vld [vmem:[%s2028_s4 + $0xb0] sm:$0xff]   ;;  %v1729_v18 = vld [vmem:[%s2028_s4 + $0xb8] sm:$0xff]   ;;  %v1731_v20 = vld [vmem:[%s2028_s4 + $0xc0] sm:$0xff]  }
  0x1f   : > { %v1732_v21 = vld [vmem:[%s2028_s4 + $0x48] sm:$0xff]   ;;  %v1734_v23 = vld [vmem:[%s2028_s4 + $0x50] sm:$0xff]   ;;  %v1736_v25 = vld [vmem:[%s2028_s4 + $0x58] sm:$0xff]  }
  0x20   : > { %v1733_v22 = vld [vmem:[%s2028_s4 + $0xc8] sm:$0xff]   ;;  %v1735_v24 = vld [vmem:[%s2028_s4 + $0xd0] sm:$0xff]   ;;  %v1737_v26 = vld [vmem:[%s2028_s4 + $0xd8] sm:$0xff]  }
  0x21   : > { %v1738_v27 = vld [vmem:[%s2028_s4 + $0x60] sm:$0xff]   ;;  %v1740_v29 = vld [vmem:[%s2028_s4 + $0x68] sm:$0xff]   ;;  %v1742_v31 = vld [vmem:[%s2028_s4 + $0x70] sm:$0xff]  }
  0x22   : > { %v1739_v28 = vld [vmem:[%s2028_s4 + $0xe0] sm:$0xff]   ;;  %v1741_v30 = vld [vmem:[%s2028_s4 + $0xe8] sm:$0xff]   ;;  %v1743_v32 = vld [vmem:[%s2028_s4 + $0xf0] sm:$0xff]  }
  0x23   : > { %1561 = vmatmul.mubr.msk.bf16.gmra.mrb[4].mxu0 %vm442_vm0, %v1720_v9  ;;  %v1744_v33 = vld [vmem:[%s2028_s4 + $0x78] sm:$0xff]  }
  0x24   : > { %1593 = vmatmul.mubr.msk.bf16.gmra.mrb[4].mxu1 %vm442_vm0, %v1721_v10  ;;  %1564 = vmatprep.mubr.msk.bf16.mxu0 %vm442_vm0, %v1722_v11  ;;  %v1745_v34 = vld [vmem:[%s2028_s4 + $0xf8] sm:$0xff]  }
  0x25   : > { %1596 = vmatprep.mubr.msk.bf16.mxu1 %vm442_vm0, %v1723_v12 }
  0x2b   : > { %1565 = vmatmul.mubr.msk.bf16.gmra.mrb[8].mxu0 %vm442_vm0, %v1724_v13 }
  0x2c   : > { %1597 = vmatmul.mubr.msk.bf16.gmra.mrb[8].mxu1 %vm442_vm0, %v1725_v14  ;;  %1568 = vmatprep.mubr.msk.bf16.mxu0 %vm442_vm0, %v1726_v15 }
  0x2d   : > { %1600 = vmatprep.mubr.msk.bf16.mxu1 %vm442_vm0, %v1727_v16 }
  0x33   : > { %1569 = vmatmul.mubr.msk.bf16.gmra.mrb[12].mxu0 %vm442_vm0, %v1728_v17 }
  0x34   : > { %1601 = vmatmul.mubr.msk.bf16.gmra.mrb[12].mxu1 %vm442_vm0, %v1729_v18  ;;  %1572 = vmatprep.mubr.msk.bf16.mxu0 %vm442_vm0, %v1730_v19 }
  0x35   : > { %1604 = vmatprep.mubr.msk.bf16.mxu1 %vm442_vm0, %v1731_v20 }
  0x3b   : > { %1573 = vmatmul.mubr.msk.bf16.gmra.mrb[16].mxu0 %vm442_vm0, %v1732_v21 }
  0x3c   : > { %1605 = vmatmul.mubr.msk.bf16.gmra.mrb[16].mxu1 %vm442_vm0, %v1733_v22  ;;  %1576 = vmatprep.mubr.msk.bf16.mxu0 %vm442_vm0, %v1734_v23 }
  0x3d   : > { %1608 = vmatprep.mubr.msk.bf16.mxu1 %vm442_vm0, %v1735_v24 }
  0x43   : > { %1577 = vmatmul.mubr.msk.bf16.gmra.mrb[20].mxu0 %vm442_vm0, %v1736_v25 }
  0x44   : > { %1609 = vmatmul.mubr.msk.bf16.gmra.mrb[20].mxu1 %vm442_vm0, %v1737_v26  ;;  %1580 = vmatprep.mubr.msk.bf16.mxu0 %vm442_vm0, %v1738_v27 }
  0x45   : > { %1612 = vmatprep.mubr.msk.bf16.mxu1 %vm442_vm0, %v1739_v28 }
  0x4b   : > { %1581 = vmatmul.mubr.msk.bf16.gmra.mrb[24].mxu0 %vm442_vm0, %v1740_v29 }
  0x4c   : > { %1613 = vmatmul.mubr.msk.bf16.gmra.mrb[24].mxu1 %vm442_vm0, %v1741_v30  ;;  %1584 = vmatprep.mubr.msk.bf16.mxu0 %vm442_vm0, %v1742_v31 }
  0x4d   : > { %1616 = vmatprep.mubr.msk.bf16.mxu1 %vm442_vm0, %v1743_v32 }
  0x53   : > { %1585 = vmatmul.mubr.msk.bf16.gmra.mrb[28].mxu0 %vm442_vm0, %v1744_v33 }
  0x54   : > { %1617 = vmatmul.mubr.msk.bf16.gmra.mrb[28].mxu1 %vm442_vm0, %v1745_v34 }
  0xee   : > { %v1558_v36 = vpop.f32.mrb[0].mxu0 }
  0xef   : > { %v582_v37 = vadd.f32 %v1558_v36, %v2094_v35  ;;  %v1590_v38 = vpop.f32.mrb[0].mxu1  ;;  %v573_v39 = vpop.f32.mrb[1].mxu0 }
  0xf0   : > { %v710_v40 = vadd.f32 %v1590_v38, %v2094_v35  ;;  %v574_v41 = vadd.f32 %v2094_v35, %v573_v39  ;;  %v701_v42 = vpop.f32.mrb[1].mxu1  ;;  %v1559_v43 = vpop.f32.mrb[2].mxu0 }
  0xf1   : > { %1746 = vtanh.f32 %v582_v37  ;;  %v702_v44 = vadd.f32 %v2094_v35, %v701_v42  ;;  %v585_v45 = vadd.f32 %v1559_v43, %v2094_v35  ;;  %v1591_v46 = vpop.f32.mrb[2].mxu1  ;;  %v576_v47 = vpop.f32.mrb[3].mxu0 }
  0xf2   : > { %1748 = vtanh.f32 %v710_v40  ;;  %v713_v48 = vadd.f32 %v1591_v46, %v2094_v35  ;;  %v704_v49 = vpop.f32.mrb[3].mxu1  ;;  %v577_v50 = vadd.f32 %v2094_v35, %v576_v47 }
  0xf3   : > { %1750 = vtanh.f32 %v574_v41  ;;  %v705_v51 = vadd.f32 %v2094_v35, %v704_v49 }
  0xf4   : > { %1752 = vtanh.f32 %v702_v44 }
  0xf5   : > { %1754 = vtanh.f32 %v585_v45 }
  0xf6   : > { %1756 = vtanh.f32 %v713_v48  ;;  %v1562_v52 = vpop.f32.mrb[4].mxu0 }
  0xf7   : > { %1758 = vtanh.f32 %v577_v50  ;;  %v598_v53 = vadd.f32 %v1562_v52, %v2094_v35  ;;  %v1594_v54 = vpop.f32.mrb[4].mxu1  ;;  %v589_v55 = vpop.f32.mrb[5].mxu0 }
  0xf8   : > { %1760 = vtanh.f32 %v705_v51  ;;  %v726_v56 = vadd.f32 %v1594_v54, %v2094_v35  ;;  %v590_v57 = vadd.f32 %v2094_v35, %v589_v55  ;;  %v717_v58 = vpop.f32.mrb[5].mxu1  ;;  %v1563_v59 = vpop.f32.mrb[6].mxu0 }
  0xf9   : > { %1762 = vtanh.f32 %v598_v53  ;;  %v718_v60 = vadd.f32 %v2094_v35, %v717_v58  ;;  %v601_v61 = vadd.f32 %v1563_v59, %v2094_v35  ;;  %v1595_v62 = vpop.f32.mrb[6].mxu1  ;;  %v592_v63 = vpop.f32.mrb[7].mxu0 }
  0xfa   : > { %1764 = vtanh.f32 %v726_v56  ;;  %v729_v0 = vadd.f32 %v1595_v62, %v2094_v35  ;;  %v720_v1 = vpop.f32.mrb[7].mxu1  ;;  %v593_v3 = vadd.f32 %v2094_v35, %v592_v63 }
  0xfb   : > { %v1747_v2 = vpop.eup %1746  ;;  %1766 = vtanh.f32 %v590_v57  ;;  %v721_v5 = vadd.f32 %v2094_v35, %v720_v1 }
  0xfc   : > { %v1749_v4 = vpop.eup %1748  ;;  %895 = vst.msk [vmem:[%s2112_s7 + $0x10] sm:$0xff] %vm892_vm1, %v1747_v2  ;;  %1768 = vtanh.f32 %v718_v60 }
  0xfd   : > { %v1751_v6 = vpop.eup %1750  ;;  %927 = vst.msk [vmem:[%s2112_s7 + $0x110] sm:$0xff] %vm892_vm1, %v1749_v4  ;;  %1770 = vtanh.f32 %v601_v61 }
  0xfe   : > { %v1753_v7 = vpop.eup %1752  ;;  %893 = vst.msk [vmem:[%s2112_s7] sm:$0xff] %vm892_vm1, %v1751_v6  ;;  %1772 = vtanh.f32 %v729_v0  ;;  %v1566_v8 = vpop.f32.mrb[8].mxu0 }
  0xff   : > { %v1755_v9 = vpop.eup %1754  ;;  %925 = vst.msk [vmem:[%s2112_s7 + $0x100] sm:$0xff] %vm892_vm1, %v1753_v7  ;;  %1774 = vtanh.f32 %v593_v3  ;;  %v614_v10 = vadd.f32 %v1566_v8, %v2094_v35  ;;  %v1598_v11 = vpop.f32.mrb[8].mxu1 }
 0x100   : > { %v605_v12 = vpop.f32.mrb[9].mxu0  ;;  %v1757_v13 = vpop.eup %1756  ;;  %896 = vst.msk [vmem:[%s2112_s7 + $0x18] sm:$0xff] %vm892_vm1, %v1755_v9  ;;  %1776 = vtanh.f32 %v721_v5  ;;  %v742_v14 = vadd.f32 %v1598_v11, %v2094_v35 }
 0x101   : > { %v606_v15 = vadd.f32 %v2094_v35, %v605_v12  ;;  %v733_v16 = vpop.f32.mrb[9].mxu1  ;;  %v1567_v17 = vpop.f32.mrb[10].mxu0  ;;  %928 = vst.msk [vmem:[%s2112_s7 + $0x118] sm:$0xff] %vm892_vm1, %v1757_v13  ;;  %1778 = vtanh.f32 %v614_v10 }
 0x102   : > { %v1759_v18 = vpop.eup %1758  ;;  %v734_v19 = vadd.f32 %v2094_v35, %v733_v16  ;;  %v617_v20 = vadd.f32 %v1567_v17, %v2094_v35  ;;  %v1599_v21 = vpop.f32.mrb[10].mxu1  ;;  %1780 = vtanh.f32 %v742_v14 }
 0x103   : > { %v608_v22 = vpop.f32.mrb[11].mxu0  ;;  %v1761_v23 = vpop.eup %1760  ;;  %894 = vst.msk [vmem:[%s2112_s7 + $0x8] sm:$0xff] %vm892_vm1, %v1759_v18  ;;  %v745_v24 = vadd.f32 %v1599_v21, %v2094_v35  ;;  %1782 = vtanh.f32 %v606_v15 }
 0x104   : > { %v736_v25 = vpop.f32.mrb[11].mxu1  ;;  %v1763_v26 = vpop.eup %1762  ;;  %926 = vst.msk [vmem:[%s2112_s7 + $0x108] sm:$0xff] %vm892_vm1, %v1761_v23  ;;  %v609_v27 = vadd.f32 %v2094_v35, %v608_v22  ;;  %1784 = vtanh.f32 %v734_v19 }
 0x105   : > { %v1765_v28 = vpop.eup %1764  ;;  %899 = vst.msk [vmem:[%s2112_s7 + $0x30] sm:$0xff] %vm892_vm1, %v1763_v26  ;;  %v737_v29 = vadd.f32 %v2094_v35, %v736_v25  ;;  %1786 = vtanh.f32 %v617_v20 }
 0x106   : > { %v1767_v30 = vpop.eup %1766  ;;  %931 = vst.msk [vmem:[%s2112_s7 + $0x130] sm:$0xff] %vm892_vm1, %v1765_v28  ;;  %1788 = vtanh.f32 %v745_v24  ;;  %v1570_v32 = vpop.f32.mrb[12].mxu0 }
 0x107   : > { %v1769_v31 = vpop.eup %1768  ;;  %897 = vst.msk [vmem:[%s2112_s7 + $0x20] sm:$0xff] %vm892_vm1, %v1767_v30  ;;  %1790 = vtanh.f32 %v609_v27  ;;  %v630_v34 = vadd.f32 %v1570_v32, %v2094_v35  ;;  %v1602_v36 = vpop.f32.mrb[12].mxu1 }
 0x108   : > { %v1771_v33 = vpop.eup %1770  ;;  %929 = vst.msk [vmem:[%s2112_s7 + $0x120] sm:$0xff] %vm892_vm1, %v1769_v31  ;;  %v621_v37 = vpop.f32.mrb[13].mxu0  ;;  %1792 = vtanh.f32 %v737_v29  ;;  %v758_v39 = vadd.f32 %v1602_v36, %v2094_v35 }
 0x109   : > { %v1773_v38 = vpop.eup %1772  ;;  %900 = vst.msk [vmem:[%s2112_s7 + $0x38] sm:$0xff] %vm892_vm1, %v1771_v33  ;;  %v622_v40 = vadd.f32 %v2094_v35, %v621_v37  ;;  %v749_v41 = vpop.f32.mrb[13].mxu1  ;;  %1794 = vtanh.f32 %v630_v34 }
 0x10a   : > { %v1571_v42 = vpop.f32.mrb[14].mxu0  ;;  %v1775_v43 = vpop.eup %1774  ;;  %932 = vst.msk [vmem:[%s2112_s7 + $0x138] sm:$0xff] %vm892_vm1, %v1773_v38  ;;  %v750_v44 = vadd.f32 %v2094_v35, %v749_v41  ;;  %1796 = vtanh.f32 %v758_v39 }
 0x10b   : > { %v633_v45 = vadd.f32 %v1571_v42, %v2094_v35  ;;  %v1603_v46 = vpop.f32.mrb[14].mxu1  ;;  %v624_v47 = vpop.f32.mrb[15].mxu0  ;;  %898 = vst.msk [vmem:[%s2112_s7 + $0x28] sm:$0xff] %vm892_vm1, %v1775_v43  ;;  %1798 = vtanh.f32 %v622_v40 }
 0x10c   : > { %v1777_v48 = vpop.eup %1776  ;;  %v761_v49 = vadd.f32 %v1603_v46, %v2094_v35  ;;  %v752_v50 = vpop.f32.mrb[15].mxu1  ;;  %v625_v52 = vadd.f32 %v2094_v35, %v624_v47  ;;  %1800 = vtanh.f32 %v750_v44 }
 0x10d   : > { %v1779_v51 = vpop.eup %1778  ;;  %930 = vst.msk [vmem:[%s2112_s7 + $0x128] sm:$0xff] %vm892_vm1, %v1777_v48  ;;  %v753_v54 = vadd.f32 %v2094_v35, %v752_v50  ;;  %1802 = vtanh.f32 %v633_v45 }
 0x10e   : > { %v1781_v53 = vpop.eup %1780  ;;  %903 = vst.msk [vmem:[%s2112_s7 + $0x50] sm:$0xff] %vm892_vm1, %v1779_v51  ;;  %1804 = vtanh.f32 %v761_v49  ;;  %v1574_v57 = vpop.f32.mrb[16].mxu0 }
 0x10f   : > { %v1783_v55 = vpop.eup %1782  ;;  %935 = vst.msk [vmem:[%s2112_s7 + $0x150] sm:$0xff] %vm892_vm1, %v1781_v53  ;;  %1806 = vtanh.f32 %v625_v52  ;;  %v646_v59 = vadd.f32 %v1574_v57, %v2094_v35  ;;  %v1606_v60 = vpop.f32.mrb[16].mxu1 }
 0x110   : > { %v1785_v56 = vpop.eup %1784  ;;  %901 = vst.msk [vmem:[%s2112_s7 + $0x40] sm:$0xff] %vm892_vm1, %v1783_v55  ;;  %v637_v61 = vpop.f32.mrb[17].mxu0  ;;  %1808 = vtanh.f32 %v753_v54  ;;  %v774_v63 = vadd.f32 %v1606_v60, %v2094_v35 }
 0x111   : > { %v1787_v58 = vpop.eup %1786  ;;  %933 = vst.msk [vmem:[%s2112_s7 + $0x140] sm:$0xff] %vm892_vm1, %v1785_v56  ;;  %v638_v0 = vadd.f32 %v2094_v35, %v637_v61  ;;  %v765_v1 = vpop.f32.mrb[17].mxu1  ;;  %1810 = vtanh.f32 %v646_v59 }
 0x112   : > { %v1789_v62 = vpop.eup %1788  ;;  %904 = vst.msk [vmem:[%s2112_s7 + $0x58] sm:$0xff] %vm892_vm1, %v1787_v58  ;;  %v1575_v2 = vpop.f32.mrb[18].mxu0  ;;  %v766_v4 = vadd.f32 %v2094_v35, %v765_v1  ;;  %1812 = vtanh.f32 %v774_v63 }
 0x113   : > { %v1791_v3 = vpop.eup %1790  ;;  %936 = vst.msk [vmem:[%s2112_s7 + $0x158] sm:$0xff] %vm892_vm1, %v1789_v62  ;;  %v649_v5 = vadd.f32 %v1575_v2, %v2094_v35  ;;  %v1607_v6 = vpop.f32.mrb[18].mxu1  ;;  %1814 = vtanh.f32 %v638_v0 }
 0x114   : > { %v640_v7 = vpop.f32.mrb[19].mxu0  ;;  %v1793_v8 = vpop.eup %1792  ;;  %902 = vst.msk [vmem:[%s2112_s7 + $0x48] sm:$0xff] %vm892_vm1, %v1791_v3  ;;  %v777_v9 = vadd.f32 %v1607_v6, %v2094_v35  ;;  %1816 = vtanh.f32 %v766_v4 }
 0x115   : > { %v768_v10 = vpop.f32.mrb[19].mxu1  ;;  %v1795_v11 = vpop.eup %1794  ;;  %934 = vst.msk [vmem:[%s2112_s7 + $0x148] sm:$0xff] %vm892_vm1, %v1793_v8  ;;  %v641_v12 = vadd.f32 %v2094_v35, %v640_v7  ;;  %1818 = vtanh.f32 %v649_v5 }
 0x116   : > { %v1797_v13 = vpop.eup %1796  ;;  %907 = vst.msk [vmem:[%s2112_s7 + $0x70] sm:$0xff] %vm892_vm1, %v1795_v11  ;;  %v769_v14 = vadd.f32 %v2094_v35, %v768_v10  ;;  %1820 = vtanh.f32 %v777_v9  ;;  %v1578_v17 = vpop.f32.mrb[20].mxu0 }
 0x117   : > { %v1799_v15 = vpop.eup %1798  ;;  %939 = vst.msk [vmem:[%s2112_s7 + $0x170] sm:$0xff] %vm892_vm1, %v1797_v13  ;;  %1822 = vtanh.f32 %v641_v12  ;;  %v662_v19 = vadd.f32 %v1578_v17, %v2094_v35  ;;  %v1610_v20 = vpop.f32.mrb[20].mxu1 }
 0x118   : > { %v1801_v16 = vpop.eup %1800  ;;  %905 = vst.msk [vmem:[%s2112_s7 + $0x60] sm:$0xff] %vm892_vm1, %v1799_v15  ;;  %v653_v21 = vpop.f32.mrb[21].mxu0  ;;  %1824 = vtanh.f32 %v769_v14  ;;  %v790_v23 = vadd.f32 %v1610_v20, %v2094_v35 }
 0x119   : > { %v1803_v18 = vpop.eup %1802  ;;  %937 = vst.msk [vmem:[%s2112_s7 + $0x160] sm:$0xff] %vm892_vm1, %v1801_v16  ;;  %v654_v24 = vadd.f32 %v2094_v35, %v653_v21  ;;  %v781_v25 = vpop.f32.mrb[21].mxu1  ;;  %1826 = vtanh.f32 %v662_v19 }
 0x11a   : > { %v1805_v22 = vpop.eup %1804  ;;  %908 = vst.msk [vmem:[%s2112_s7 + $0x78] sm:$0xff] %vm892_vm1, %v1803_v18  ;;  %v1579_v26 = vpop.f32.mrb[22].mxu0  ;;  %v782_v28 = vadd.f32 %v2094_v35, %v781_v25  ;;  %1828 = vtanh.f32 %v790_v23 }
 0x11b   : > { %v1807_v27 = vpop.eup %1806  ;;  %940 = vst.msk [vmem:[%s2112_s7 + $0x178] sm:$0xff] %vm892_vm1, %v1805_v22  ;;  %v665_v29 = vadd.f32 %v1579_v26, %v2094_v35  ;;  %v1611_v30 = vpop.f32.mrb[22].mxu1  ;;  %1830 = vtanh.f32 %v654_v24 }
 0x11c   : > { %v656_v31 = vpop.f32.mrb[23].mxu0  ;;  %v1809_v32 = vpop.eup %1808  ;;  %906 = vst.msk [vmem:[%s2112_s7 + $0x68] sm:$0xff] %vm892_vm1, %v1807_v27  ;;  %v793_v33 = vadd.f32 %v1611_v30, %v2094_v35  ;;  %1832 = vtanh.f32 %v782_v28 }
 0x11d   : > { %v784_v34 = vpop.f32.mrb[23].mxu1  ;;  %v1811_v36 = vpop.eup %1810  ;;  %938 = vst.msk [vmem:[%s2112_s7 + $0x168] sm:$0xff] %vm892_vm1, %v1809_v32  ;;  %v657_v37 = vadd.f32 %v2094_v35, %v656_v31  ;;  %1834 = vtanh.f32 %v665_v29 }
 0x11e   : > { %v1813_v38 = vpop.eup %1812  ;;  %911 = vst.msk [vmem:[%s2112_s7 + $0x90] sm:$0xff] %vm892_vm1, %v1811_v36  ;;  %v785_v39 = vadd.f32 %v2094_v35, %v784_v34  ;;  %1836 = vtanh.f32 %v793_v33  ;;  %v1582_v42 = vpop.f32.mrb[24].mxu0 }
 0x11f   : > { %v1815_v40 = vpop.eup %1814  ;;  %943 = vst.msk [vmem:[%s2112_s7 + $0x190] sm:$0xff] %vm892_vm1, %v1813_v38  ;;  %1838 = vtanh.f32 %v657_v37  ;;  %v678_v44 = vadd.f32 %v1582_v42, %v2094_v35  ;;  %v1614_v45 = vpop.f32.mrb[24].mxu1 }
 0x120   : > { %v1817_v41 = vpop.eup %1816  ;;  %909 = vst.msk [vmem:[%s2112_s7 + $0x80] sm:$0xff] %vm892_vm1, %v1815_v40  ;;  %v669_v46 = vpop.f32.mrb[25].mxu0  ;;  %1840 = vtanh.f32 %v785_v39  ;;  %v806_v48 = vadd.f32 %v1614_v45, %v2094_v35 }
 0x121   : > { %v1819_v43 = vpop.eup %1818  ;;  %941 = vst.msk [vmem:[%s2112_s7 + $0x180] sm:$0xff] %vm892_vm1, %v1817_v41  ;;  %v670_v49 = vadd.f32 %v2094_v35, %v669_v46  ;;  %v797_v50 = vpop.f32.mrb[25].mxu1  ;;  %1842 = vtanh.f32 %v678_v44 }
 0x122   : > { %v1821_v47 = vpop.eup %1820  ;;  %912 = vst.msk [vmem:[%s2112_s7 + $0x98] sm:$0xff] %vm892_vm1, %v1819_v43  ;;  %v1583_v51 = vpop.f32.mrb[26].mxu0  ;;  %v798_v53 = vadd.f32 %v2094_v35, %v797_v50  ;;  %1844 = vtanh.f32 %v806_v48 }
 0x123   : > { %v1823_v52 = vpop.eup %1822  ;;  %944 = vst.msk [vmem:[%s2112_s7 + $0x198] sm:$0xff] %vm892_vm1, %v1821_v47  ;;  %v681_v54 = vadd.f32 %v1583_v51, %v2094_v35  ;;  %v1615_v55 = vpop.f32.mrb[26].mxu1  ;;  %1846 = vtanh.f32 %v670_v49 }
 0x124   : > { %v672_v56 = vpop.f32.mrb[27].mxu0  ;;  %v1825_v57 = vpop.eup %1824  ;;  %910 = vst.msk [vmem:[%s2112_s7 + $0x88] sm:$0xff] %vm892_vm1, %v1823_v52  ;;  %v809_v58 = vadd.f32 %v1615_v55, %v2094_v35  ;;  %1848 = vtanh.f32 %v798_v53 }
 0x125   : > { %v800_v59 = vpop.f32.mrb[27].mxu1  ;;  %v1827_v60 = vpop.eup %1826  ;;  %942 = vst.msk [vmem:[%s2112_s7 + $0x188] sm:$0xff] %vm892_vm1, %v1825_v57  ;;  %v673_v61 = vadd.f32 %v2094_v35, %v672_v56  ;;  %1850 = vtanh.f32 %v681_v54 }
 0x126   : > { %v1829_v62 = vpop.eup %1828  ;;  %915 = vst.msk [vmem:[%s2112_s7 + $0xb0] sm:$0xff] %vm892_vm1, %v1827_v60  ;;  %v801_v63 = vadd.f32 %v2094_v35, %v800_v59  ;;  %1852 = vtanh.f32 %v809_v58  ;;  %v1586_v2 = vpop.f32.mrb[28].mxu0 }
 0x127   : > { %v1831_v0 = vpop.eup %1830  ;;  %947 = vst.msk [vmem:[%s2112_s7 + $0x1b0] sm:$0xff] %vm892_vm1, %v1829_v62  ;;  %1854 = vtanh.f32 %v673_v61  ;;  %v694_v4 = vadd.f32 %v1586_v2, %v2094_v35  ;;  %v1618_v5 = vpop.f32.mrb[28].mxu1 }
 0x128   : > { %v1833_v1 = vpop.eup %1832  ;;  %913 = vst.msk [vmem:[%s2112_s7 + $0xa0] sm:$0xff] %vm892_vm1, %v1831_v0  ;;  %v685_v6 = vpop.f32.mrb[29].mxu0  ;;  %1856 = vtanh.f32 %v801_v63  ;;  %v822_v8 = vadd.f32 %v1618_v5, %v2094_v35 }
 0x129   : > { %v1835_v3 = vpop.eup %1834  ;;  %945 = vst.msk [vmem:[%s2112_s7 + $0x1a0] sm:$0xff] %vm892_vm1, %v1833_v1  ;;  %v686_v9 = vadd.f32 %v2094_v35, %v685_v6  ;;  %v813_v10 = vpop.f32.mrb[29].mxu1  ;;  %1858 = vtanh.f32 %v694_v4 }
 0x12a   : > { %v1837_v7 = vpop.eup %1836  ;;  %916 = vst.msk [vmem:[%s2112_s7 + $0xb8] sm:$0xff] %vm892_vm1, %v1835_v3  ;;  %v1587_v11 = vpop.f32.mrb[30].mxu0  ;;  %v814_v13 = vadd.f32 %v2094_v35, %v813_v10  ;;  %1860 = vtanh.f32 %v822_v8 }
 0x12b   : > { %v1839_v12 = vpop.eup %1838  ;;  %948 = vst.msk [vmem:[%s2112_s7 + $0x1b8] sm:$0xff] %vm892_vm1, %v1837_v7  ;;  %v697_v14 = vadd.f32 %v1587_v11, %v2094_v35  ;;  %v1619_v15 = vpop.f32.mrb[30].mxu1  ;;  %1862 = vtanh.f32 %v686_v9 }
 0x12c   : > { %v688_v16 = vpop.f32.mrb[31].mxu0  ;;  %v1841_v17 = vpop.eup %1840  ;;  %914 = vst.msk [vmem:[%s2112_s7 + $0xa8] sm:$0xff] %vm892_vm1, %v1839_v12  ;;  %v825_v18 = vadd.f32 %v1619_v15, %v2094_v35  ;;  %1864 = vtanh.f32 %v814_v13 }
 0x12d   : > { %v816_v19 = vpop.f32.mrb[31].mxu1  ;;  %v1843_v20 = vpop.eup %1842  ;;  %946 = vst.msk [vmem:[%s2112_s7 + $0x1a8] sm:$0xff] %vm892_vm1, %v1841_v17  ;;  %v689_v21 = vadd.f32 %v2094_v35, %v688_v16  ;;  %1866 = vtanh.f32 %v697_v14 }
 0x12e   : > { %v1845_v22 = vpop.eup %1844  ;;  %919 = vst.msk [vmem:[%s2112_s7 + $0xd0] sm:$0xff] %vm892_vm1, %v1843_v20  ;;  %v817_v23 = vadd.f32 %v2094_v35, %v816_v19  ;;  %1868 = vtanh.f32 %v825_v18 }
 0x12f   : > { %v1847_v24 = vpop.eup %1846  ;;  %951 = vst.msk [vmem:[%s2112_s7 + $0x1d0] sm:$0xff] %vm892_vm1, %v1845_v22  ;;  %1870 = vtanh.f32 %v689_v21 }
 0x130   : > { %v1849_v25 = vpop.eup %1848  ;;  %917 = vst.msk [vmem:[%s2112_s7 + $0xc0] sm:$0xff] %vm892_vm1, %v1847_v24  ;;  %1872 = vtanh.f32 %v817_v23 }
 0x131   : > { %v1851_v26 = vpop.eup %1850  ;;  %949 = vst.msk [vmem:[%s2112_s7 + $0x1c0] sm:$0xff] %vm892_vm1, %v1849_v25 }
 0x132   : > { %v1853_v27 = vpop.eup %1852  ;;  %920 = vst.msk [vmem:[%s2112_s7 + $0xd8] sm:$0xff] %vm892_vm1, %v1851_v26 }
 0x133   : > { %v1855_v35 = vpop.eup %1854  ;;  %952 = vst.msk [vmem:[%s2112_s7 + $0x1d8] sm:$0xff] %vm892_vm1, %v1853_v27 }
 0x134   : > { %v1857_v28 = vpop.eup %1856  ;;  %918 = vst.msk [vmem:[%s2112_s7 + $0xc8] sm:$0xff] %vm892_vm1, %v1855_v35 }
 0x135   : > { %v1859_v29 = vpop.eup %1858  ;;  %950 = vst.msk [vmem:[%s2112_s7 + $0x1c8] sm:$0xff] %vm892_vm1, %v1857_v28 }
 0x136   : > { %v1861_v30 = vpop.eup %1860  ;;  %923 = vst.msk [vmem:[%s2112_s7 + $0xf0] sm:$0xff] %vm892_vm1, %v1859_v29 }
 0x137   : > { %v1863_v31 = vpop.eup %1862  ;;  %955 = vst.msk [vmem:[%s2112_s7 + $0x1f0] sm:$0xff] %vm892_vm1, %v1861_v30  ;;  %963 = sbr.rel (!%p2010_p4) target bundleno = 390 (0x186), region = 36 }
 0x138   : > { %v1865_v32 = vpop.eup %1864  ;;  %921 = vst.msk [vmem:[%s2112_s7 + $0xe0] sm:$0xff] %vm892_vm1, %v1863_v31 }
 0x139   : > { %v1867_v33 = vpop.eup %1866  ;;  %953 = vst.msk [vmem:[%s2112_s7 + $0x1e0] sm:$0xff] %vm892_vm1, %v1865_v32 }
 0x13a   : > { %v1869_v34 = vpop.eup %1868  ;;  %924 = vst.msk [vmem:[%s2112_s7 + $0xf8] sm:$0xff] %vm892_vm1, %v1867_v33 }
 0x13b   : > { %v1871_v36 = vpop.eup %1870  ;;  %956 = vst.msk [vmem:[%s2112_s7 + $0x1f8] sm:$0xff] %vm892_vm1, %v1869_v34 }
 0x13c   : > { %v1873_v37 = vpop.eup %1872  ;;  %922 = vst.msk [vmem:[%s2112_s7 + $0xe8] sm:$0xff] %vm892_vm1, %v1871_v36 }
 0x13d   : > { %954 = vst.msk [vmem:[%s2112_s7 + $0x1e8] sm:$0xff] %vm892_vm1, %v1873_v37 }
 0x13e   : > { %s2511_s8 = smov (!%p966_p8, %s965_s8), 64 }
 0x13f   : > { %s1500_s13 = sshll.u32 %s2511_s8, 7 }
 0x140   : > { %p1503_p9 = scmp.eq.s32.totalorder %s1500_s13, 0 }
 0x141   : > { %s2304_s14 = sshrl.u32 (!%p1503_p9), %s2511_s8, 6 }
 0x142   : > { %974 = sbr.rel (%p1503_p9) target bundleno = 390 (0x186), region = 40  ;;  %p1504_p10 = scmp.le.s32.totalorder (!%p1503_p9), %s2304_s14, 0 }
 0x149   : > { %1380 = sbr.rel (%p1504_p10) target bundleno = 369 (0x171), region = 116  ;;  %s2502_s16 = smov (!%p1504_p10), %s2298_s12 }
 0x14a   : > { %s2503_s2 = smov (!%p1504_p10), %s2112_s7  ;;  %s2313_s18 = smov (!%p1504_p10), 0  }
 0x14b   : > { %s2315_s19 = smov (!%p1504_p10), 0  }
 0x150 LB: >> { %v1162_v38 = vld [vmem:[%s1936_s2] sm:$0xff]  ;;  %v1164_v39 = vld [vmem:[%s1936_s2 + $0x8] sm:$0xff]  ;;  %v1166_v40 = vld [vmem:[%s1936_s2 + $0x10] sm:$0xff]  ;;  %s1290_s21 = sadd.s32 1, %s1940_s18  ;;  %s1156_s19 = sadd.s32 1, %s1944_s19   ;;  %s1944_s19 = sphi %s2315_s19, %s1156_s19   ;;  %s1940_s18 = sphi %s2313_s18, %s2506_s18   ;;  %s1936_s2 = sphi %s2503_s2, %s2505_s2   ;;  %s1932_s16 = sphi %s2502_s16, %s2504_s16  }
 0x151   : >> { %1163 = vst [vmem:[%s1932_s16] sm:$0xff] %v1162_v38  ;;  %1165 = vst [vmem:[%s1932_s16 + $0x8] sm:$0xff] %v1164_v39  ;;  %v1168_v41 = vld [vmem:[%s1936_s2 + $0x18] sm:$0xff]  ;;  %v1170_v42 = vld [vmem:[%s1936_s2 + $0x20] sm:$0xff]  ;;  %p1291_p11 = scmp.ge.s32.totalorder %s1290_s21, %s2304_s14  ;;  %p1155_p12 = scmp.ge.s32.totalorder %s1156_s19, %s2304_s14 }
 0x152   : >> { %1167 = vst [vmem:[%s1932_s16 + $0x10] sm:$0xff] %v1166_v40  ;;  %v1172_v43 = vld [vmem:[%s1936_s2 + $0x28] sm:$0xff]  ;;  %1169 = vst [vmem:[%s1932_s16 + $0x18] sm:$0xff] %v1168_v41  ;;  %v1174_v44 = vld [vmem:[%s1936_s2 + $0x30] sm:$0xff] }
 0x153   : >> { %1171 = vst [vmem:[%s1932_s16 + $0x20] sm:$0xff] %v1170_v42  ;;  %1173 = vst [vmem:[%s1932_s16 + $0x28] sm:$0xff] %v1172_v43  ;;  %v1176_v45 = vld [vmem:[%s1936_s2 + $0x38] sm:$0xff]  ;;  %v1178_v46 = vld [vmem:[%s1936_s2 + $0x40] sm:$0xff]  ;;  %s2513_s21 = smov (%p1291_p11, %s1290_s21), 0 }
 0x154   : >> { %1175 = vst [vmem:[%s1932_s16 + $0x30] sm:$0xff] %v1174_v44  ;;  %1177 = vst [vmem:[%s1932_s16 + $0x38] sm:$0xff] %v1176_v45  ;;  %v1180_v47 = vld [vmem:[%s1936_s2 + $0x48] sm:$0xff]  ;;  %v1182_v48 = vld [vmem:[%s1936_s2 + $0x50] sm:$0xff]  ;;  %s1505_s22 = sshll.u32 %s2513_s21, 9  ;;  %s2506_s18 = smov %s2513_s21 }
 0x155   : >> { %1179 = vst [vmem:[%s1932_s16 + $0x40] sm:$0xff] %v1178_v46  ;;  %v1184_v49 = vld [vmem:[%s1936_s2 + $0x58] sm:$0xff]  ;;  %1181 = vst [vmem:[%s1932_s16 + $0x48] sm:$0xff] %v1180_v47  ;;  %v1186_v50 = vld [vmem:[%s1936_s2 + $0x60] sm:$0xff]  ;;  %s2371_s23 = scalar_lea.vmem %s2112_s7, %s1505_s22 [#allocation3]   ;;  %s2374_s24 = scalar_lea.vmem %s2298_s12, %s1505_s22  }
 0x156   : >> { %1183 = vst [vmem:[%s1932_s16 + $0x50] sm:$0xff] %v1182_v48  ;;  %1185 = vst [vmem:[%s1932_s16 + $0x58] sm:$0xff] %v1184_v49  ;;  %v1188_v51 = vld [vmem:[%s1936_s2 + $0x68] sm:$0xff]  ;;  %v1190_v52 = vld [vmem:[%s1936_s2 + $0x70] sm:$0xff] }
 0x157   : >> { %1187 = vst [vmem:[%s1932_s16 + $0x60] sm:$0xff] %v1186_v50  ;;  %1189 = vst [vmem:[%s1932_s16 + $0x68] sm:$0xff] %v1188_v51  ;;  %v1192_v53 = vld [vmem:[%s1936_s2 + $0x78] sm:$0xff]  ;;  %v1194_v54 = vld [vmem:[%s1936_s2 + $0x80] sm:$0xff] }
 0x158   : >> { %1191 = vst [vmem:[%s1932_s16 + $0x70] sm:$0xff] %v1190_v52  ;;  %v1196_v55 = vld [vmem:[%s1936_s2 + $0x88] sm:$0xff]  ;;  %1193 = vst [vmem:[%s1932_s16 + $0x78] sm:$0xff] %v1192_v53  ;;  %v1198_v56 = vld [vmem:[%s1936_s2 + $0x90] sm:$0xff] }
 0x159   : >> { %1195 = vst [vmem:[%s1932_s16 + $0x80] sm:$0xff] %v1194_v54  ;;  %1197 = vst [vmem:[%s1932_s16 + $0x88] sm:$0xff] %v1196_v55  ;;  %v1200_v57 = vld [vmem:[%s1936_s2 + $0x98] sm:$0xff]  ;;  %v1202_v58 = vld [vmem:[%s1936_s2 + $0xa0] sm:$0xff] }
 0x15a   : >> { %1199 = vst [vmem:[%s1932_s16 + $0x90] sm:$0xff] %v1198_v56  ;;  %1201 = vst [vmem:[%s1932_s16 + $0x98] sm:$0xff] %v1200_v57  ;;  %v1204_v59 = vld [vmem:[%s1936_s2 + $0xa8] sm:$0xff]  ;;  %v1206_v60 = vld [vmem:[%s1936_s2 + $0xb0] sm:$0xff] }
 0x15b   : >> { %1203 = vst [vmem:[%s1932_s16 + $0xa0] sm:$0xff] %v1202_v58  ;;  %v1208_v61 = vld [vmem:[%s1936_s2 + $0xb8] sm:$0xff]  ;;  %1205 = vst [vmem:[%s1932_s16 + $0xa8] sm:$0xff] %v1204_v59  ;;  %v1210_v62 = vld [vmem:[%s1936_s2 + $0xc0] sm:$0xff] }
 0x15c   : >> { %1207 = vst [vmem:[%s1932_s16 + $0xb0] sm:$0xff] %v1206_v60  ;;  %1209 = vst [vmem:[%s1932_s16 + $0xb8] sm:$0xff] %v1208_v61  ;;  %v1212_v63 = vld [vmem:[%s1936_s2 + $0xc8] sm:$0xff]  ;;  %v1214_v0 = vld [vmem:[%s1936_s2 + $0xd0] sm:$0xff] }
 0x15d   : >> { %1211 = vst [vmem:[%s1932_s16 + $0xc0] sm:$0xff] %v1210_v62  ;;  %1213 = vst [vmem:[%s1932_s16 + $0xc8] sm:$0xff] %v1212_v63  ;;  %v1216_v1 = vld [vmem:[%s1936_s2 + $0xd8] sm:$0xff]  ;;  %v1218_v2 = vld [vmem:[%s1936_s2 + $0xe0] sm:$0xff] }
 0x15e   : >> { %1215 = vst [vmem:[%s1932_s16 + $0xd0] sm:$0xff] %v1214_v0  ;;  %v1220_v3 = vld [vmem:[%s1936_s2 + $0xe8] sm:$0xff]  ;;  %1217 = vst [vmem:[%s1932_s16 + $0xd8] sm:$0xff] %v1216_v1  ;;  %v1222_v4 = vld [vmem:[%s1936_s2 + $0xf0] sm:$0xff] }
 0x15f   : >> { %1219 = vst [vmem:[%s1932_s16 + $0xe0] sm:$0xff] %v1218_v2  ;;  %1221 = vst [vmem:[%s1932_s16 + $0xe8] sm:$0xff] %v1220_v3  ;;  %v1224_v5 = vld [vmem:[%s1936_s2 + $0xf8] sm:$0xff]  ;;  %v1226_v6 = vld [vmem:[%s1936_s2 + $0x100] sm:$0xff] }
 0x160   : >> { %1223 = vst [vmem:[%s1932_s16 + $0xf0] sm:$0xff] %v1222_v4  ;;  %1225 = vst [vmem:[%s1932_s16 + $0xf8] sm:$0xff] %v1224_v5  ;;  %v1228_v7 = vld [vmem:[%s1936_s2 + $0x108] sm:$0xff]  ;;  %v1230_v8 = vld [vmem:[%s1936_s2 + $0x110] sm:$0xff] }
 0x161   : >> { %1227 = vst [vmem:[%s1932_s16 + $0x100] sm:$0xff] %v1226_v6  ;;  %v1232_v9 = vld [vmem:[%s1936_s2 + $0x118] sm:$0xff]  ;;  %1229 = vst [vmem:[%s1932_s16 + $0x108] sm:$0xff] %v1228_v7  ;;  %v1234_v10 = vld [vmem:[%s1936_s2 + $0x120] sm:$0xff] }
 0x162   : >> { %1231 = vst [vmem:[%s1932_s16 + $0x110] sm:$0xff] %v1230_v8  ;;  %1233 = vst [vmem:[%s1932_s16 + $0x118] sm:$0xff] %v1232_v9  ;;  %v1236_v11 = vld [vmem:[%s1936_s2 + $0x128] sm:$0xff]  ;;  %v1238_v12 = vld [vmem:[%s1936_s2 + $0x130] sm:$0xff] }
 0x163   : >> { %1235 = vst [vmem:[%s1932_s16 + $0x120] sm:$0xff] %v1234_v10  ;;  %1237 = vst [vmem:[%s1932_s16 + $0x128] sm:$0xff] %v1236_v11  ;;  %v1240_v13 = vld [vmem:[%s1936_s2 + $0x138] sm:$0xff]  ;;  %v1242_v14 = vld [vmem:[%s1936_s2 + $0x140] sm:$0xff] }
 0x164   : >> { %1239 = vst [vmem:[%s1932_s16 + $0x130] sm:$0xff] %v1238_v12  ;;  %v1244_v15 = vld [vmem:[%s1936_s2 + $0x148] sm:$0xff]  ;;  %1241 = vst [vmem:[%s1932_s16 + $0x138] sm:$0xff] %v1240_v13  ;;  %v1246_v16 = vld [vmem:[%s1936_s2 + $0x150] sm:$0xff] }
 0x165   : >> { %1243 = vst [vmem:[%s1932_s16 + $0x140] sm:$0xff] %v1242_v14  ;;  %1245 = vst [vmem:[%s1932_s16 + $0x148] sm:$0xff] %v1244_v15  ;;  %v1248_v17 = vld [vmem:[%s1936_s2 + $0x158] sm:$0xff]  ;;  %v1250_v18 = vld [vmem:[%s1936_s2 + $0x160] sm:$0xff] }
 0x166   : >> { %1247 = vst [vmem:[%s1932_s16 + $0x150] sm:$0xff] %v1246_v16  ;;  %1249 = vst [vmem:[%s1932_s16 + $0x158] sm:$0xff] %v1248_v17  ;;  %v1252_v19 = vld [vmem:[%s1936_s2 + $0x168] sm:$0xff]  ;;  %v1254_v20 = vld [vmem:[%s1936_s2 + $0x170] sm:$0xff] }
 0x167   : >> { %1251 = vst [vmem:[%s1932_s16 + $0x160] sm:$0xff] %v1250_v18  ;;  %v1256_v21 = vld [vmem:[%s1936_s2 + $0x178] sm:$0xff]  ;;  %1253 = vst [vmem:[%s1932_s16 + $0x168] sm:$0xff] %v1252_v19  ;;  %v1258_v22 = vld [vmem:[%s1936_s2 + $0x180] sm:$0xff] }
 0x168   : >> { %1255 = vst [vmem:[%s1932_s16 + $0x170] sm:$0xff] %v1254_v20  ;;  %1257 = vst [vmem:[%s1932_s16 + $0x178] sm:$0xff] %v1256_v21  ;;  %v1260_v23 = vld [vmem:[%s1936_s2 + $0x188] sm:$0xff]  ;;  %v1262_v24 = vld [vmem:[%s1936_s2 + $0x190] sm:$0xff] }
 0x169   : >> { %1259 = vst [vmem:[%s1932_s16 + $0x180] sm:$0xff] %v1258_v22  ;;  %1261 = vst [vmem:[%s1932_s16 + $0x188] sm:$0xff] %v1260_v23  ;;  %v1264_v25 = vld [vmem:[%s1936_s2 + $0x198] sm:$0xff]  ;;  %v1266_v26 = vld [vmem:[%s1936_s2 + $0x1a0] sm:$0xff] }
 0x16a   : >> { %1263 = vst [vmem:[%s1932_s16 + $0x190] sm:$0xff] %v1262_v24  ;;  %v1268_v27 = vld [vmem:[%s1936_s2 + $0x1a8] sm:$0xff]  ;;  %1265 = vst [vmem:[%s1932_s16 + $0x198] sm:$0xff] %v1264_v25  ;;  %v1270_v35 = vld [vmem:[%s1936_s2 + $0x1b0] sm:$0xff]  ;;  %1158 = sbr.rel (!%p1155_p12) target bundleno = 336 (0x150), region = 122 }
 0x16b   : >> { %1267 = vst [vmem:[%s1932_s16 + $0x1a0] sm:$0xff] %v1266_v26  ;;  %1269 = vst [vmem:[%s1932_s16 + $0x1a8] sm:$0xff] %v1268_v27  ;;  %v1272_v28 = vld [vmem:[%s1936_s2 + $0x1b8] sm:$0xff]  ;;  %v1274_v29 = vld [vmem:[%s1936_s2 + $0x1c0] sm:$0xff] }
 0x16c   : >> { %1271 = vst [vmem:[%s1932_s16 + $0x1b0] sm:$0xff] %v1270_v35  ;;  %1273 = vst [vmem:[%s1932_s16 + $0x1b8] sm:$0xff] %v1272_v28  ;;  %v1276_v30 = vld [vmem:[%s1936_s2 + $0x1c8] sm:$0xff]  ;;  %v1278_v31 = vld [vmem:[%s1936_s2 + $0x1d0] sm:$0xff] }
 0x16d   : >> { %1275 = vst [vmem:[%s1932_s16 + $0x1c0] sm:$0xff] %v1274_v29  ;;  %v1280_v32 = vld [vmem:[%s1936_s2 + $0x1d8] sm:$0xff]  ;;  %1277 = vst [vmem:[%s1932_s16 + $0x1c8] sm:$0xff] %v1276_v30  ;;  %v1282_v33 = vld [vmem:[%s1936_s2 + $0x1e0] sm:$0xff] }
 0x16e   : >> { %1279 = vst [vmem:[%s1932_s16 + $0x1d0] sm:$0xff] %v1278_v31  ;;  %1281 = vst [vmem:[%s1932_s16 + $0x1d8] sm:$0xff] %v1280_v32  ;;  %v1284_v34 = vld [vmem:[%s1936_s2 + $0x1e8] sm:$0xff]  ;;  %v1286_v36 = vld [vmem:[%s1936_s2 + $0x1f0] sm:$0xff] }
 0x16f   : >> { %1283 = vst [vmem:[%s1932_s16 + $0x1e0] sm:$0xff] %v1282_v33  ;;  %1285 = vst [vmem:[%s1932_s16 + $0x1e8] sm:$0xff] %v1284_v34  ;;  %v1288_v37 = vld [vmem:[%s1936_s2 + $0x1f8] sm:$0xff]  ;;  %s2505_s2 = smov %s2371_s23 }
 0x170   : >> { %1287 = vst [vmem:[%s1932_s16 + $0x1f0] sm:$0xff] %v1286_v36  ;;  %1289 = vst [vmem:[%s1932_s16 + $0x1f8] sm:$0xff] %v1288_v37  ;;  %s2504_s16 = smov %s2374_s24 }
 0x171 PF: > { %s2479_s25 = sand.u32 63, %s2511_s8   ;;  %s1516_s26 = sshll.u32 %s2304_s14, 9 }
 0x172   : > { %s1301_s27 = scalar_lea.vmem %s2112_s7, %s1516_s26 [#allocation3]   ;;  %s1303_s28 = scalar_lea.vmem %s2298_s12, %s1516_s26  }
 0x173   : > { %p1510_p13 = scmp.le.s32.totalorder %s2479_s25, 0 }
 0x174   : > { %s1946_s29 = smov (!%p1510_p13), %s1303_s28   ;;  %s1950_s30 = smov (!%p1510_p13), %s1301_s27  }
 0x175   : > { %1394 = sbr.rel (%p1510_p13) target bundleno = 390 (0x186), region = 127  ;;  %s1954_s4 = smov (!%p1510_p13), 0  }
 0x176   : > { %s1958_s5 = smov (!%p1510_p13), 0  }
 0x17c LB: >> { %v1313_v38 = vld [vmem:[%s1952_s30] sm:$0xff]  ;;  %s1315_s6 = sadd.s32 1, %s1956_s4  ;;  %s1307_s5 = sadd.s32 1, %s1960_s5   ;;  %s1960_s5 = sphi %s1958_s5, %s1307_s5   ;;  %s1956_s4 = sphi %s1954_s4, %s1955_s4   ;;  %s1952_s30 = sphi %s1950_s30, %s1320_s30   ;;  %s1948_s29 = sphi %s1946_s29, %s1321_s29  }
 0x17d   : >> { %1314 = vst [vmem:[%s1948_s29] sm:$0xff] %v1313_v38  ;;  %p1316_p0 = scmp.ge.s32.totalorder %s1315_s6, %s2479_s25  ;;  %p1306_p1 = scmp.ge.s32.totalorder %s1307_s5, %s2479_s25 }
 0x17f   : >> { %s2515_s6 = smov (%p1316_p0, %s1315_s6), 0  ;;  %1309 = sbr.rel (!%p1306_p1) target bundleno = 380 (0x17c), region = 133 }
 0x180   : >> { %s1511_s7 = sshll.u32 %s2515_s6, 3  ;;  %s1955_s4 = smov %s2515_s6  }
 0x181   : >> { %s1320_s30 = scalar_lea.vmem %s1301_s27, %s1511_s7 [#allocation3]   ;;  %s1321_s29 = scalar_lea.vmem %s1303_s28, %s1511_s7  }
 0x186 PF: > { %p12_p2 = scmp.ge.s32.totalorder %s2000_s17, 6   ;;  %s2507_s14 = smov %s1924_s15 }
 0x187   : > { %s2508_s15 = smov %s2008_s20  ;;  %s2509_s16 = smov %s2000_s17 }
 0x188   :  { %14 = sbr.rel (!%p12_p2) target bundleno = 5 (0x5), region = 144 }

</bundles_post_ra>
